<compile_context>
chip_gen: v5e
topology: v5e:2x2
jax: 0.10.0
libtpu: 0.0.40
codegen_flags: <defaults>
</compile_context>

<pallas_src>
import functools

import jax
import jax.numpy as jnp
from jax.experimental import pallas as pl
from jax.experimental.pallas import tpu as pltpu


def _rnn_classifier_kernel(
    embs_ref,    # (S*B, H)   embedded tokens, time-major rows (row = t*B + b)
    mask_ref,    # (S*B, 1)   attention mask, same row order
    len_ref,     # (B, 1)     sequence lengths
    w0ih_ref,    # (H, 8H)    layer-0 ih weights, [fwd | rev] fused on columns
    whh0f_ref,   # (H, 4H)    layer-0 fwd hh weights
    whh0r_ref,   # (H, 4H)    layer-0 rev hh weights
    b0_ref,      # (1, 8H)    layer-0 (b_ih + b_hh), [fwd | rev]
    w1top_ref,   # (H, 8H)    layer-1 ih rows multiplying the layer-0 fwd outputs
    w1bot_ref,   # (H, 8H)    layer-1 ih rows multiplying the layer-0 rev outputs
    whh1f_ref,   # (H, 4H)
    whh1r_ref,   # (H, 4H)
    b1_ref,      # (1, 8H)
    wlin_ref,    # (2H, C)
    blin_ref,    # (1, C)
    out_ref,     # (B, C)
    l0f_ref,     # scratch (S*B, H): layer-0 forward hidden sequence
    l0b_ref,     # scratch (S*B, H): layer-0 reverse hidden sequence
    gih_ref,     # scratch (S*B, 8H): hoisted ih gates (reused by layer 0 and layer 1)
    *, S, B, H,
):
    G = 4 * H
    zeros = jnp.zeros((B, H), jnp.float32)

    def cell(gates_ih, h, c, whh):
        # gates_ih already holds x @ W_ih^T + b_ih + b_hh (PyTorch gate order i,f,g,o);
        # only the recurrence-critical h @ W_hh^T matmul happens per step.
        gates = gates_ih + jnp.dot(h.astype(whh.dtype), whh,
                                   preferred_element_type=jnp.float32)
        i = jax.nn.sigmoid(gates[:, 0 * H:1 * H])
        f = jax.nn.sigmoid(gates[:, 1 * H:2 * H])
        g = jnp.tanh(gates[:, 2 * H:3 * H])
        o = jax.nn.sigmoid(gates[:, 3 * H:4 * H])
        c = f * c + i * g
        h = o * jnp.tanh(c)
        return h, c

    whh0f = whh0f_ref[...]
    whh0r = whh0r_ref[...]
    whh1f = whh1f_ref[...]
    whh1r = whh1r_ref[...]

    # ---- layer 0: hoisted ih projection (fwd+rev fused, bias folded) -> one MXU launch ----
    gih_ref[...] = (
        jnp.dot(embs_ref[...], w0ih_ref[...], preferred_element_type=jnp.float32)
        + b0_ref[...])

    # ---- layer 0, forward direction (fully unrolled; static slices only) ----
    h, c = zeros, zeros
    for t in range(S):
        r = slice(t * B, (t + 1) * B)
        h, c = cell(gih_ref[r, 0:G], h, c, whh0f)
        l0f_ref[r, :] = h.astype(l0f_ref.dtype)

    # ---- layer 0, reverse direction ----
    h, c = zeros, zeros
    for t in range(S - 1, -1, -1):
        r = slice(t * B, (t + 1) * B)
        h, c = cell(gih_ref[r, G:2 * G], h, c, whh0r)
        l0b_ref[r, :] = h.astype(l0b_ref.dtype)

    # ---- layer 1: hoisted ih projection; row-split weight avoids concatenating l0f/l0b ----
    gih_ref[...] = (
        jnp.dot(l0f_ref[...], w1top_ref[...], preferred_element_type=jnp.float32)
        + jnp.dot(l0b_ref[...], w1bot_ref[...], preferred_element_type=jnp.float32)
        + b1_ref[...])

    # ---- layer 1, forward direction (masked sum accumulated on the fly) ----
    h, c, acc_f = zeros, zeros, zeros
    for t in range(S):
        r = slice(t * B, (t + 1) * B)
        h, c = cell(gih_ref[r, 0:G], h, c, whh1f)
        acc_f = acc_f + mask_ref[r, :] * h

    # ---- layer 1, reverse direction ----
    h, c, acc_b = zeros, zeros, zeros
    for t in range(S - 1, -1, -1):
        r = slice(t * B, (t + 1) * B)
        h, c = cell(gih_ref[r, G:2 * G], h, c, whh1r)
        acc_b = acc_b + mask_ref[r, :] * h

    # ---- masked mean pool over time, final linear layer ----
    # (no guard against length == 0, matching the PyTorch reference which also divides)
    pooled = jnp.concatenate([acc_f, acc_b], axis=-1) / len_ref[...]
    out_ref[...] = (
        jnp.dot(pooled, wlin_ref[...], preferred_element_type=jnp.float32)
        + blin_ref[...])


def rnn_classifier_forward(tokens, attention_ids, length, params,
                           matmul_dtype=jnp.float32):
    """Equivalent of RNNclassifier.forward (eval-mode dropout).

    matmul_dtype: dtype of MXU operands (embeddings, weights, layer-0 outputs).
      Use jnp.bfloat16 on v6e/v7x for higher MXU throughput; gate math, cell state and
      accumulators stay float32 either way (per v5e guidance: elementwise math in f32).
    """
    emb_table = params["embedding"]                     # (V, H)
    B, S = tokens.shape
    H = emb_table.shape[1]
    C = params["linear_w"].shape[0]

    # Embedding gather directly in time-major order: transpose the tiny int32 token
    # matrix, not the f32 activations.
    tok_t = tokens.T.reshape(-1)                                        # (S*B,)
    embs = jnp.take(emb_table, tok_t, axis=0).astype(matmul_dtype)      # (S*B, H)
    mask = attention_ids.astype(jnp.float32).T.reshape(S * B, 1)        # (S*B, 1)
    len_b = length.astype(jnp.float32).reshape(B, 1)                    # (B, 1)

    def prep(layer):
        def one(rev):
            sfx = f"l{layer}" + ("_reverse" if rev else "")
            wih = params[f"weight_ih_{sfx}"].T          # (in, 4H), gate order i,f,g,o
            whh = params[f"weight_hh_{sfx}"].T          # (H, 4H)
            b = params[f"bias_ih_{sfx}"] + params[f"bias_hh_{sfx}"]     # (4H,)
            return wih, whh, b
        wihf, whhf, bf = one(False)
        wihr, whhr, br = one(True)
        wih = jnp.concatenate([wihf, wihr], axis=1).astype(matmul_dtype)   # (in, 8H)
        b = jnp.concatenate([bf, br]).reshape(1, 8 * H).astype(jnp.float32)
        return wih, whhf.astype(matmul_dtype), whhr.astype(matmul_dtype), b

    w0ih, whh0f, whh0r, b0 = prep(0)
    w1ih, whh1f, whh1r, b1 = prep(1)
    w1top, w1bot = w1ih[:H, :], w1ih[H:, :]              # fwd-half / rev-half input rows
    wlin = params["linear_w"].T.astype(jnp.float32)      # (2H, C)
    blin = params["linear_b"].reshape(1, C).astype(jnp.float32)

    kernel = functools.partial(_rnn_classifier_kernel, S=S, B=B, H=H)
    vmem = pl.BlockSpec(memory_space=pltpu.MemorySpace.VMEM)

    out = pl.pallas_call(
        kernel,
        out_shape=jax.ShapeDtypeStruct((B, C), jnp.float32),
        in_specs=[vmem] * 14,
        out_specs=vmem,
        scratch_shapes=[
            pltpu.VMEM((S * B, H), matmul_dtype),        # layer-0 fwd hidden sequence
            pltpu.VMEM((S * B, H), matmul_dtype),        # layer-0 rev hidden sequence
            pltpu.VMEM((S * B, 8 * H), jnp.float32),     # hoisted ih gates (reused)
        ],
    )(embs, mask, len_b,
      w0ih, whh0f, whh0r, b0,
      w1top, w1bot, whh1f, whh1r, b1,
      wlin, blin)
    return out


def init_params(key, vocab, H, C):
    params = {}
    keys = iter(jax.random.split(key, 64))

    def rnd(shape, scale=0.1):
        return (scale * jax.random.normal(next(keys), shape)).astype(jnp.float32)

    params["embedding"] = rnd((vocab, H))
    for layer, in_sz in [(0, H), (1, 2 * H)]:
        for rev in (False, True):
            sfx = f"l{layer}" + ("_reverse" if rev else "")
            params[f"weight_ih_{sfx}"] = rnd((4 * H, in_sz))
            params[f"weight_hh_{sfx}"] = rnd((4 * H, H))
            params[f"bias_ih_{sfx}"] = rnd((4 * H,))
            params[f"bias_hh_{sfx}"] = rnd((4 * H,))
    params["linear_w"] = rnd((C, 2 * H))
    params["linear_b"] = rnd((C,))
    return params


if __name__ == "__main__":
    # Small shapes consistent with the module: batch=2, seq=8, hidden=32, vocab=64, classes=1
    B, S, H, V, C = 2, 8, 32, 64, 1

    key = jax.random.PRNGKey(0)
    kp, kt = jax.random.split(key, 2)

    params = init_params(kp, V, H, C)
    tokens = jax.random.randint(kt, (B, S), 0, V, dtype=jnp.int32)
    lengths_int = jnp.array([S, S - 3], dtype=jnp.int32)
    attention_ids = (jnp.arange(S)[None, :] < lengths_int[:, None]).astype(jnp.float32)
    length = lengths_int.astype(jnp.float32)

    out = rnn_classifier_forward(tokens, attention_ids, length, params)
    jax.block_until_ready(out)
    assert out.shape == (B, C)
    print("KERNEL_OK")
</pallas_src>

<mosaic_0001>
module attributes {stable_mosaic.version = 11 : i64} {
  func.func @_rnn_classifier_kernel(%arg0: memref<16x32xf32, #tpu.memory_space<vmem>>, %arg1: memref<16x1xf32, #tpu.memory_space<vmem>>, %arg2: memref<2x1xf32, #tpu.memory_space<vmem>>, %arg3: memref<32x256xf32, #tpu.memory_space<vmem>>, %arg4: memref<32x128xf32, #tpu.memory_space<vmem>>, %arg5: memref<32x128xf32, #tpu.memory_space<vmem>>, %arg6: memref<1x256xf32, #tpu.memory_space<vmem>>, %arg7: memref<32x256xf32, #tpu.memory_space<vmem>>, %arg8: memref<32x256xf32, #tpu.memory_space<vmem>>, %arg9: memref<32x128xf32, #tpu.memory_space<vmem>>, %arg10: memref<32x128xf32, #tpu.memory_space<vmem>>, %arg11: memref<1x256xf32, #tpu.memory_space<vmem>>, %arg12: memref<64x1xf32, #tpu.memory_space<vmem>>, %arg13: memref<1x1xf32, #tpu.memory_space<vmem>>, %arg14: memref<2x1xf32, #tpu.memory_space<vmem>>, %arg15: memref<16x32xf32, #tpu.memory_space<vmem>>, %arg16: memref<16x32xf32, #tpu.memory_space<vmem>>, %arg17: memref<16x256xf32, #tpu.memory_space<vmem>>) attributes {dimension_semantics = [], scalar_prefetch = 0 : i64, scratch_operands = 3 : i64, tpu.core_type = #tpu.core_type<tc>} {
    %cst = arith.constant 0.000000e+00 : f32
    %0 = vector.broadcast %cst : f32 to vector<2x32xf32>
    %c0 = arith.constant 0 : index
    %c0_0 = arith.constant 0 : index
    %1 = vector.load %arg4[%c0, %c0_0] : memref<32x128xf32, #tpu.memory_space<vmem>>, vector<32x128xf32>
    %c0_1 = arith.constant 0 : index
    %c0_2 = arith.constant 0 : index
    %2 = vector.load %arg5[%c0_1, %c0_2] : memref<32x128xf32, #tpu.memory_space<vmem>>, vector<32x128xf32>
    %c0_3 = arith.constant 0 : index
    %c0_4 = arith.constant 0 : index
    %3 = vector.load %arg9[%c0_3, %c0_4] : memref<32x128xf32, #tpu.memory_space<vmem>>, vector<32x128xf32>
    %c0_5 = arith.constant 0 : index
    %c0_6 = arith.constant 0 : index
    %4 = vector.load %arg10[%c0_5, %c0_6] : memref<32x128xf32, #tpu.memory_space<vmem>>, vector<32x128xf32>
    %c0_7 = arith.constant 0 : index
    %c0_8 = arith.constant 0 : index
    %5 = vector.load %arg0[%c0_7, %c0_8] : memref<16x32xf32, #tpu.memory_space<vmem>>, vector<16x32xf32>
    %c0_9 = arith.constant 0 : index
    %c0_10 = arith.constant 0 : index
    %6 = vector.load %arg3[%c0_9, %c0_10] : memref<32x256xf32, #tpu.memory_space<vmem>>, vector<32x256xf32>
    %cst_11 = arith.constant dense<0.000000e+00> : vector<16x256xf32>
    %7 = tpu.matmul %5, %6, %cst_11 {dimension_numbers = #tpu.dot_dimension_numbers<[1], [0], [0], [1], [0, 0, 1, 1], [], []>} : vector<16x32xf32>, vector<32x256xf32>, vector<16x256xf32> -> vector<16x256xf32>
    %c0_12 = arith.constant 0 : index
    %c0_13 = arith.constant 0 : index
    %8 = vector.load %arg6[%c0_12, %c0_13] : memref<1x256xf32, #tpu.memory_space<vmem>>, vector<1x256xf32>
    %9 = vector.broadcast %8 : vector<1x256xf32> to vector<16x256xf32>
    %10 = arith.addf %7, %9 : vector<16x256xf32>
    %c0_14 = arith.constant 0 : index
    %c0_15 = arith.constant 0 : index
    %11 = vector.load %arg17[%c0_14, %c0_15] : memref<16x256xf32, #tpu.memory_space<vmem>>, vector<16x256xf32>
    tpu.vector_store %arg17[%c0_14, %c0_15], %10 {strides = array<i32>} : memref<16x256xf32, #tpu.memory_space<vmem>>, vector<16x256xf32>,
    %c0_16 = arith.constant 0 : index
    %c0_17 = arith.constant 0 : index
    %12 = vector.load %arg17[%c0_16, %c0_17] : memref<16x256xf32, #tpu.memory_space<vmem>>, vector<2x128xf32>
    %cst_18 = arith.constant dense<0.000000e+00> : vector<2x128xf32>
    %13 = tpu.matmul %0, %1, %cst_18 {dimension_numbers = #tpu.dot_dimension_numbers<[1], [0], [0], [1], [0, 0, 1, 1], [], []>} : vector<2x32xf32>, vector<32x128xf32>, vector<2x128xf32> -> vector<2x128xf32>
    %14 = arith.addf %12, %13 : vector<2x128xf32>
    %15 = vector.extract_strided_slice %14 {offsets = [0, 0], sizes = [2, 32], strides = [1, 1]} : vector<2x128xf32> to vector<2x32xf32>
    %16 = arith.negf %15 : vector<2x32xf32>
    %17 = math.exp %16 : vector<2x32xf32>
    %cst_19 = arith.constant 1.000000e+00 : f32
    %18 = vector.broadcast %cst_19 : f32 to vector<2x32xf32>
    %19 = arith.addf %18, %17 : vector<2x32xf32>
    %20 = arith.divf %18, %19 : vector<2x32xf32>
    %21 = vector.extract_strided_slice %14 {offsets = [0, 32], sizes = [2, 32], strides = [1, 1]} : vector<2x128xf32> to vector<2x32xf32>
    %22 = arith.negf %21 : vector<2x32xf32>
    %23 = math.exp %22 : vector<2x32xf32>
    %cst_20 = arith.constant 1.000000e+00 : f32
    %24 = vector.broadcast %cst_20 : f32 to vector<2x32xf32>
    %25 = arith.addf %24, %23 : vector<2x32xf32>
    %26 = arith.divf %24, %25 : vector<2x32xf32>
    %27 = vector.extract_strided_slice %14 {offsets = [0, 64], sizes = [2, 32], strides = [1, 1]} : vector<2x128xf32> to vector<2x32xf32>
    %28 = math.tanh %27 : vector<2x32xf32>
    %29 = vector.extract_strided_slice %14 {offsets = [0, 96], sizes = [2, 32], strides = [1, 1]} : vector<2x128xf32> to vector<2x32xf32>
    %30 = arith.negf %29 : vector<2x32xf32>
    %31 = math.exp %30 : vector<2x32xf32>
    %cst_21 = arith.constant 1.000000e+00 : f32
    %32 = vector.broadcast %cst_21 : f32 to vector<2x32xf32>
    %33 = arith.addf %32, %31 : vector<2x32xf32>
    %34 = arith.divf %32, %33 : vector<2x32xf32>
    %35 = arith.mulf %26, %0 : vector<2x32xf32>
    %36 = arith.mulf %20, %28 : vector<2x32xf32>
    %37 = arith.addf %35, %36 : vector<2x32xf32>
    %38 = math.tanh %37 : vector<2x32xf32>
    %39 = arith.mulf %34, %38 : vector<2x32xf32>
    %c0_22 = arith.constant 0 : index
    %c0_23 = arith.constant 0 : index
    %40 = vector.load %arg15[%c0_22, %c0_23] : memref<16x32xf32, #tpu.memory_space<vmem>>, vector<2x32xf32>
    tpu.vector_store %arg15[%c0_22, %c0_23], %39 {strides = array<i32>} : memref<16x32xf32, #tpu.memory_space<vmem>>, vector<2x32xf32>,
    %c2 = arith.constant 2 : index
    %c0_24 = arith.constant 0 : index
    %41 = vector.load %arg17[%c2, %c0_24] : memref<16x256xf32, #tpu.memory_space<vmem>>, vector<2x128xf32>
    %cst_25 = arith.constant dense<0.000000e+00> : vector<2x128xf32>
    %42 = tpu.matmul %39, %1, %cst_25 {dimension_numbers = #tpu.dot_dimension_numbers<[1], [0], [0], [1], [0, 0, 1, 1], [], []>} : vector<2x32xf32>, vector<32x128xf32>, vector<2x128xf32> -> vector<2x128xf32>
    %43 = arith.addf %41, %42 : vector<2x128xf32>
    %44 = vector.extract_strided_slice %43 {offsets = [0, 0], sizes = [2, 32], strides = [1, 1]} : vector<2x128xf32> to vector<2x32xf32>
    %45 = arith.negf %44 : vector<2x32xf32>
    %46 = math.exp %45 : vector<2x32xf32>
    %cst_26 = arith.constant 1.000000e+00 : f32
    %47 = vector.broadcast %cst_26 : f32 to vector<2x32xf32>
    %48 = arith.addf %47, %46 : vector<2x32xf32>
    %49 = arith.divf %47, %48 : vector<2x32xf32>
    %50 = vector.extract_strided_slice %43 {offsets = [0, 32], sizes = [2, 32], strides = [1, 1]} : vector<2x128xf32> to vector<2x32xf32>
    %51 = arith.negf %50 : vector<2x32xf32>
    %52 = math.exp %51 : vector<2x32xf32>
    %cst_27 = arith.constant 1.000000e+00 : f32
    %53 = vector.broadcast %cst_27 : f32 to vector<2x32xf32>
    %54 = arith.addf %53, %52 : vector<2x32xf32>
    %55 = arith.divf %53, %54 : vector<2x32xf32>
    %56 = vector.extract_strided_slice %43 {offsets = [0, 64], sizes = [2, 32], strides = [1, 1]} : vector<2x128xf32> to vector<2x32xf32>
    %57 = math.tanh %56 : vector<2x32xf32>
    %58 = vector.extract_strided_slice %43 {offsets = [0, 96], sizes = [2, 32], strides = [1, 1]} : vector<2x128xf32> to vector<2x32xf32>
    %59 = arith.negf %58 : vector<2x32xf32>
    %60 = math.exp %59 : vector<2x32xf32>
    %cst_28 = arith.constant 1.000000e+00 : f32
    %61 = vector.broadcast %cst_28 : f32 to vector<2x32xf32>
    %62 = arith.addf %61, %60 : vector<2x32xf32>
    %63 = arith.divf %61, %62 : vector<2x32xf32>
    %64 = arith.mulf %55, %37 : vector<2x32xf32>
    %65 = arith.mulf %49, %57 : vector<2x32xf32>
    %66 = arith.addf %64, %65 : vector<2x32xf32>
    %67 = math.tanh %66 : vector<2x32xf32>
    %68 = arith.mulf %63, %67 : vector<2x32xf32>
    %c2_29 = arith.constant 2 : index
    %c0_30 = arith.constant 0 : index
    %69 = vector.load %arg15[%c2_29, %c0_30] : memref<16x32xf32, #tpu.memory_space<vmem>>, vector<2x32xf32>
    tpu.vector_store %arg15[%c2_29, %c0_30], %68 {strides = array<i32>} : memref<16x32xf32, #tpu.memory_space<vmem>>, vector<2x32xf32>,
    %c4 = arith.constant 4 : index
    %c0_31 = arith.constant 0 : index
    %70 = vector.load %arg17[%c4, %c0_31] : memref<16x256xf32, #tpu.memory_space<vmem>>, vector<2x128xf32>
    %cst_32 = arith.constant dense<0.000000e+00> : vector<2x128xf32>
    %71 = tpu.matmul %68, %1, %cst_32 {dimension_numbers = #tpu.dot_dimension_numbers<[1], [0], [0], [1], [0, 0, 1, 1], [], []>} : vector<2x32xf32>, vector<32x128xf32>, vector<2x128xf32> -> vector<2x128xf32>
    %72 = arith.addf %70, %71 : vector<2x128xf32>
    %73 = vector.extract_strided_slice %72 {offsets = [0, 0], sizes = [2, 32], strides = [1, 1]} : vector<2x128xf32> to vector<2x32xf32>
    %74 = arith.negf %73 : vector<2x32xf32>
    %75 = math.exp %74 : vector<2x32xf32>
    %cst_33 = arith.constant 1.000000e+00 : f32
    %76 = vector.broadcast %cst_33 : f32 to vector<2x32xf32>
    %77 = arith.addf %76, %75 : vector<2x32xf32>
    %78 = arith.divf %76, %77 : vector<2x32xf32>
    %79 = vector.extract_strided_slice %72 {offsets = [0, 32], sizes = [2, 32], strides = [1, 1]} : vector<2x128xf32> to vector<2x32xf32>
    %80 = arith.negf %79 : vector<2x32xf32>
    %81 = math.exp %80 : vector<2x32xf32>
    %cst_34 = arith.constant 1.000000e+00 : f32
    %82 = vector.broadcast %cst_34 : f32 to vector<2x32xf32>
    %83 = arith.addf %82, %81 : vector<2x32xf32>
    %84 = arith.divf %82, %83 : vector<2x32xf32>
    %85 = vector.extract_strided_slice %72 {offsets = [0, 64], sizes = [2, 32], strides = [1, 1]} : vector<2x128xf32> to vector<2x32xf32>
    %86 = math.tanh %85 : vector<2x32xf32>
    %87 = vector.extract_strided_slice %72 {offsets = [0, 96], sizes = [2, 32], strides = [1, 1]} : vector<2x128xf32> to vector<2x32xf32>
    %88 = arith.negf %87 : vector<2x32xf32>
    %89 = math.exp %88 : vector<2x32xf32>
    %cst_35 = arith.constant 1.000000e+00 : f32
    %90 = vector.broadcast %cst_35 : f32 to vector<2x32xf32>
    %91 = arith.addf %90, %89 : vector<2x32xf32>
    %92 = arith.divf %90, %91 : vector<2x32xf32>
    %93 = arith.mulf %84, %66 : vector<2x32xf32>
    %94 = arith.mulf %78, %86 : vector<2x32xf32>
    %95 = arith.addf %93, %94 : vector<2x32xf32>
    %96 = math.tanh %95 : vector<2x32xf32>
    %97 = arith.mulf %92, %96 : vector<2x32xf32>
    %c4_36 = arith.constant 4 : index
    %c0_37 = arith.constant 0 : index
    %98 = vector.load %arg15[%c4_36, %c0_37] : memref<16x32xf32, #tpu.memory_space<vmem>>, vector<2x32xf32>
    tpu.vector_store %arg15[%c4_36, %c0_37], %97 {strides = array<i32>} : memref<16x32xf32, #tpu.memory_space<vmem>>, vector<2x32xf32>,
    %c6 = arith.constant 6 : index
    %c0_38 = arith.constant 0 : index
    %99 = vector.load %arg17[%c6, %c0_38] : memref<16x256xf32, #tpu.memory_space<vmem>>, vector<2x128xf32>
    %cst_39 = arith.constant dense<0.000000e+00> : vector<2x128xf32>
    %100 = tpu.matmul %97, %1, %cst_39 {dimension_numbers = #tpu.dot_dimension_numbers<[1], [0], [0], [1], [0, 0, 1, 1], [], []>} : vector<2x32xf32>, vector<32x128xf32>, vector<2x128xf32> -> vector<2x128xf32>
    %101 = arith.addf %99, %100 : vector<2x128xf32>
    %102 = vector.extract_strided_slice %101 {offsets = [0, 0], sizes = [2, 32], strides = [1, 1]} : vector<2x128xf32> to vector<2x32xf32>
    %103 = arith.negf %102 : vector<2x32xf32>
    %104 = math.exp %103 : vector<2x32xf32>
    %cst_40 = arith.constant 1.000000e+00 : f32
    %105 = vector.broadcast %cst_40 : f32 to vector<2x32xf32>
    %106 = arith.addf %105, %104 : vector<2x32xf32>
    %107 = arith.divf %105, %106 : vector<2x32xf32>
    %108 = vector.extract_strided_slice %101 {offsets = [0, 32], sizes = [2, 32], strides = [1, 1]} : vector<2x128xf32> to vector<2x32xf32>
    %109 = arith.negf %108 : vector<2x32xf32>
    %110 = math.exp %109 : vector<2x32xf32>
    %cst_41 = arith.constant 1.000000e+00 : f32
    %111 = vector.broadcast %cst_41 : f32 to vector<2x32xf32>
    %112 = arith.addf %111, %110 : vector<2x32xf32>
    %113 = arith.divf %111, %112 : vector<2x32xf32>
    %114 = vector.extract_strided_slice %101 {offsets = [0, 64], sizes = [2, 32], strides = [1, 1]} : vector<2x128xf32> to vector<2x32xf32>
    %115 = math.tanh %114 : vector<2x32xf32>
    %116 = vector.extract_strided_slice %101 {offsets = [0, 96], sizes = [2, 32], strides = [1, 1]} : vector<2x128xf32> to vector<2x32xf32>
    %117 = arith.negf %116 : vector<2x32xf32>
    %118 = math.exp %117 : vector<2x32xf32>
    %cst_42 = arith.constant 1.000000e+00 : f32
    %119 = vector.broadcast %cst_42 : f32 to vector<2x32xf32>
    %120 = arith.addf %119, %118 : vector<2x32xf32>
    %121 = arith.divf %119, %120 : vector<2x32xf32>
    %122 = arith.mulf %113, %95 : vector<2x32xf32>
    %123 = arith.mulf %107, %115 : vector<2x32xf32>
    %124 = arith.addf %122, %123 : vector<2x32xf32>
    %125 = math.tanh %124 : vector<2x32xf32>
    %126 = arith.mulf %121, %125 : vector<2x32xf32>
    %c6_43 = arith.constant 6 : index
    %c0_44 = arith.constant 0 : index
    %127 = vector.load %arg15[%c6_43, %c0_44] : memref<16x32xf32, #tpu.memory_space<vmem>>, vector<2x32xf32>
    tpu.vector_store %arg15[%c6_43, %c0_44], %126 {strides = array<i32>} : memref<16x32xf32, #tpu.memory_space<vmem>>, vector<2x32xf32>,
    %c8 = arith.constant 8 : index
    %c0_45 = arith.constant 0 : index
    %128 = vector.load %arg17[%c8, %c0_45] : memref<16x256xf32, #tpu.memory_space<vmem>>, vector<2x128xf32>
    %cst_46 = arith.constant dense<0.000000e+00> : vector<2x128xf32>
    %129 = tpu.matmul %126, %1, %cst_46 {dimension_numbers = #tpu.dot_dimension_numbers<[1], [0], [0], [1], [0, 0, 1, 1], [], []>} : vector<2x32xf32>, vector<32x128xf32>, vector<2x128xf32> -> vector<2x128xf32>
    %130 = arith.addf %128, %129 : vector<2x128xf32>
    %131 = vector.extract_strided_slice %130 {offsets = [0, 0], sizes = [2, 32], strides = [1, 1]} : vector<2x128xf32> to vector<2x32xf32>
    %132 = arith.negf %131 : vector<2x32xf32>
    %133 = math.exp %132 : vector<2x32xf32>
    %cst_47 = arith.constant 1.000000e+00 : f32
    %134 = vector.broadcast %cst_47 : f32 to vector<2x32xf32>
    %135 = arith.addf %134, %133 : vector<2x32xf32>
    %136 = arith.divf %134, %135 : vector<2x32xf32>
    %137 = vector.extract_strided_slice %130 {offsets = [0, 32], sizes = [2, 32], strides = [1, 1]} : vector<2x128xf32> to vector<2x32xf32>
    %138 = arith.negf %137 : vector<2x32xf32>
    %139 = math.exp %138 : vector<2x32xf32>
    %cst_48 = arith.constant 1.000000e+00 : f32
    %140 = vector.broadcast %cst_48 : f32 to vector<2x32xf32>
    %141 = arith.addf %140, %139 : vector<2x32xf32>
    %142 = arith.divf %140, %141 : vector<2x32xf32>
    %143 = vector.extract_strided_slice %130 {offsets = [0, 64], sizes = [2, 32], strides = [1, 1]} : vector<2x128xf32> to vector<2x32xf32>
    %144 = math.tanh %143 : vector<2x32xf32>
    %145 = vector.extract_strided_slice %130 {offsets = [0, 96], sizes = [2, 32], strides = [1, 1]} : vector<2x128xf32> to vector<2x32xf32>
    %146 = arith.negf %145 : vector<2x32xf32>
    %147 = math.exp %146 : vector<2x32xf32>
    %cst_49 = arith.constant 1.000000e+00 : f32
    %148 = vector.broadcast %cst_49 : f32 to vector<2x32xf32>
    %149 = arith.addf %148, %147 : vector<2x32xf32>
    %150 = arith.divf %148, %149 : vector<2x32xf32>
    %151 = arith.mulf %142, %124 : vector<2x32xf32>
    %152 = arith.mulf %136, %144 : vector<2x32xf32>
    %153 = arith.addf %151, %152 : vector<2x32xf32>
    %154 = math.tanh %153 : vector<2x32xf32>
    %155 = arith.mulf %150, %154 : vector<2x32xf32>
    %c8_50 = arith.constant 8 : index
    %c0_51 = arith.constant 0 : index
    %156 = vector.load %arg15[%c8_50, %c0_51] : memref<16x32xf32, #tpu.memory_space<vmem>>, vector<2x32xf32>
    tpu.vector_store %arg15[%c8_50, %c0_51], %155 {strides = array<i32>} : memref<16x32xf32, #tpu.memory_space<vmem>>, vector<2x32xf32>,
    %c10 = arith.constant 10 : index
    %c0_52 = arith.constant 0 : index
    %157 = vector.load %arg17[%c10, %c0_52] : memref<16x256xf32, #tpu.memory_space<vmem>>, vector<2x128xf32>
    %cst_53 = arith.constant dense<0.000000e+00> : vector<2x128xf32>
    %158 = tpu.matmul %155, %1, %cst_53 {dimension_numbers = #tpu.dot_dimension_numbers<[1], [0], [0], [1], [0, 0, 1, 1], [], []>} : vector<2x32xf32>, vector<32x128xf32>, vector<2x128xf32> -> vector<2x128xf32>
    %159 = arith.addf %157, %158 : vector<2x128xf32>
    %160 = vector.extract_strided_slice %159 {offsets = [0, 0], sizes = [2, 32], strides = [1, 1]} : vector<2x128xf32> to vector<2x32xf32>
    %161 = arith.negf %160 : vector<2x32xf32>
    %162 = math.exp %161 : vector<2x32xf32>
    %cst_54 = arith.constant 1.000000e+00 : f32
    %163 = vector.broadcast %cst_54 : f32 to vector<2x32xf32>
    %164 = arith.addf %163, %162 : vector<2x32xf32>
    %165 = arith.divf %163, %164 : vector<2x32xf32>
    %166 = vector.extract_strided_slice %159 {offsets = [0, 32], sizes = [2, 32], strides = [1, 1]} : vector<2x128xf32> to vector<2x32xf32>
    %167 = arith.negf %166 : vector<2x32xf32>
    %168 = math.exp %167 : vector<2x32xf32>
    %cst_55 = arith.constant 1.000000e+00 : f32
    %169 = vector.broadcast %cst_55 : f32 to vector<2x32xf32>
    %170 = arith.addf %169, %168 : vector<2x32xf32>
    %171 = arith.divf %169, %170 : vector<2x32xf32>
    %172 = vector.extract_strided_slice %159 {offsets = [0, 64], sizes = [2, 32], strides = [1, 1]} : vector<2x128xf32> to vector<2x32xf32>
    %173 = math.tanh %172 : vector<2x32xf32>
    %174 = vector.extract_strided_slice %159 {offsets = [0, 96], sizes = [2, 32], strides = [1, 1]} : vector<2x128xf32> to vector<2x32xf32>
    %175 = arith.negf %174 : vector<2x32xf32>
    %176 = math.exp %175 : vector<2x32xf32>
    %cst_56 = arith.constant 1.000000e+00 : f32
    %177 = vector.broadcast %cst_56 : f32 to vector<2x32xf32>
    %178 = arith.addf %177, %176 : vector<2x32xf32>
    %179 = arith.divf %177, %178 : vector<2x32xf32>
    %180 = arith.mulf %171, %153 : vector<2x32xf32>
    %181 = arith.mulf %165, %173 : vector<2x32xf32>
    %182 = arith.addf %180, %181 : vector<2x32xf32>
    %183 = math.tanh %182 : vector<2x32xf32>
    %184 = arith.mulf %179, %183 : vector<2x32xf32>
    %c10_57 = arith.constant 10 : index
    %c0_58 = arith.constant 0 : index
    %185 = vector.load %arg15[%c10_57, %c0_58] : memref<16x32xf32, #tpu.memory_space<vmem>>, vector<2x32xf32>
    tpu.vector_store %arg15[%c10_57, %c0_58], %184 {strides = array<i32>} : memref<16x32xf32, #tpu.memory_space<vmem>>, vector<2x32xf32>,
    %c12 = arith.constant 12 : index
    %c0_59 = arith.constant 0 : index
    %186 = vector.load %arg17[%c12, %c0_59] : memref<16x256xf32, #tpu.memory_space<vmem>>, vector<2x128xf32>
    %cst_60 = arith.constant dense<0.000000e+00> : vector<2x128xf32>
    %187 = tpu.matmul %184, %1, %cst_60 {dimension_numbers = #tpu.dot_dimension_numbers<[1], [0], [0], [1], [0, 0, 1, 1], [], []>} : vector<2x32xf32>, vector<32x128xf32>, vector<2x128xf32> -> vector<2x128xf32>
    %188 = arith.addf %186, %187 : vector<2x128xf32>
    %189 = vector.extract_strided_slice %188 {offsets = [0, 0], sizes = [2, 32], strides = [1, 1]} : vector<2x128xf32> to vector<2x32xf32>
    %190 = arith.negf %189 : vector<2x32xf32>
    %191 = math.exp %190 : vector<2x32xf32>
    %cst_61 = arith.constant 1.000000e+00 : f32
    %192 = vector.broadcast %cst_61 : f32 to vector<2x32xf32>
    %193 = arith.addf %192, %191 : vector<2x32xf32>
    %194 = arith.divf %192, %193 : vector<2x32xf32>
    %195 = vector.extract_strided_slice %188 {offsets = [0, 32], sizes = [2, 32], strides = [1, 1]} : vector<2x128xf32> to vector<2x32xf32>
    %196 = arith.negf %195 : vector<2x32xf32>
    %197 = math.exp %196 : vector<2x32xf32>
    %cst_62 = arith.constant 1.000000e+00 : f32
    %198 = vector.broadcast %cst_62 : f32 to vector<2x32xf32>
    %199 = arith.addf %198, %197 : vector<2x32xf32>
    %200 = arith.divf %198, %199 : vector<2x32xf32>
    %201 = vector.extract_strided_slice %188 {offsets = [0, 64], sizes = [2, 32], strides = [1, 1]} : vector<2x128xf32> to vector<2x32xf32>
    %202 = math.tanh %201 : vector<2x32xf32>
    %203 = vector.extract_strided_slice %188 {offsets = [0, 96], sizes = [2, 32], strides = [1, 1]} : vector<2x128xf32> to vector<2x32xf32>
    %204 = arith.negf %203 : vector<2x32xf32>
    %205 = math.exp %204 : vector<2x32xf32>
    %cst_63 = arith.constant 1.000000e+00 : f32
    %206 = vector.broadcast %cst_63 : f32 to vector<2x32xf32>
    %207 = arith.addf %206, %205 : vector<2x32xf32>
    %208 = arith.divf %206, %207 : vector<2x32xf32>
    %209 = arith.mulf %200, %182 : vector<2x32xf32>
    %210 = arith.mulf %194, %202 : vector<2x32xf32>
    %211 = arith.addf %209, %210 : vector<2x32xf32>
    %212 = math.tanh %211 : vector<2x32xf32>
    %213 = arith.mulf %208, %212 : vector<2x32xf32>
    %c12_64 = arith.constant 12 : index
    %c0_65 = arith.constant 0 : index
    %214 = vector.load %arg15[%c12_64, %c0_65] : memref<16x32xf32, #tpu.memory_space<vmem>>, vector<2x32xf32>
    tpu.vector_store %arg15[%c12_64, %c0_65], %213 {strides = array<i32>} : memref<16x32xf32, #tpu.memory_space<vmem>>, vector<2x32xf32>,
    %c14 = arith.constant 14 : index
    %c0_66 = arith.constant 0 : index
    %215 = vector.load %arg17[%c14, %c0_66] : memref<16x256xf32, #tpu.memory_space<vmem>>, vector<2x128xf32>
    %cst_67 = arith.constant dense<0.000000e+00> : vector<2x128xf32>
    %216 = tpu.matmul %213, %1, %cst_67 {dimension_numbers = #tpu.dot_dimension_numbers<[1], [0], [0], [1], [0, 0, 1, 1], [], []>} : vector<2x32xf32>, vector<32x128xf32>, vector<2x128xf32> -> vector<2x128xf32>
    %217 = arith.addf %215, %216 : vector<2x128xf32>
    %218 = vector.extract_strided_slice %217 {offsets = [0, 0], sizes = [2, 32], strides = [1, 1]} : vector<2x128xf32> to vector<2x32xf32>
    %219 = arith.negf %218 : vector<2x32xf32>
    %220 = math.exp %219 : vector<2x32xf32>
    %cst_68 = arith.constant 1.000000e+00 : f32
    %221 = vector.broadcast %cst_68 : f32 to vector<2x32xf32>
    %222 = arith.addf %221, %220 : vector<2x32xf32>
    %223 = arith.divf %221, %222 : vector<2x32xf32>
    %224 = vector.extract_strided_slice %217 {offsets = [0, 32], sizes = [2, 32], strides = [1, 1]} : vector<2x128xf32> to vector<2x32xf32>
    %225 = arith.negf %224 : vector<2x32xf32>
    %226 = math.exp %225 : vector<2x32xf32>
    %cst_69 = arith.constant 1.000000e+00 : f32
    %227 = vector.broadcast %cst_69 : f32 to vector<2x32xf32>
    %228 = arith.addf %227, %226 : vector<2x32xf32>
    %229 = arith.divf %227, %228 : vector<2x32xf32>
    %230 = vector.extract_strided_slice %217 {offsets = [0, 64], sizes = [2, 32], strides = [1, 1]} : vector<2x128xf32> to vector<2x32xf32>
    %231 = math.tanh %230 : vector<2x32xf32>
    %232 = vector.extract_strided_slice %217 {offsets = [0, 96], sizes = [2, 32], strides = [1, 1]} : vector<2x128xf32> to vector<2x32xf32>
    %233 = arith.negf %232 : vector<2x32xf32>
    %234 = math.exp %233 : vector<2x32xf32>
    %cst_70 = arith.constant 1.000000e+00 : f32
    %235 = vector.broadcast %cst_70 : f32 to vector<2x32xf32>
    %236 = arith.addf %235, %234 : vector<2x32xf32>
    %237 = arith.divf %235, %236 : vector<2x32xf32>
    %238 = arith.mulf %229, %211 : vector<2x32xf32>
    %239 = arith.mulf %223, %231 : vector<2x32xf32>
    %240 = arith.addf %238, %239 : vector<2x32xf32>
    %241 = math.tanh %240 : vector<2x32xf32>
    %242 = arith.mulf %237, %241 : vector<2x32xf32>
    %c14_71 = arith.constant 14 : index
    %c0_72 = arith.constant 0 : index
    %243 = vector.load %arg15[%c14_71, %c0_72] : memref<16x32xf32, #tpu.memory_space<vmem>>, vector<2x32xf32>
    tpu.vector_store %arg15[%c14_71, %c0_72], %242 {strides = array<i32>} : memref<16x32xf32, #tpu.memory_space<vmem>>, vector<2x32xf32>,
    %c14_73 = arith.constant 14 : index
    %c128 = arith.constant 128 : index
    %244 = vector.load %arg17[%c14_73, %c128] : memref<16x256xf32, #tpu.memory_space<vmem>>, vector<2x128xf32>
    %cst_74 = arith.constant dense<0.000000e+00> : vector<2x128xf32>
    %245 = tpu.matmul %0, %2, %cst_74 {dimension_numbers = #tpu.dot_dimension_numbers<[1], [0], [0], [1], [0, 0, 1, 1], [], []>} : vector<2x32xf32>, vector<32x128xf32>, vector<2x128xf32> -> vector<2x128xf32>
    %246 = arith.addf %244, %245 : vector<2x128xf32>
    %247 = vector.extract_strided_slice %246 {offsets = [0, 0], sizes = [2, 32], strides = [1, 1]} : vector<2x128xf32> to vector<2x32xf32>
    %248 = arith.negf %247 : vector<2x32xf32>
    %249 = math.exp %248 : vector<2x32xf32>
    %cst_75 = arith.constant 1.000000e+00 : f32
    %250 = vector.broadcast %cst_75 : f32 to vector<2x32xf32>
    %251 = arith.addf %250, %249 : vector<2x32xf32>
    %252 = arith.divf %250, %251 : vector<2x32xf32>
    %253 = vector.extract_strided_slice %246 {offsets = [0, 32], sizes = [2, 32], strides = [1, 1]} : vector<2x128xf32> to vector<2x32xf32>
    %254 = arith.negf %253 : vector<2x32xf32>
    %255 = math.exp %254 : vector<2x32xf32>
    %cst_76 = arith.constant 1.000000e+00 : f32
    %256 = vector.broadcast %cst_76 : f32 to vector<2x32xf32>
    %257 = arith.addf %256, %255 : vector<2x32xf32>
    %258 = arith.divf %256, %257 : vector<2x32xf32>
    %259 = vector.extract_strided_slice %246 {offsets = [0, 64], sizes = [2, 32], strides = [1, 1]} : vector<2x128xf32> to vector<2x32xf32>
    %260 = math.tanh %259 : vector<2x32xf32>
    %261 = vector.extract_strided_slice %246 {offsets = [0, 96], sizes = [2, 32], strides = [1, 1]} : vector<2x128xf32> to vector<2x32xf32>
    %262 = arith.negf %261 : vector<2x32xf32>
    %263 = math.exp %262 : vector<2x32xf32>
    %cst_77 = arith.constant 1.000000e+00 : f32
    %264 = vector.broadcast %cst_77 : f32 to vector<2x32xf32>
    %265 = arith.addf %264, %263 : vector<2x32xf32>
    %266 = arith.divf %264, %265 : vector<2x32xf32>
    %267 = arith.mulf %258, %0 : vector<2x32xf32>
    %268 = arith.mulf %252, %260 : vector<2x32xf32>
    %269 = arith.addf %267, %268 : vector<2x32xf32>
    %270 = math.tanh %269 : vector<2x32xf32>
    %271 = arith.mulf %266, %270 : vector<2x32xf32>
    %c14_78 = arith.constant 14 : index
    %c0_79 = arith.constant 0 : index
    %272 = vector.load %arg16[%c14_78, %c0_79] : memref<16x32xf32, #tpu.memory_space<vmem>>, vector<2x32xf32>
    tpu.vector_store %arg16[%c14_78, %c0_79], %271 {strides = array<i32>} : memref<16x32xf32, #tpu.memory_space<vmem>>, vector<2x32xf32>,
    %c12_80 = arith.constant 12 : index
    %c128_81 = arith.constant 128 : index
    %273 = vector.load %arg17[%c12_80, %c128_81] : memref<16x256xf32, #tpu.memory_space<vmem>>, vector<2x128xf32>
    %cst_82 = arith.constant dense<0.000000e+00> : vector<2x128xf32>
    %274 = tpu.matmul %271, %2, %cst_82 {dimension_numbers = #tpu.dot_dimension_numbers<[1], [0], [0], [1], [0, 0, 1, 1], [], []>} : vector<2x32xf32>, vector<32x128xf32>, vector<2x128xf32> -> vector<2x128xf32>
    %275 = arith.addf %273, %274 : vector<2x128xf32>
    %276 = vector.extract_strided_slice %275 {offsets = [0, 0], sizes = [2, 32], strides = [1, 1]} : vector<2x128xf32> to vector<2x32xf32>
    %277 = arith.negf %276 : vector<2x32xf32>
    %278 = math.exp %277 : vector<2x32xf32>
    %cst_83 = arith.constant 1.000000e+00 : f32
    %279 = vector.broadcast %cst_83 : f32 to vector<2x32xf32>
    %280 = arith.addf %279, %278 : vector<2x32xf32>
    %281 = arith.divf %279, %280 : vector<2x32xf32>
    %282 = vector.extract_strided_slice %275 {offsets = [0, 32], sizes = [2, 32], strides = [1, 1]} : vector<2x128xf32> to vector<2x32xf32>
    %283 = arith.negf %282 : vector<2x32xf32>
    %284 = math.exp %283 : vector<2x32xf32>
    %cst_84 = arith.constant 1.000000e+00 : f32
    %285 = vector.broadcast %cst_84 : f32 to vector<2x32xf32>
    %286 = arith.addf %285, %284 : vector<2x32xf32>
    %287 = arith.divf %285, %286 : vector<2x32xf32>
    %288 = vector.extract_strided_slice %275 {offsets = [0, 64], sizes = [2, 32], strides = [1, 1]} : vector<2x128xf32> to vector<2x32xf32>
    %289 = math.tanh %288 : vector<2x32xf32>
    %290 = vector.extract_strided_slice %275 {offsets = [0, 96], sizes = [2, 32], strides = [1, 1]} : vector<2x128xf32> to vector<2x32xf32>
    %291 = arith.negf %290 : vector<2x32xf32>
    %292 = math.exp %291 : vector<2x32xf32>
    %cst_85 = arith.constant 1.000000e+00 : f32
    %293 = vector.broadcast %cst_85 : f32 to vector<2x32xf32>
    %294 = arith.addf %293, %292 : vector<2x32xf32>
    %295 = arith.divf %293, %294 : vector<2x32xf32>
    %296 = arith.mulf %287, %269 : vector<2x32xf32>
    %297 = arith.mulf %281, %289 : vector<2x32xf32>
    %298 = arith.addf %296, %297 : vector<2x32xf32>
    %299 = math.tanh %298 : vector<2x32xf32>
    %300 = arith.mulf %295, %299 : vector<2x32xf32>
    %c12_86 = arith.constant 12 : index
    %c0_87 = arith.constant 0 : index
    %301 = vector.load %arg16[%c12_86, %c0_87] : memref<16x32xf32, #tpu.memory_space<vmem>>, vector<2x32xf32>
    tpu.vector_store %arg16[%c12_86, %c0_87], %300 {strides = array<i32>} : memref<16x32xf32, #tpu.memory_space<vmem>>, vector<2x32xf32>,
    %c10_88 = arith.constant 10 : index
    %c128_89 = arith.constant 128 : index
    %302 = vector.load %arg17[%c10_88, %c128_89] : memref<16x256xf32, #tpu.memory_space<vmem>>, vector<2x128xf32>
    %cst_90 = arith.constant dense<0.000000e+00> : vector<2x128xf32>
    %303 = tpu.matmul %300, %2, %cst_90 {dimension_numbers = #tpu.dot_dimension_numbers<[1], [0], [0], [1], [0, 0, 1, 1], [], []>} : vector<2x32xf32>, vector<32x128xf32>, vector<2x128xf32> -> vector<2x128xf32>
    %304 = arith.addf %302, %303 : vector<2x128xf32>
    %305 = vector.extract_strided_slice %304 {offsets = [0, 0], sizes = [2, 32], strides = [1, 1]} : vector<2x128xf32> to vector<2x32xf32>
    %306 = arith.negf %305 : vector<2x32xf32>
    %307 = math.exp %306 : vector<2x32xf32>
    %cst_91 = arith.constant 1.000000e+00 : f32
    %308 = vector.broadcast %cst_91 : f32 to vector<2x32xf32>
    %309 = arith.addf %308, %307 : vector<2x32xf32>
    %310 = arith.divf %308, %309 : vector<2x32xf32>
    %311 = vector.extract_strided_slice %304 {offsets = [0, 32], sizes = [2, 32], strides = [1, 1]} : vector<2x128xf32> to vector<2x32xf32>
    %312 = arith.negf %311 : vector<2x32xf32>
    %313 = math.exp %312 : vector<2x32xf32>
    %cst_92 = arith.constant 1.000000e+00 : f32
    %314 = vector.broadcast %cst_92 : f32 to vector<2x32xf32>
    %315 = arith.addf %314, %313 : vector<2x32xf32>
    %316 = arith.divf %314, %315 : vector<2x32xf32>
    %317 = vector.extract_strided_slice %304 {offsets = [0, 64], sizes = [2, 32], strides = [1, 1]} : vector<2x128xf32> to vector<2x32xf32>
    %318 = math.tanh %317 : vector<2x32xf32>
    %319 = vector.extract_strided_slice %304 {offsets = [0, 96], sizes = [2, 32], strides = [1, 1]} : vector<2x128xf32> to vector<2x32xf32>
    %320 = arith.negf %319 : vector<2x32xf32>
    %321 = math.exp %320 : vector<2x32xf32>
    %cst_93 = arith.constant 1.000000e+00 : f32
    %322 = vector.broadcast %cst_93 : f32 to vector<2x32xf32>
    %323 = arith.addf %322, %321 : vector<2x32xf32>
    %324 = arith.divf %322, %323 : vector<2x32xf32>
    %325 = arith.mulf %316, %298 : vector<2x32xf32>
    %326 = arith.mulf %310, %318 : vector<2x32xf32>
    %327 = arith.addf %325, %326 : vector<2x32xf32>
    %328 = math.tanh %327 : vector<2x32xf32>
    %329 = arith.mulf %324, %328 : vector<2x32xf32>
    %c10_94 = arith.constant 10 : index
    %c0_95 = arith.constant 0 : index
    %330 = vector.load %arg16[%c10_94, %c0_95] : memref<16x32xf32, #tpu.memory_space<vmem>>, vector<2x32xf32>
    tpu.vector_store %arg16[%c10_94, %c0_95], %329 {strides = array<i32>} : memref<16x32xf32, #tpu.memory_space<vmem>>, vector<2x32xf32>,
    %c8_96 = arith.constant 8 : index
    %c128_97 = arith.constant 128 : index
    %331 = vector.load %arg17[%c8_96, %c128_97] : memref<16x256xf32, #tpu.memory_space<vmem>>, vector<2x128xf32>
    %cst_98 = arith.constant dense<0.000000e+00> : vector<2x128xf32>
    %332 = tpu.matmul %329, %2, %cst_98 {dimension_numbers = #tpu.dot_dimension_numbers<[1], [0], [0], [1], [0, 0, 1, 1], [], []>} : vector<2x32xf32>, vector<32x128xf32>, vector<2x128xf32> -> vector<2x128xf32>
    %333 = arith.addf %331, %332 : vector<2x128xf32>
    %334 = vector.extract_strided_slice %333 {offsets = [0, 0], sizes = [2, 32], strides = [1, 1]} : vector<2x128xf32> to vector<2x32xf32>
    %335 = arith.negf %334 : vector<2x32xf32>
    %336 = math.exp %335 : vector<2x32xf32>
    %cst_99 = arith.constant 1.000000e+00 : f32
    %337 = vector.broadcast %cst_99 : f32 to vector<2x32xf32>
    %338 = arith.addf %337, %336 : vector<2x32xf32>
    %339 = arith.divf %337, %338 : vector<2x32xf32>
    %340 = vector.extract_strided_slice %333 {offsets = [0, 32], sizes = [2, 32], strides = [1, 1]} : vector<2x128xf32> to vector<2x32xf32>
    %341 = arith.negf %340 : vector<2x32xf32>
    %342 = math.exp %341 : vector<2x32xf32>
    %cst_100 = arith.constant 1.000000e+00 : f32
    %343 = vector.broadcast %cst_100 : f32 to vector<2x32xf32>
    %344 = arith.addf %343, %342 : vector<2x32xf32>
    %345 = arith.divf %343, %344 : vector<2x32xf32>
    %346 = vector.extract_strided_slice %333 {offsets = [0, 64], sizes = [2, 32], strides = [1, 1]} : vector<2x128xf32> to vector<2x32xf32>
    %347 = math.tanh %346 : vector<2x32xf32>
    %348 = vector.extract_strided_slice %333 {offsets = [0, 96], sizes = [2, 32], strides = [1, 1]} : vector<2x128xf32> to vector<2x32xf32>
    %349 = arith.negf %348 : vector<2x32xf32>
    %350 = math.exp %349 : vector<2x32xf32>
    %cst_101 = arith.constant 1.000000e+00 : f32
    %351 = vector.broadcast %cst_101 : f32 to vector<2x32xf32>
    %352 = arith.addf %351, %350 : vector<2x32xf32>
    %353 = arith.divf %351, %352 : vector<2x32xf32>
    %354 = arith.mulf %345, %327 : vector<2x32xf32>
    %355 = arith.mulf %339, %347 : vector<2x32xf32>
    %356 = arith.addf %354, %355 : vector<2x32xf32>
    %357 = math.tanh %356 : vector<2x32xf32>
    %358 = arith.mulf %353, %357 : vector<2x32xf32>
    %c8_102 = arith.constant 8 : index
    %c0_103 = arith.constant 0 : index
    %359 = vector.load %arg16[%c8_102, %c0_103] : memref<16x32xf32, #tpu.memory_space<vmem>>, vector<2x32xf32>
    tpu.vector_store %arg16[%c8_102, %c0_103], %358 {strides = array<i32>} : memref<16x32xf32, #tpu.memory_space<vmem>>, vector<2x32xf32>,
    %c6_104 = arith.constant 6 : index
    %c128_105 = arith.constant 128 : index
    %360 = vector.load %arg17[%c6_104, %c128_105] : memref<16x256xf32, #tpu.memory_space<vmem>>, vector<2x128xf32>
    %cst_106 = arith.constant dense<0.000000e+00> : vector<2x128xf32>
    %361 = tpu.matmul %358, %2, %cst_106 {dimension_numbers = #tpu.dot_dimension_numbers<[1], [0], [0], [1], [0, 0, 1, 1], [], []>} : vector<2x32xf32>, vector<32x128xf32>, vector<2x128xf32> -> vector<2x128xf32>
    %362 = arith.addf %360, %361 : vector<2x128xf32>
    %363 = vector.extract_strided_slice %362 {offsets = [0, 0], sizes = [2, 32], strides = [1, 1]} : vector<2x128xf32> to vector<2x32xf32>
    %364 = arith.negf %363 : vector<2x32xf32>
    %365 = math.exp %364 : vector<2x32xf32>
    %cst_107 = arith.constant 1.000000e+00 : f32
    %366 = vector.broadcast %cst_107 : f32 to vector<2x32xf32>
    %367 = arith.addf %366, %365 : vector<2x32xf32>
    %368 = arith.divf %366, %367 : vector<2x32xf32>
    %369 = vector.extract_strided_slice %362 {offsets = [0, 32], sizes = [2, 32], strides = [1, 1]} : vector<2x128xf32> to vector<2x32xf32>
    %370 = arith.negf %369 : vector<2x32xf32>
    %371 = math.exp %370 : vector<2x32xf32>
    %cst_108 = arith.constant 1.000000e+00 : f32
    %372 = vector.broadcast %cst_108 : f32 to vector<2x32xf32>
    %373 = arith.addf %372, %371 : vector<2x32xf32>
    %374 = arith.divf %372, %373 : vector<2x32xf32>
    %375 = vector.extract_strided_slice %362 {offsets = [0, 64], sizes = [2, 32], strides = [1, 1]} : vector<2x128xf32> to vector<2x32xf32>
    %376 = math.tanh %375 : vector<2x32xf32>
    %377 = vector.extract_strided_slice %362 {offsets = [0, 96], sizes = [2, 32], strides = [1, 1]} : vector<2x128xf32> to vector<2x32xf32>
    %378 = arith.negf %377 : vector<2x32xf32>
    %379 = math.exp %378 : vector<2x32xf32>
    %cst_109 = arith.constant 1.000000e+00 : f32
    %380 = vector.broadcast %cst_109 : f32 to vector<2x32xf32>
    %381 = arith.addf %380, %379 : vector<2x32xf32>
    %382 = arith.divf %380, %381 : vector<2x32xf32>
    %383 = arith.mulf %374, %356 : vector<2x32xf32>
    %384 = arith.mulf %368, %376 : vector<2x32xf32>
    %385 = arith.addf %383, %384 : vector<2x32xf32>
    %386 = math.tanh %385 : vector<2x32xf32>
    %387 = arith.mulf %382, %386 : vector<2x32xf32>
    %c6_110 = arith.constant 6 : index
    %c0_111 = arith.constant 0 : index
    %388 = vector.load %arg16[%c6_110, %c0_111] : memref<16x32xf32, #tpu.memory_space<vmem>>, vector<2x32xf32>
    tpu.vector_store %arg16[%c6_110, %c0_111], %387 {strides = array<i32>} : memref<16x32xf32, #tpu.memory_space<vmem>>, vector<2x32xf32>,
    %c4_112 = arith.constant 4 : index
    %c128_113 = arith.constant 128 : index
    %389 = vector.load %arg17[%c4_112, %c128_113] : memref<16x256xf32, #tpu.memory_space<vmem>>, vector<2x128xf32>
    %cst_114 = arith.constant dense<0.000000e+00> : vector<2x128xf32>
    %390 = tpu.matmul %387, %2, %cst_114 {dimension_numbers = #tpu.dot_dimension_numbers<[1], [0], [0], [1], [0, 0, 1, 1], [], []>} : vector<2x32xf32>, vector<32x128xf32>, vector<2x128xf32> -> vector<2x128xf32>
    %391 = arith.addf %389, %390 : vector<2x128xf32>
    %392 = vector.extract_strided_slice %391 {offsets = [0, 0], sizes = [2, 32], strides = [1, 1]} : vector<2x128xf32> to vector<2x32xf32>
    %393 = arith.negf %392 : vector<2x32xf32>
    %394 = math.exp %393 : vector<2x32xf32>
    %cst_115 = arith.constant 1.000000e+00 : f32
    %395 = vector.broadcast %cst_115 : f32 to vector<2x32xf32>
    %396 = arith.addf %395, %394 : vector<2x32xf32>
    %397 = arith.divf %395, %396 : vector<2x32xf32>
    %398 = vector.extract_strided_slice %391 {offsets = [0, 32], sizes = [2, 32], strides = [1, 1]} : vector<2x128xf32> to vector<2x32xf32>
    %399 = arith.negf %398 : vector<2x32xf32>
    %400 = math.exp %399 : vector<2x32xf32>
    %cst_116 = arith.constant 1.000000e+00 : f32
    %401 = vector.broadcast %cst_116 : f32 to vector<2x32xf32>
    %402 = arith.addf %401, %400 : vector<2x32xf32>
    %403 = arith.divf %401, %402 : vector<2x32xf32>
    %404 = vector.extract_strided_slice %391 {offsets = [0, 64], sizes = [2, 32], strides = [1, 1]} : vector<2x128xf32> to vector<2x32xf32>
    %405 = math.tanh %404 : vector<2x32xf32>
    %406 = vector.extract_strided_slice %391 {offsets = [0, 96], sizes = [2, 32], strides = [1, 1]} : vector<2x128xf32> to vector<2x32xf32>
    %407 = arith.negf %406 : vector<2x32xf32>
    %408 = math.exp %407 : vector<2x32xf32>
    %cst_117 = arith.constant 1.000000e+00 : f32
    %409 = vector.broadcast %cst_117 : f32 to vector<2x32xf32>
    %410 = arith.addf %409, %408 : vector<2x32xf32>
    %411 = arith.divf %409, %410 : vector<2x32xf32>
    %412 = arith.mulf %403, %385 : vector<2x32xf32>
    %413 = arith.mulf %397, %405 : vector<2x32xf32>
    %414 = arith.addf %412, %413 : vector<2x32xf32>
    %415 = math.tanh %414 : vector<2x32xf32>
    %416 = arith.mulf %411, %415 : vector<2x32xf32>
    %c4_118 = arith.constant 4 : index
    %c0_119 = arith.constant 0 : index
    %417 = vector.load %arg16[%c4_118, %c0_119] : memref<16x32xf32, #tpu.memory_space<vmem>>, vector<2x32xf32>
    tpu.vector_store %arg16[%c4_118, %c0_119], %416 {strides = array<i32>} : memref<16x32xf32, #tpu.memory_space<vmem>>, vector<2x32xf32>,
    %c2_120 = arith.constant 2 : index
    %c128_121 = arith.constant 128 : index
    %418 = vector.load %arg17[%c2_120, %c128_121] : memref<16x256xf32, #tpu.memory_space<vmem>>, vector<2x128xf32>
    %cst_122 = arith.constant dense<0.000000e+00> : vector<2x128xf32>
    %419 = tpu.matmul %416, %2, %cst_122 {dimension_numbers = #tpu.dot_dimension_numbers<[1], [0], [0], [1], [0, 0, 1, 1], [], []>} : vector<2x32xf32>, vector<32x128xf32>, vector<2x128xf32> -> vector<2x128xf32>
    %420 = arith.addf %418, %419 : vector<2x128xf32>
    %421 = vector.extract_strided_slice %420 {offsets = [0, 0], sizes = [2, 32], strides = [1, 1]} : vector<2x128xf32> to vector<2x32xf32>
    %422 = arith.negf %421 : vector<2x32xf32>
    %423 = math.exp %422 : vector<2x32xf32>
    %cst_123 = arith.constant 1.000000e+00 : f32
    %424 = vector.broadcast %cst_123 : f32 to vector<2x32xf32>
    %425 = arith.addf %424, %423 : vector<2x32xf32>
    %426 = arith.divf %424, %425 : vector<2x32xf32>
    %427 = vector.extract_strided_slice %420 {offsets = [0, 32], sizes = [2, 32], strides = [1, 1]} : vector<2x128xf32> to vector<2x32xf32>
    %428 = arith.negf %427 : vector<2x32xf32>
    %429 = math.exp %428 : vector<2x32xf32>
    %cst_124 = arith.constant 1.000000e+00 : f32
    %430 = vector.broadcast %cst_124 : f32 to vector<2x32xf32>
    %431 = arith.addf %430, %429 : vector<2x32xf32>
    %432 = arith.divf %430, %431 : vector<2x32xf32>
    %433 = vector.extract_strided_slice %420 {offsets = [0, 64], sizes = [2, 32], strides = [1, 1]} : vector<2x128xf32> to vector<2x32xf32>
    %434 = math.tanh %433 : vector<2x32xf32>
    %435 = vector.extract_strided_slice %420 {offsets = [0, 96], sizes = [2, 32], strides = [1, 1]} : vector<2x128xf32> to vector<2x32xf32>
    %436 = arith.negf %435 : vector<2x32xf32>
    %437 = math.exp %436 : vector<2x32xf32>
    %cst_125 = arith.constant 1.000000e+00 : f32
    %438 = vector.broadcast %cst_125 : f32 to vector<2x32xf32>
    %439 = arith.addf %438, %437 : vector<2x32xf32>
    %440 = arith.divf %438, %439 : vector<2x32xf32>
    %441 = arith.mulf %432, %414 : vector<2x32xf32>
    %442 = arith.mulf %426, %434 : vector<2x32xf32>
    %443 = arith.addf %441, %442 : vector<2x32xf32>
    %444 = math.tanh %443 : vector<2x32xf32>
    %445 = arith.mulf %440, %444 : vector<2x32xf32>
    %c2_126 = arith.constant 2 : index
    %c0_127 = arith.constant 0 : index
    %446 = vector.load %arg16[%c2_126, %c0_127] : memref<16x32xf32, #tpu.memory_space<vmem>>, vector<2x32xf32>
    tpu.vector_store %arg16[%c2_126, %c0_127], %445 {strides = array<i32>} : memref<16x32xf32, #tpu.memory_space<vmem>>, vector<2x32xf32>,
    %c0_128 = arith.constant 0 : index
    %c128_129 = arith.constant 128 : index
    %447 = vector.load %arg17[%c0_128, %c128_129] : memref<16x256xf32, #tpu.memory_space<vmem>>, vector<2x128xf32>
    %cst_130 = arith.constant dense<0.000000e+00> : vector<2x128xf32>
    %448 = tpu.matmul %445, %2, %cst_130 {dimension_numbers = #tpu.dot_dimension_numbers<[1], [0], [0], [1], [0, 0, 1, 1], [], []>} : vector<2x32xf32>, vector<32x128xf32>, vector<2x128xf32> -> vector<2x128xf32>
    %449 = arith.addf %447, %448 : vector<2x128xf32>
    %450 = vector.extract_strided_slice %449 {offsets = [0, 0], sizes = [2, 32], strides = [1, 1]} : vector<2x128xf32> to vector<2x32xf32>
    %451 = arith.negf %450 : vector<2x32xf32>
    %452 = math.exp %451 : vector<2x32xf32>
    %cst_131 = arith.constant 1.000000e+00 : f32
    %453 = vector.broadcast %cst_131 : f32 to vector<2x32xf32>
    %454 = arith.addf %453, %452 : vector<2x32xf32>
    %455 = arith.divf %453, %454 : vector<2x32xf32>
    %456 = vector.extract_strided_slice %449 {offsets = [0, 32], sizes = [2, 32], strides = [1, 1]} : vector<2x128xf32> to vector<2x32xf32>
    %457 = arith.negf %456 : vector<2x32xf32>
    %458 = math.exp %457 : vector<2x32xf32>
    %cst_132 = arith.constant 1.000000e+00 : f32
    %459 = vector.broadcast %cst_132 : f32 to vector<2x32xf32>
    %460 = arith.addf %459, %458 : vector<2x32xf32>
    %461 = arith.divf %459, %460 : vector<2x32xf32>
    %462 = vector.extract_strided_slice %449 {offsets = [0, 64], sizes = [2, 32], strides = [1, 1]} : vector<2x128xf32> to vector<2x32xf32>
    %463 = math.tanh %462 : vector<2x32xf32>
    %464 = vector.extract_strided_slice %449 {offsets = [0, 96], sizes = [2, 32], strides = [1, 1]} : vector<2x128xf32> to vector<2x32xf32>
    %465 = arith.negf %464 : vector<2x32xf32>
    %466 = math.exp %465 : vector<2x32xf32>
    %cst_133 = arith.constant 1.000000e+00 : f32
    %467 = vector.broadcast %cst_133 : f32 to vector<2x32xf32>
    %468 = arith.addf %467, %466 : vector<2x32xf32>
    %469 = arith.divf %467, %468 : vector<2x32xf32>
    %470 = arith.mulf %461, %443 : vector<2x32xf32>
    %471 = arith.mulf %455, %463 : vector<2x32xf32>
    %472 = arith.addf %470, %471 : vector<2x32xf32>
    %473 = math.tanh %472 : vector<2x32xf32>
    %474 = arith.mulf %469, %473 : vector<2x32xf32>
    %c0_134 = arith.constant 0 : index
    %c0_135 = arith.constant 0 : index
    %475 = vector.load %arg16[%c0_134, %c0_135] : memref<16x32xf32, #tpu.memory_space<vmem>>, vector<2x32xf32>
    tpu.vector_store %arg16[%c0_134, %c0_135], %474 {strides = array<i32>} : memref<16x32xf32, #tpu.memory_space<vmem>>, vector<2x32xf32>,
    %c0_136 = arith.constant 0 : index
    %c0_137 = arith.constant 0 : index
    %476 = vector.load %arg15[%c0_136, %c0_137] : memref<16x32xf32, #tpu.memory_space<vmem>>, vector<16x32xf32>
    %c0_138 = arith.constant 0 : index
    %c0_139 = arith.constant 0 : index
    %477 = vector.load %arg7[%c0_138, %c0_139] : memref<32x256xf32, #tpu.memory_space<vmem>>, vector<32x256xf32>
    %cst_140 = arith.constant dense<0.000000e+00> : vector<16x256xf32>
    %478 = tpu.matmul %476, %477, %cst_140 {dimension_numbers = #tpu.dot_dimension_numbers<[1], [0], [0], [1], [0, 0, 1, 1], [], []>} : vector<16x32xf32>, vector<32x256xf32>, vector<16x256xf32> -> vector<16x256xf32>
    %c0_141 = arith.constant 0 : index
    %c0_142 = arith.constant 0 : index
    %479 = vector.load %arg16[%c0_141, %c0_142] : memref<16x32xf32, #tpu.memory_space<vmem>>, vector<16x32xf32>
    %c0_143 = arith.constant 0 : index
    %c0_144 = arith.constant 0 : index
    %480 = vector.load %arg8[%c0_143, %c0_144] : memref<32x256xf32, #tpu.memory_space<vmem>>, vector<32x256xf32>
    %cst_145 = arith.constant dense<0.000000e+00> : vector<16x256xf32>
    %481 = tpu.matmul %479, %480, %cst_145 {dimension_numbers = #tpu.dot_dimension_numbers<[1], [0], [0], [1], [0, 0, 1, 1], [], []>} : vector<16x32xf32>, vector<32x256xf32>, vector<16x256xf32> -> vector<16x256xf32>
    %482 = arith.addf %478, %481 : vector<16x256xf32>
    %c0_146 = arith.constant 0 : index
    %c0_147 = arith.constant 0 : index
    %483 = vector.load %arg11[%c0_146, %c0_147] : memref<1x256xf32, #tpu.memory_space<vmem>>, vector<1x256xf32>
    %484 = vector.broadcast %483 : vector<1x256xf32> to vector<16x256xf32>
    %485 = arith.addf %482, %484 : vector<16x256xf32>
    %c0_148 = arith.constant 0 : index
    %c0_149 = arith.constant 0 : index
    %486 = vector.load %arg17[%c0_148, %c0_149] : memref<16x256xf32, #tpu.memory_space<vmem>>, vector<16x256xf32>
    tpu.vector_store %arg17[%c0_148, %c0_149], %485 {strides = array<i32>} : memref<16x256xf32, #tpu.memory_space<vmem>>, vector<16x256xf32>,
    %c0_150 = arith.constant 0 : index
    %c0_151 = arith.constant 0 : index
    %487 = vector.load %arg17[%c0_150, %c0_151] : memref<16x256xf32, #tpu.memory_space<vmem>>, vector<2x128xf32>
    %cst_152 = arith.constant dense<0.000000e+00> : vector<2x128xf32>
    %488 = tpu.matmul %0, %3, %cst_152 {dimension_numbers = #tpu.dot_dimension_numbers<[1], [0], [0], [1], [0, 0, 1, 1], [], []>} : vector<2x32xf32>, vector<32x128xf32>, vector<2x128xf32> -> vector<2x128xf32>
    %489 = arith.addf %487, %488 : vector<2x128xf32>
    %490 = vector.extract_strided_slice %489 {offsets = [0, 0], sizes = [2, 32], strides = [1, 1]} : vector<2x128xf32> to vector<2x32xf32>
    %491 = arith.negf %490 : vector<2x32xf32>
    %492 = math.exp %491 : vector<2x32xf32>
    %cst_153 = arith.constant 1.000000e+00 : f32
    %493 = vector.broadcast %cst_153 : f32 to vector<2x32xf32>
    %494 = arith.addf %493, %492 : vector<2x32xf32>
    %495 = arith.divf %493, %494 : vector<2x32xf32>
    %496 = vector.extract_strided_slice %489 {offsets = [0, 32], sizes = [2, 32], strides = [1, 1]} : vector<2x128xf32> to vector<2x32xf32>
    %497 = arith.negf %496 : vector<2x32xf32>
    %498 = math.exp %497 : vector<2x32xf32>
    %cst_154 = arith.constant 1.000000e+00 : f32
    %499 = vector.broadcast %cst_154 : f32 to vector<2x32xf32>
    %500 = arith.addf %499, %498 : vector<2x32xf32>
    %501 = arith.divf %499, %500 : vector<2x32xf32>
    %502 = vector.extract_strided_slice %489 {offsets = [0, 64], sizes = [2, 32], strides = [1, 1]} : vector<2x128xf32> to vector<2x32xf32>
    %503 = math.tanh %502 : vector<2x32xf32>
    %504 = vector.extract_strided_slice %489 {offsets = [0, 96], sizes = [2, 32], strides = [1, 1]} : vector<2x128xf32> to vector<2x32xf32>
    %505 = arith.negf %504 : vector<2x32xf32>
    %506 = math.exp %505 : vector<2x32xf32>
    %cst_155 = arith.constant 1.000000e+00 : f32
    %507 = vector.broadcast %cst_155 : f32 to vector<2x32xf32>
    %508 = arith.addf %507, %506 : vector<2x32xf32>
    %509 = arith.divf %507, %508 : vector<2x32xf32>
    %510 = arith.mulf %501, %0 : vector<2x32xf32>
    %511 = arith.mulf %495, %503 : vector<2x32xf32>
    %512 = arith.addf %510, %511 : vector<2x32xf32>
    %513 = math.tanh %512 : vector<2x32xf32>
    %514 = arith.mulf %509, %513 : vector<2x32xf32>
    %c0_156 = arith.constant 0 : index
    %c0_157 = arith.constant 0 : index
    %515 = vector.load %arg1[%c0_156, %c0_157] : memref<16x1xf32, #tpu.memory_space<vmem>>, vector<2x1xf32>
    %516 = vector.broadcast %515 : vector<2x1xf32> to vector<2x32xf32>
    %517 = arith.mulf %516, %514 : vector<2x32xf32>
    %518 = arith.addf %0, %517 : vector<2x32xf32>
    %c2_158 = arith.constant 2 : index
    %c0_159 = arith.constant 0 : index
    %519 = vector.load %arg17[%c2_158, %c0_159] : memref<16x256xf32, #tpu.memory_space<vmem>>, vector<2x128xf32>
    %cst_160 = arith.constant dense<0.000000e+00> : vector<2x128xf32>
    %520 = tpu.matmul %514, %3, %cst_160 {dimension_numbers = #tpu.dot_dimension_numbers<[1], [0], [0], [1], [0, 0, 1, 1], [], []>} : vector<2x32xf32>, vector<32x128xf32>, vector<2x128xf32> -> vector<2x128xf32>
    %521 = arith.addf %519, %520 : vector<2x128xf32>
    %522 = vector.extract_strided_slice %521 {offsets = [0, 0], sizes = [2, 32], strides = [1, 1]} : vector<2x128xf32> to vector<2x32xf32>
    %523 = arith.negf %522 : vector<2x32xf32>
    %524 = math.exp %523 : vector<2x32xf32>
    %cst_161 = arith.constant 1.000000e+00 : f32
    %525 = vector.broadcast %cst_161 : f32 to vector<2x32xf32>
    %526 = arith.addf %525, %524 : vector<2x32xf32>
    %527 = arith.divf %525, %526 : vector<2x32xf32>
    %528 = vector.extract_strided_slice %521 {offsets = [0, 32], sizes = [2, 32], strides = [1, 1]} : vector<2x128xf32> to vector<2x32xf32>
    %529 = arith.negf %528 : vector<2x32xf32>
    %530 = math.exp %529 : vector<2x32xf32>
    %cst_162 = arith.constant 1.000000e+00 : f32
    %531 = vector.broadcast %cst_162 : f32 to vector<2x32xf32>
    %532 = arith.addf %531, %530 : vector<2x32xf32>
    %533 = arith.divf %531, %532 : vector<2x32xf32>
    %534 = vector.extract_strided_slice %521 {offsets = [0, 64], sizes = [2, 32], strides = [1, 1]} : vector<2x128xf32> to vector<2x32xf32>
    %535 = math.tanh %534 : vector<2x32xf32>
    %536 = vector.extract_strided_slice %521 {offsets = [0, 96], sizes = [2, 32], strides = [1, 1]} : vector<2x128xf32> to vector<2x32xf32>
    %537 = arith.negf %536 : vector<2x32xf32>
    %538 = math.exp %537 : vector<2x32xf32>
    %cst_163 = arith.constant 1.000000e+00 : f32
    %539 = vector.broadcast %cst_163 : f32 to vector<2x32xf32>
    %540 = arith.addf %539, %538 : vector<2x32xf32>
    %541 = arith.divf %539, %540 : vector<2x32xf32>
    %542 = arith.mulf %533, %512 : vector<2x32xf32>
    %543 = arith.mulf %527, %535 : vector<2x32xf32>
    %544 = arith.addf %542, %543 : vector<2x32xf32>
    %545 = math.tanh %544 : vector<2x32xf32>
    %546 = arith.mulf %541, %545 : vector<2x32xf32>
    %c2_164 = arith.constant 2 : index
    %c0_165 = arith.constant 0 : index
    %547 = vector.load %arg1[%c2_164, %c0_165] : memref<16x1xf32, #tpu.memory_space<vmem>>, vector<2x1xf32>
    %548 = vector.broadcast %547 : vector<2x1xf32> to vector<2x32xf32>
    %549 = arith.mulf %548, %546 : vector<2x32xf32>
    %550 = arith.addf %518, %549 : vector<2x32xf32>
    %c4_166 = arith.constant 4 : index
    %c0_167 = arith.constant 0 : index
    %551 = vector.load %arg17[%c4_166, %c0_167] : memref<16x256xf32, #tpu.memory_space<vmem>>, vector<2x128xf32>
    %cst_168 = arith.constant dense<0.000000e+00> : vector<2x128xf32>
    %552 = tpu.matmul %546, %3, %cst_168 {dimension_numbers = #tpu.dot_dimension_numbers<[1], [0], [0], [1], [0, 0, 1, 1], [], []>} : vector<2x32xf32>, vector<32x128xf32>, vector<2x128xf32> -> vector<2x128xf32>
    %553 = arith.addf %551, %552 : vector<2x128xf32>
    %554 = vector.extract_strided_slice %553 {offsets = [0, 0], sizes = [2, 32], strides = [1, 1]} : vector<2x128xf32> to vector<2x32xf32>
    %555 = arith.negf %554 : vector<2x32xf32>
    %556 = math.exp %555 : vector<2x32xf32>
    %cst_169 = arith.constant 1.000000e+00 : f32
    %557 = vector.broadcast %cst_169 : f32 to vector<2x32xf32>
    %558 = arith.addf %557, %556 : vector<2x32xf32>
    %559 = arith.divf %557, %558 : vector<2x32xf32>
    %560 = vector.extract_strided_slice %553 {offsets = [0, 32], sizes = [2, 32], strides = [1, 1]} : vector<2x128xf32> to vector<2x32xf32>
    %561 = arith.negf %560 : vector<2x32xf32>
    %562 = math.exp %561 : vector<2x32xf32>
    %cst_170 = arith.constant 1.000000e+00 : f32
    %563 = vector.broadcast %cst_170 : f32 to vector<2x32xf32>
    %564 = arith.addf %563, %562 : vector<2x32xf32>
    %565 = arith.divf %563, %564 : vector<2x32xf32>
    %566 = vector.extract_strided_slice %553 {offsets = [0, 64], sizes = [2, 32], strides = [1, 1]} : vector<2x128xf32> to vector<2x32xf32>
    %567 = math.tanh %566 : vector<2x32xf32>
    %568 = vector.extract_strided_slice %553 {offsets = [0, 96], sizes = [2, 32], strides = [1, 1]} : vector<2x128xf32> to vector<2x32xf32>
    %569 = arith.negf %568 : vector<2x32xf32>
    %570 = math.exp %569 : vector<2x32xf32>
    %cst_171 = arith.constant 1.000000e+00 : f32
    %571 = vector.broadcast %cst_171 : f32 to vector<2x32xf32>
    %572 = arith.addf %571, %570 : vector<2x32xf32>
    %573 = arith.divf %571, %572 : vector<2x32xf32>
    %574 = arith.mulf %565, %544 : vector<2x32xf32>
    %575 = arith.mulf %559, %567 : vector<2x32xf32>
    %576 = arith.addf %574, %575 : vector<2x32xf32>
    %577 = math.tanh %576 : vector<2x32xf32>
    %578 = arith.mulf %573, %577 : vector<2x32xf32>
    %c4_172 = arith.constant 4 : index
    %c0_173 = arith.constant 0 : index
    %579 = vector.load %arg1[%c4_172, %c0_173] : memref<16x1xf32, #tpu.memory_space<vmem>>, vector<2x1xf32>
    %580 = vector.broadcast %579 : vector<2x1xf32> to vector<2x32xf32>
    %581 = arith.mulf %580, %578 : vector<2x32xf32>
    %582 = arith.addf %550, %581 : vector<2x32xf32>
    %c6_174 = arith.constant 6 : index
    %c0_175 = arith.constant 0 : index
    %583 = vector.load %arg17[%c6_174, %c0_175] : memref<16x256xf32, #tpu.memory_space<vmem>>, vector<2x128xf32>
    %cst_176 = arith.constant dense<0.000000e+00> : vector<2x128xf32>
    %584 = tpu.matmul %578, %3, %cst_176 {dimension_numbers = #tpu.dot_dimension_numbers<[1], [0], [0], [1], [0, 0, 1, 1], [], []>} : vector<2x32xf32>, vector<32x128xf32>, vector<2x128xf32> -> vector<2x128xf32>
    %585 = arith.addf %583, %584 : vector<2x128xf32>
    %586 = vector.extract_strided_slice %585 {offsets = [0, 0], sizes = [2, 32], strides = [1, 1]} : vector<2x128xf32> to vector<2x32xf32>
    %587 = arith.negf %586 : vector<2x32xf32>
    %588 = math.exp %587 : vector<2x32xf32>
    %cst_177 = arith.constant 1.000000e+00 : f32
    %589 = vector.broadcast %cst_177 : f32 to vector<2x32xf32>
    %590 = arith.addf %589, %588 : vector<2x32xf32>
    %591 = arith.divf %589, %590 : vector<2x32xf32>
    %592 = vector.extract_strided_slice %585 {offsets = [0, 32], sizes = [2, 32], strides = [1, 1]} : vector<2x128xf32> to vector<2x32xf32>
    %593 = arith.negf %592 : vector<2x32xf32>
    %594 = math.exp %593 : vector<2x32xf32>
    %cst_178 = arith.constant 1.000000e+00 : f32
    %595 = vector.broadcast %cst_178 : f32 to vector<2x32xf32>
    %596 = arith.addf %595, %594 : vector<2x32xf32>
    %597 = arith.divf %595, %596 : vector<2x32xf32>
    %598 = vector.extract_strided_slice %585 {offsets = [0, 64], sizes = [2, 32], strides = [1, 1]} : vector<2x128xf32> to vector<2x32xf32>
    %599 = math.tanh %598 : vector<2x32xf32>
    %600 = vector.extract_strided_slice %585 {offsets = [0, 96], sizes = [2, 32], strides = [1, 1]} : vector<2x128xf32> to vector<2x32xf32>
    %601 = arith.negf %600 : vector<2x32xf32>
    %602 = math.exp %601 : vector<2x32xf32>
    %cst_179 = arith.constant 1.000000e+00 : f32
    %603 = vector.broadcast %cst_179 : f32 to vector<2x32xf32>
    %604 = arith.addf %603, %602 : vector<2x32xf32>
    %605 = arith.divf %603, %604 : vector<2x32xf32>
    %606 = arith.mulf %597, %576 : vector<2x32xf32>
    %607 = arith.mulf %591, %599 : vector<2x32xf32>
    %608 = arith.addf %606, %607 : vector<2x32xf32>
    %609 = math.tanh %608 : vector<2x32xf32>
    %610 = arith.mulf %605, %609 : vector<2x32xf32>
    %c6_180 = arith.constant 6 : index
    %c0_181 = arith.constant 0 : index
    %611 = vector.load %arg1[%c6_180, %c0_181] : memref<16x1xf32, #tpu.memory_space<vmem>>, vector<2x1xf32>
    %612 = vector.broadcast %611 : vector<2x1xf32> to vector<2x32xf32>
    %613 = arith.mulf %612, %610 : vector<2x32xf32>
    %614 = arith.addf %582, %613 : vector<2x32xf32>
    %c8_182 = arith.constant 8 : index
    %c0_183 = arith.constant 0 : index
    %615 = vector.load %arg17[%c8_182, %c0_183] : memref<16x256xf32, #tpu.memory_space<vmem>>, vector<2x128xf32>
    %cst_184 = arith.constant dense<0.000000e+00> : vector<2x128xf32>
    %616 = tpu.matmul %610, %3, %cst_184 {dimension_numbers = #tpu.dot_dimension_numbers<[1], [0], [0], [1], [0, 0, 1, 1], [], []>} : vector<2x32xf32>, vector<32x128xf32>, vector<2x128xf32> -> vector<2x128xf32>
    %617 = arith.addf %615, %616 : vector<2x128xf32>
    %618 = vector.extract_strided_slice %617 {offsets = [0, 0], sizes = [2, 32], strides = [1, 1]} : vector<2x128xf32> to vector<2x32xf32>
    %619 = arith.negf %618 : vector<2x32xf32>
    %620 = math.exp %619 : vector<2x32xf32>
    %cst_185 = arith.constant 1.000000e+00 : f32
    %621 = vector.broadcast %cst_185 : f32 to vector<2x32xf32>
    %622 = arith.addf %621, %620 : vector<2x32xf32>
    %623 = arith.divf %621, %622 : vector<2x32xf32>
    %624 = vector.extract_strided_slice %617 {offsets = [0, 32], sizes = [2, 32], strides = [1, 1]} : vector<2x128xf32> to vector<2x32xf32>
    %625 = arith.negf %624 : vector<2x32xf32>
    %626 = math.exp %625 : vector<2x32xf32>
    %cst_186 = arith.constant 1.000000e+00 : f32
    %627 = vector.broadcast %cst_186 : f32 to vector<2x32xf32>
    %628 = arith.addf %627, %626 : vector<2x32xf32>
    %629 = arith.divf %627, %628 : vector<2x32xf32>
    %630 = vector.extract_strided_slice %617 {offsets = [0, 64], sizes = [2, 32], strides = [1, 1]} : vector<2x128xf32> to vector<2x32xf32>
    %631 = math.tanh %630 : vector<2x32xf32>
    %632 = vector.extract_strided_slice %617 {offsets = [0, 96], sizes = [2, 32], strides = [1, 1]} : vector<2x128xf32> to vector<2x32xf32>
    %633 = arith.negf %632 : vector<2x32xf32>
    %634 = math.exp %633 : vector<2x32xf32>
    %cst_187 = arith.constant 1.000000e+00 : f32
    %635 = vector.broadcast %cst_187 : f32 to vector<2x32xf32>
    %636 = arith.addf %635, %634 : vector<2x32xf32>
    %637 = arith.divf %635, %636 : vector<2x32xf32>
    %638 = arith.mulf %629, %608 : vector<2x32xf32>
    %639 = arith.mulf %623, %631 : vector<2x32xf32>
    %640 = arith.addf %638, %639 : vector<2x32xf32>
    %641 = math.tanh %640 : vector<2x32xf32>
    %642 = arith.mulf %637, %641 : vector<2x32xf32>
    %c8_188 = arith.constant 8 : index
    %c0_189 = arith.constant 0 : index
    %643 = vector.load %arg1[%c8_188, %c0_189] : memref<16x1xf32, #tpu.memory_space<vmem>>, vector<2x1xf32>
    %644 = vector.broadcast %643 : vector<2x1xf32> to vector<2x32xf32>
    %645 = arith.mulf %644, %642 : vector<2x32xf32>
    %646 = arith.addf %614, %645 : vector<2x32xf32>
    %c10_190 = arith.constant 10 : index
    %c0_191 = arith.constant 0 : index
    %647 = vector.load %arg17[%c10_190, %c0_191] : memref<16x256xf32, #tpu.memory_space<vmem>>, vector<2x128xf32>
    %cst_192 = arith.constant dense<0.000000e+00> : vector<2x128xf32>
    %648 = tpu.matmul %642, %3, %cst_192 {dimension_numbers = #tpu.dot_dimension_numbers<[1], [0], [0], [1], [0, 0, 1, 1], [], []>} : vector<2x32xf32>, vector<32x128xf32>, vector<2x128xf32> -> vector<2x128xf32>
    %649 = arith.addf %647, %648 : vector<2x128xf32>
    %650 = vector.extract_strided_slice %649 {offsets = [0, 0], sizes = [2, 32], strides = [1, 1]} : vector<2x128xf32> to vector<2x32xf32>
    %651 = arith.negf %650 : vector<2x32xf32>
    %652 = math.exp %651 : vector<2x32xf32>
    %cst_193 = arith.constant 1.000000e+00 : f32
    %653 = vector.broadcast %cst_193 : f32 to vector<2x32xf32>
    %654 = arith.addf %653, %652 : vector<2x32xf32>
    %655 = arith.divf %653, %654 : vector<2x32xf32>
    %656 = vector.extract_strided_slice %649 {offsets = [0, 32], sizes = [2, 32], strides = [1, 1]} : vector<2x128xf32> to vector<2x32xf32>
    %657 = arith.negf %656 : vector<2x32xf32>
    %658 = math.exp %657 : vector<2x32xf32>
    %cst_194 = arith.constant 1.000000e+00 : f32
    %659 = vector.broadcast %cst_194 : f32 to vector<2x32xf32>
    %660 = arith.addf %659, %658 : vector<2x32xf32>
    %661 = arith.divf %659, %660 : vector<2x32xf32>
    %662 = vector.extract_strided_slice %649 {offsets = [0, 64], sizes = [2, 32], strides = [1, 1]} : vector<2x128xf32> to vector<2x32xf32>
    %663 = math.tanh %662 : vector<2x32xf32>
    %664 = vector.extract_strided_slice %649 {offsets = [0, 96], sizes = [2, 32], strides = [1, 1]} : vector<2x128xf32> to vector<2x32xf32>
    %665 = arith.negf %664 : vector<2x32xf32>
    %666 = math.exp %665 : vector<2x32xf32>
    %cst_195 = arith.constant 1.000000e+00 : f32
    %667 = vector.broadcast %cst_195 : f32 to vector<2x32xf32>
    %668 = arith.addf %667, %666 : vector<2x32xf32>
    %669 = arith.divf %667, %668 : vector<2x32xf32>
    %670 = arith.mulf %661, %640 : vector<2x32xf32>
    %671 = arith.mulf %655, %663 : vector<2x32xf32>
    %672 = arith.addf %670, %671 : vector<2x32xf32>
    %673 = math.tanh %672 : vector<2x32xf32>
    %674 = arith.mulf %669, %673 : vector<2x32xf32>
    %c10_196 = arith.constant 10 : index
    %c0_197 = arith.constant 0 : index
    %675 = vector.load %arg1[%c10_196, %c0_197] : memref<16x1xf32, #tpu.memory_space<vmem>>, vector<2x1xf32>
    %676 = vector.broadcast %675 : vector<2x1xf32> to vector<2x32xf32>
    %677 = arith.mulf %676, %674 : vector<2x32xf32>
    %678 = arith.addf %646, %677 : vector<2x32xf32>
    %c12_198 = arith.constant 12 : index
    %c0_199 = arith.constant 0 : index
    %679 = vector.load %arg17[%c12_198, %c0_199] : memref<16x256xf32, #tpu.memory_space<vmem>>, vector<2x128xf32>
    %cst_200 = arith.constant dense<0.000000e+00> : vector<2x128xf32>
    %680 = tpu.matmul %674, %3, %cst_200 {dimension_numbers = #tpu.dot_dimension_numbers<[1], [0], [0], [1], [0, 0, 1, 1], [], []>} : vector<2x32xf32>, vector<32x128xf32>, vector<2x128xf32> -> vector<2x128xf32>
    %681 = arith.addf %679, %680 : vector<2x128xf32>
    %682 = vector.extract_strided_slice %681 {offsets = [0, 0], sizes = [2, 32], strides = [1, 1]} : vector<2x128xf32> to vector<2x32xf32>
    %683 = arith.negf %682 : vector<2x32xf32>
    %684 = math.exp %683 : vector<2x32xf32>
    %cst_201 = arith.constant 1.000000e+00 : f32
    %685 = vector.broadcast %cst_201 : f32 to vector<2x32xf32>
    %686 = arith.addf %685, %684 : vector<2x32xf32>
    %687 = arith.divf %685, %686 : vector<2x32xf32>
    %688 = vector.extract_strided_slice %681 {offsets = [0, 32], sizes = [2, 32], strides = [1, 1]} : vector<2x128xf32> to vector<2x32xf32>
    %689 = arith.negf %688 : vector<2x32xf32>
    %690 = math.exp %689 : vector<2x32xf32>
    %cst_202 = arith.constant 1.000000e+00 : f32
    %691 = vector.broadcast %cst_202 : f32 to vector<2x32xf32>
    %692 = arith.addf %691, %690 : vector<2x32xf32>
    %693 = arith.divf %691, %692 : vector<2x32xf32>
    %694 = vector.extract_strided_slice %681 {offsets = [0, 64], sizes = [2, 32], strides = [1, 1]} : vector<2x128xf32> to vector<2x32xf32>
    %695 = math.tanh %694 : vector<2x32xf32>
    %696 = vector.extract_strided_slice %681 {offsets = [0, 96], sizes = [2, 32], strides = [1, 1]} : vector<2x128xf32> to vector<2x32xf32>
    %697 = arith.negf %696 : vector<2x32xf32>
    %698 = math.exp %697 : vector<2x32xf32>
    %cst_203 = arith.constant 1.000000e+00 : f32
    %699 = vector.broadcast %cst_203 : f32 to vector<2x32xf32>
    %700 = arith.addf %699, %698 : vector<2x32xf32>
    %701 = arith.divf %699, %700 : vector<2x32xf32>
    %702 = arith.mulf %693, %672 : vector<2x32xf32>
    %703 = arith.mulf %687, %695 : vector<2x32xf32>
    %704 = arith.addf %702, %703 : vector<2x32xf32>
    %705 = math.tanh %704 : vector<2x32xf32>
    %706 = arith.mulf %701, %705 : vector<2x32xf32>
    %c12_204 = arith.constant 12 : index
    %c0_205 = arith.constant 0 : index
    %707 = vector.load %arg1[%c12_204, %c0_205] : memref<16x1xf32, #tpu.memory_space<vmem>>, vector<2x1xf32>
    %708 = vector.broadcast %707 : vector<2x1xf32> to vector<2x32xf32>
    %709 = arith.mulf %708, %706 : vector<2x32xf32>
    %710 = arith.addf %678, %709 : vector<2x32xf32>
    %c14_206 = arith.constant 14 : index
    %c0_207 = arith.constant 0 : index
    %711 = vector.load %arg17[%c14_206, %c0_207] : memref<16x256xf32, #tpu.memory_space<vmem>>, vector<2x128xf32>
    %cst_208 = arith.constant dense<0.000000e+00> : vector<2x128xf32>
    %712 = tpu.matmul %706, %3, %cst_208 {dimension_numbers = #tpu.dot_dimension_numbers<[1], [0], [0], [1], [0, 0, 1, 1], [], []>} : vector<2x32xf32>, vector<32x128xf32>, vector<2x128xf32> -> vector<2x128xf32>
    %713 = arith.addf %711, %712 : vector<2x128xf32>
    %714 = vector.extract_strided_slice %713 {offsets = [0, 0], sizes = [2, 32], strides = [1, 1]} : vector<2x128xf32> to vector<2x32xf32>
    %715 = arith.negf %714 : vector<2x32xf32>
    %716 = math.exp %715 : vector<2x32xf32>
    %cst_209 = arith.constant 1.000000e+00 : f32
    %717 = vector.broadcast %cst_209 : f32 to vector<2x32xf32>
    %718 = arith.addf %717, %716 : vector<2x32xf32>
    %719 = arith.divf %717, %718 : vector<2x32xf32>
    %720 = vector.extract_strided_slice %713 {offsets = [0, 32], sizes = [2, 32], strides = [1, 1]} : vector<2x128xf32> to vector<2x32xf32>
    %721 = arith.negf %720 : vector<2x32xf32>
    %722 = math.exp %721 : vector<2x32xf32>
    %cst_210 = arith.constant 1.000000e+00 : f32
    %723 = vector.broadcast %cst_210 : f32 to vector<2x32xf32>
    %724 = arith.addf %723, %722 : vector<2x32xf32>
    %725 = arith.divf %723, %724 : vector<2x32xf32>
    %726 = vector.extract_strided_slice %713 {offsets = [0, 64], sizes = [2, 32], strides = [1, 1]} : vector<2x128xf32> to vector<2x32xf32>
    %727 = math.tanh %726 : vector<2x32xf32>
    %728 = vector.extract_strided_slice %713 {offsets = [0, 96], sizes = [2, 32], strides = [1, 1]} : vector<2x128xf32> to vector<2x32xf32>
    %729 = arith.negf %728 : vector<2x32xf32>
    %730 = math.exp %729 : vector<2x32xf32>
    %cst_211 = arith.constant 1.000000e+00 : f32
    %731 = vector.broadcast %cst_211 : f32 to vector<2x32xf32>
    %732 = arith.addf %731, %730 : vector<2x32xf32>
    %733 = arith.divf %731, %732 : vector<2x32xf32>
    %734 = arith.mulf %725, %704 : vector<2x32xf32>
    %735 = arith.mulf %719, %727 : vector<2x32xf32>
    %736 = arith.addf %734, %735 : vector<2x32xf32>
    %737 = math.tanh %736 : vector<2x32xf32>
    %738 = arith.mulf %733, %737 : vector<2x32xf32>
    %c14_212 = arith.constant 14 : index
    %c0_213 = arith.constant 0 : index
    %739 = vector.load %arg1[%c14_212, %c0_213] : memref<16x1xf32, #tpu.memory_space<vmem>>, vector<2x1xf32>
    %740 = vector.broadcast %739 : vector<2x1xf32> to vector<2x32xf32>
    %741 = arith.mulf %740, %738 : vector<2x32xf32>
    %742 = arith.addf %710, %741 : vector<2x32xf32>
    %c14_214 = arith.constant 14 : index
    %c128_215 = arith.constant 128 : index
    %743 = vector.load %arg17[%c14_214, %c128_215] : memref<16x256xf32, #tpu.memory_space<vmem>>, vector<2x128xf32>
    %cst_216 = arith.constant dense<0.000000e+00> : vector<2x128xf32>
    %744 = tpu.matmul %0, %4, %cst_216 {dimension_numbers = #tpu.dot_dimension_numbers<[1], [0], [0], [1], [0, 0, 1, 1], [], []>} : vector<2x32xf32>, vector<32x128xf32>, vector<2x128xf32> -> vector<2x128xf32>
    %745 = arith.addf %743, %744 : vector<2x128xf32>
    %746 = vector.extract_strided_slice %745 {offsets = [0, 0], sizes = [2, 32], strides = [1, 1]} : vector<2x128xf32> to vector<2x32xf32>
    %747 = arith.negf %746 : vector<2x32xf32>
    %748 = math.exp %747 : vector<2x32xf32>
    %cst_217 = arith.constant 1.000000e+00 : f32
    %749 = vector.broadcast %cst_217 : f32 to vector<2x32xf32>
    %750 = arith.addf %749, %748 : vector<2x32xf32>
    %751 = arith.divf %749, %750 : vector<2x32xf32>
    %752 = vector.extract_strided_slice %745 {offsets = [0, 32], sizes = [2, 32], strides = [1, 1]} : vector<2x128xf32> to vector<2x32xf32>
    %753 = arith.negf %752 : vector<2x32xf32>
    %754 = math.exp %753 : vector<2x32xf32>
    %cst_218 = arith.constant 1.000000e+00 : f32
    %755 = vector.broadcast %cst_218 : f32 to vector<2x32xf32>
    %756 = arith.addf %755, %754 : vector<2x32xf32>
    %757 = arith.divf %755, %756 : vector<2x32xf32>
    %758 = vector.extract_strided_slice %745 {offsets = [0, 64], sizes = [2, 32], strides = [1, 1]} : vector<2x128xf32> to vector<2x32xf32>
    %759 = math.tanh %758 : vector<2x32xf32>
    %760 = vector.extract_strided_slice %745 {offsets = [0, 96], sizes = [2, 32], strides = [1, 1]} : vector<2x128xf32> to vector<2x32xf32>
    %761 = arith.negf %760 : vector<2x32xf32>
    %762 = math.exp %761 : vector<2x32xf32>
    %cst_219 = arith.constant 1.000000e+00 : f32
    %763 = vector.broadcast %cst_219 : f32 to vector<2x32xf32>
    %764 = arith.addf %763, %762 : vector<2x32xf32>
    %765 = arith.divf %763, %764 : vector<2x32xf32>
    %766 = arith.mulf %757, %0 : vector<2x32xf32>
    %767 = arith.mulf %751, %759 : vector<2x32xf32>
    %768 = arith.addf %766, %767 : vector<2x32xf32>
    %769 = math.tanh %768 : vector<2x32xf32>
    %770 = arith.mulf %765, %769 : vector<2x32xf32>
    %c14_220 = arith.constant 14 : index
    %c0_221 = arith.constant 0 : index
    %771 = vector.load %arg1[%c14_220, %c0_221] : memref<16x1xf32, #tpu.memory_space<vmem>>, vector<2x1xf32>
    %772 = vector.broadcast %771 : vector<2x1xf32> to vector<2x32xf32>
    %773 = arith.mulf %772, %770 : vector<2x32xf32>
    %774 = arith.addf %0, %773 : vector<2x32xf32>
    %c12_222 = arith.constant 12 : index
    %c128_223 = arith.constant 128 : index
    %775 = vector.load %arg17[%c12_222, %c128_223] : memref<16x256xf32, #tpu.memory_space<vmem>>, vector<2x128xf32>
    %cst_224 = arith.constant dense<0.000000e+00> : vector<2x128xf32>
    %776 = tpu.matmul %770, %4, %cst_224 {dimension_numbers = #tpu.dot_dimension_numbers<[1], [0], [0], [1], [0, 0, 1, 1], [], []>} : vector<2x32xf32>, vector<32x128xf32>, vector<2x128xf32> -> vector<2x128xf32>
    %777 = arith.addf %775, %776 : vector<2x128xf32>
    %778 = vector.extract_strided_slice %777 {offsets = [0, 0], sizes = [2, 32], strides = [1, 1]} : vector<2x128xf32> to vector<2x32xf32>
    %779 = arith.negf %778 : vector<2x32xf32>
    %780 = math.exp %779 : vector<2x32xf32>
    %cst_225 = arith.constant 1.000000e+00 : f32
    %781 = vector.broadcast %cst_225 : f32 to vector<2x32xf32>
    %782 = arith.addf %781, %780 : vector<2x32xf32>
    %783 = arith.divf %781, %782 : vector<2x32xf32>
    %784 = vector.extract_strided_slice %777 {offsets = [0, 32], sizes = [2, 32], strides = [1, 1]} : vector<2x128xf32> to vector<2x32xf32>
    %785 = arith.negf %784 : vector<2x32xf32>
    %786 = math.exp %785 : vector<2x32xf32>
    %cst_226 = arith.constant 1.000000e+00 : f32
    %787 = vector.broadcast %cst_226 : f32 to vector<2x32xf32>
    %788 = arith.addf %787, %786 : vector<2x32xf32>
    %789 = arith.divf %787, %788 : vector<2x32xf32>
    %790 = vector.extract_strided_slice %777 {offsets = [0, 64], sizes = [2, 32], strides = [1, 1]} : vector<2x128xf32> to vector<2x32xf32>
    %791 = math.tanh %790 : vector<2x32xf32>
    %792 = vector.extract_strided_slice %777 {offsets = [0, 96], sizes = [2, 32], strides = [1, 1]} : vector<2x128xf32> to vector<2x32xf32>
    %793 = arith.negf %792 : vector<2x32xf32>
    %794 = math.exp %793 : vector<2x32xf32>
    %cst_227 = arith.constant 1.000000e+00 : f32
    %795 = vector.broadcast %cst_227 : f32 to vector<2x32xf32>
    %796 = arith.addf %795, %794 : vector<2x32xf32>
    %797 = arith.divf %795, %796 : vector<2x32xf32>
    %798 = arith.mulf %789, %768 : vector<2x32xf32>
    %799 = arith.mulf %783, %791 : vector<2x32xf32>
    %800 = arith.addf %798, %799 : vector<2x32xf32>
    %801 = math.tanh %800 : vector<2x32xf32>
    %802 = arith.mulf %797, %801 : vector<2x32xf32>
    %c12_228 = arith.constant 12 : index
    %c0_229 = arith.constant 0 : index
    %803 = vector.load %arg1[%c12_228, %c0_229] : memref<16x1xf32, #tpu.memory_space<vmem>>, vector<2x1xf32>
    %804 = vector.broadcast %803 : vector<2x1xf32> to vector<2x32xf32>
    %805 = arith.mulf %804, %802 : vector<2x32xf32>
    %806 = arith.addf %774, %805 : vector<2x32xf32>
    %c10_230 = arith.constant 10 : index
    %c128_231 = arith.constant 128 : index
    %807 = vector.load %arg17[%c10_230, %c128_231] : memref<16x256xf32, #tpu.memory_space<vmem>>, vector<2x128xf32>
    %cst_232 = arith.constant dense<0.000000e+00> : vector<2x128xf32>
    %808 = tpu.matmul %802, %4, %cst_232 {dimension_numbers = #tpu.dot_dimension_numbers<[1], [0], [0], [1], [0, 0, 1, 1], [], []>} : vector<2x32xf32>, vector<32x128xf32>, vector<2x128xf32> -> vector<2x128xf32>
    %809 = arith.addf %807, %808 : vector<2x128xf32>
    %810 = vector.extract_strided_slice %809 {offsets = [0, 0], sizes = [2, 32], strides = [1, 1]} : vector<2x128xf32> to vector<2x32xf32>
    %811 = arith.negf %810 : vector<2x32xf32>
    %812 = math.exp %811 : vector<2x32xf32>
    %cst_233 = arith.constant 1.000000e+00 : f32
    %813 = vector.broadcast %cst_233 : f32 to vector<2x32xf32>
    %814 = arith.addf %813, %812 : vector<2x32xf32>
    %815 = arith.divf %813, %814 : vector<2x32xf32>
    %816 = vector.extract_strided_slice %809 {offsets = [0, 32], sizes = [2, 32], strides = [1, 1]} : vector<2x128xf32> to vector<2x32xf32>
    %817 = arith.negf %816 : vector<2x32xf32>
    %818 = math.exp %817 : vector<2x32xf32>
    %cst_234 = arith.constant 1.000000e+00 : f32
    %819 = vector.broadcast %cst_234 : f32 to vector<2x32xf32>
    %820 = arith.addf %819, %818 : vector<2x32xf32>
    %821 = arith.divf %819, %820 : vector<2x32xf32>
    %822 = vector.extract_strided_slice %809 {offsets = [0, 64], sizes = [2, 32], strides = [1, 1]} : vector<2x128xf32> to vector<2x32xf32>
    %823 = math.tanh %822 : vector<2x32xf32>
    %824 = vector.extract_strided_slice %809 {offsets = [0, 96], sizes = [2, 32], strides = [1, 1]} : vector<2x128xf32> to vector<2x32xf32>
    %825 = arith.negf %824 : vector<2x32xf32>
    %826 = math.exp %825 : vector<2x32xf32>
    %cst_235 = arith.constant 1.000000e+00 : f32
    %827 = vector.broadcast %cst_235 : f32 to vector<2x32xf32>
    %828 = arith.addf %827, %826 : vector<2x32xf32>
    %829 = arith.divf %827, %828 : vector<2x32xf32>
    %830 = arith.mulf %821, %800 : vector<2x32xf32>
    %831 = arith.mulf %815, %823 : vector<2x32xf32>
    %832 = arith.addf %830, %831 : vector<2x32xf32>
    %833 = math.tanh %832 : vector<2x32xf32>
    %834 = arith.mulf %829, %833 : vector<2x32xf32>
    %c10_236 = arith.constant 10 : index
    %c0_237 = arith.constant 0 : index
    %835 = vector.load %arg1[%c10_236, %c0_237] : memref<16x1xf32, #tpu.memory_space<vmem>>, vector<2x1xf32>
    %836 = vector.broadcast %835 : vector<2x1xf32> to vector<2x32xf32>
    %837 = arith.mulf %836, %834 : vector<2x32xf32>
    %838 = arith.addf %806, %837 : vector<2x32xf32>
    %c8_238 = arith.constant 8 : index
    %c128_239 = arith.constant 128 : index
    %839 = vector.load %arg17[%c8_238, %c128_239] : memref<16x256xf32, #tpu.memory_space<vmem>>, vector<2x128xf32>
    %cst_240 = arith.constant dense<0.000000e+00> : vector<2x128xf32>
    %840 = tpu.matmul %834, %4, %cst_240 {dimension_numbers = #tpu.dot_dimension_numbers<[1], [0], [0], [1], [0, 0, 1, 1], [], []>} : vector<2x32xf32>, vector<32x128xf32>, vector<2x128xf32> -> vector<2x128xf32>
    %841 = arith.addf %839, %840 : vector<2x128xf32>
    %842 = vector.extract_strided_slice %841 {offsets = [0, 0], sizes = [2, 32], strides = [1, 1]} : vector<2x128xf32> to vector<2x32xf32>
    %843 = arith.negf %842 : vector<2x32xf32>
    %844 = math.exp %843 : vector<2x32xf32>
    %cst_241 = arith.constant 1.000000e+00 : f32
    %845 = vector.broadcast %cst_241 : f32 to vector<2x32xf32>
    %846 = arith.addf %845, %844 : vector<2x32xf32>
    %847 = arith.divf %845, %846 : vector<2x32xf32>
    %848 = vector.extract_strided_slice %841 {offsets = [0, 32], sizes = [2, 32], strides = [1, 1]} : vector<2x128xf32> to vector<2x32xf32>
    %849 = arith.negf %848 : vector<2x32xf32>
    %850 = math.exp %849 : vector<2x32xf32>
    %cst_242 = arith.constant 1.000000e+00 : f32
    %851 = vector.broadcast %cst_242 : f32 to vector<2x32xf32>
    %852 = arith.addf %851, %850 : vector<2x32xf32>
    %853 = arith.divf %851, %852 : vector<2x32xf32>
    %854 = vector.extract_strided_slice %841 {offsets = [0, 64], sizes = [2, 32], strides = [1, 1]} : vector<2x128xf32> to vector<2x32xf32>
    %855 = math.tanh %854 : vector<2x32xf32>
    %856 = vector.extract_strided_slice %841 {offsets = [0, 96], sizes = [2, 32], strides = [1, 1]} : vector<2x128xf32> to vector<2x32xf32>
    %857 = arith.negf %856 : vector<2x32xf32>
    %858 = math.exp %857 : vector<2x32xf32>
    %cst_243 = arith.constant 1.000000e+00 : f32
    %859 = vector.broadcast %cst_243 : f32 to vector<2x32xf32>
    %860 = arith.addf %859, %858 : vector<2x32xf32>
    %861 = arith.divf %859, %860 : vector<2x32xf32>
    %862 = arith.mulf %853, %832 : vector<2x32xf32>
    %863 = arith.mulf %847, %855 : vector<2x32xf32>
    %864 = arith.addf %862, %863 : vector<2x32xf32>
    %865 = math.tanh %864 : vector<2x32xf32>
    %866 = arith.mulf %861, %865 : vector<2x32xf32>
    %c8_244 = arith.constant 8 : index
    %c0_245 = arith.constant 0 : index
    %867 = vector.load %arg1[%c8_244, %c0_245] : memref<16x1xf32, #tpu.memory_space<vmem>>, vector<2x1xf32>
    %868 = vector.broadcast %867 : vector<2x1xf32> to vector<2x32xf32>
    %869 = arith.mulf %868, %866 : vector<2x32xf32>
    %870 = arith.addf %838, %869 : vector<2x32xf32>
    %c6_246 = arith.constant 6 : index
    %c128_247 = arith.constant 128 : index
    %871 = vector.load %arg17[%c6_246, %c128_247] : memref<16x256xf32, #tpu.memory_space<vmem>>, vector<2x128xf32>
    %cst_248 = arith.constant dense<0.000000e+00> : vector<2x128xf32>
    %872 = tpu.matmul %866, %4, %cst_248 {dimension_numbers = #tpu.dot_dimension_numbers<[1], [0], [0], [1], [0, 0, 1, 1], [], []>} : vector<2x32xf32>, vector<32x128xf32>, vector<2x128xf32> -> vector<2x128xf32>
    %873 = arith.addf %871, %872 : vector<2x128xf32>
    %874 = vector.extract_strided_slice %873 {offsets = [0, 0], sizes = [2, 32], strides = [1, 1]} : vector<2x128xf32> to vector<2x32xf32>
    %875 = arith.negf %874 : vector<2x32xf32>
    %876 = math.exp %875 : vector<2x32xf32>
    %cst_249 = arith.constant 1.000000e+00 : f32
    %877 = vector.broadcast %cst_249 : f32 to vector<2x32xf32>
    %878 = arith.addf %877, %876 : vector<2x32xf32>
    %879 = arith.divf %877, %878 : vector<2x32xf32>
    %880 = vector.extract_strided_slice %873 {offsets = [0, 32], sizes = [2, 32], strides = [1, 1]} : vector<2x128xf32> to vector<2x32xf32>
    %881 = arith.negf %880 : vector<2x32xf32>
    %882 = math.exp %881 : vector<2x32xf32>
    %cst_250 = arith.constant 1.000000e+00 : f32
    %883 = vector.broadcast %cst_250 : f32 to vector<2x32xf32>
    %884 = arith.addf %883, %882 : vector<2x32xf32>
    %885 = arith.divf %883, %884 : vector<2x32xf32>
    %886 = vector.extract_strided_slice %873 {offsets = [0, 64], sizes = [2, 32], strides = [1, 1]} : vector<2x128xf32> to vector<2x32xf32>
    %887 = math.tanh %886 : vector<2x32xf32>
    %888 = vector.extract_strided_slice %873 {offsets = [0, 96], sizes = [2, 32], strides = [1, 1]} : vector<2x128xf32> to vector<2x32xf32>
    %889 = arith.negf %888 : vector<2x32xf32>
    %890 = math.exp %889 : vector<2x32xf32>
    %cst_251 = arith.constant 1.000000e+00 : f32
    %891 = vector.broadcast %cst_251 : f32 to vector<2x32xf32>
    %892 = arith.addf %891, %890 : vector<2x32xf32>
    %893 = arith.divf %891, %892 : vector<2x32xf32>
    %894 = arith.mulf %885, %864 : vector<2x32xf32>
    %895 = arith.mulf %879, %887 : vector<2x32xf32>
    %896 = arith.addf %894, %895 : vector<2x32xf32>
    %897 = math.tanh %896 : vector<2x32xf32>
    %898 = arith.mulf %893, %897 : vector<2x32xf32>
    %c6_252 = arith.constant 6 : index
    %c0_253 = arith.constant 0 : index
    %899 = vector.load %arg1[%c6_252, %c0_253] : memref<16x1xf32, #tpu.memory_space<vmem>>, vector<2x1xf32>
    %900 = vector.broadcast %899 : vector<2x1xf32> to vector<2x32xf32>
    %901 = arith.mulf %900, %898 : vector<2x32xf32>
    %902 = arith.addf %870, %901 : vector<2x32xf32>
    %c4_254 = arith.constant 4 : index
    %c128_255 = arith.constant 128 : index
    %903 = vector.load %arg17[%c4_254, %c128_255] : memref<16x256xf32, #tpu.memory_space<vmem>>, vector<2x128xf32>
    %cst_256 = arith.constant dense<0.000000e+00> : vector<2x128xf32>
    %904 = tpu.matmul %898, %4, %cst_256 {dimension_numbers = #tpu.dot_dimension_numbers<[1], [0], [0], [1], [0, 0, 1, 1], [], []>} : vector<2x32xf32>, vector<32x128xf32>, vector<2x128xf32> -> vector<2x128xf32>
    %905 = arith.addf %903, %904 : vector<2x128xf32>
    %906 = vector.extract_strided_slice %905 {offsets = [0, 0], sizes = [2, 32], strides = [1, 1]} : vector<2x128xf32> to vector<2x32xf32>
    %907 = arith.negf %906 : vector<2x32xf32>
    %908 = math.exp %907 : vector<2x32xf32>
    %cst_257 = arith.constant 1.000000e+00 : f32
    %909 = vector.broadcast %cst_257 : f32 to vector<2x32xf32>
    %910 = arith.addf %909, %908 : vector<2x32xf32>
    %911 = arith.divf %909, %910 : vector<2x32xf32>
    %912 = vector.extract_strided_slice %905 {offsets = [0, 32], sizes = [2, 32], strides = [1, 1]} : vector<2x128xf32> to vector<2x32xf32>
    %913 = arith.negf %912 : vector<2x32xf32>
    %914 = math.exp %913 : vector<2x32xf32>
    %cst_258 = arith.constant 1.000000e+00 : f32
    %915 = vector.broadcast %cst_258 : f32 to vector<2x32xf32>
    %916 = arith.addf %915, %914 : vector<2x32xf32>
    %917 = arith.divf %915, %916 : vector<2x32xf32>
    %918 = vector.extract_strided_slice %905 {offsets = [0, 64], sizes = [2, 32], strides = [1, 1]} : vector<2x128xf32> to vector<2x32xf32>
    %919 = math.tanh %918 : vector<2x32xf32>
    %920 = vector.extract_strided_slice %905 {offsets = [0, 96], sizes = [2, 32], strides = [1, 1]} : vector<2x128xf32> to vector<2x32xf32>
    %921 = arith.negf %920 : vector<2x32xf32>
    %922 = math.exp %921 : vector<2x32xf32>
    %cst_259 = arith.constant 1.000000e+00 : f32
    %923 = vector.broadcast %cst_259 : f32 to vector<2x32xf32>
    %924 = arith.addf %923, %922 : vector<2x32xf32>
    %925 = arith.divf %923, %924 : vector<2x32xf32>
    %926 = arith.mulf %917, %896 : vector<2x32xf32>
    %927 = arith.mulf %911, %919 : vector<2x32xf32>
    %928 = arith.addf %926, %927 : vector<2x32xf32>
    %929 = math.tanh %928 : vector<2x32xf32>
    %930 = arith.mulf %925, %929 : vector<2x32xf32>
    %c4_260 = arith.constant 4 : index
    %c0_261 = arith.constant 0 : index
    %931 = vector.load %arg1[%c4_260, %c0_261] : memref<16x1xf32, #tpu.memory_space<vmem>>, vector<2x1xf32>
    %932 = vector.broadcast %931 : vector<2x1xf32> to vector<2x32xf32>
    %933 = arith.mulf %932, %930 : vector<2x32xf32>
    %934 = arith.addf %902, %933 : vector<2x32xf32>
    %c2_262 = arith.constant 2 : index
    %c128_263 = arith.constant 128 : index
    %935 = vector.load %arg17[%c2_262, %c128_263] : memref<16x256xf32, #tpu.memory_space<vmem>>, vector<2x128xf32>
    %cst_264 = arith.constant dense<0.000000e+00> : vector<2x128xf32>
    %936 = tpu.matmul %930, %4, %cst_264 {dimension_numbers = #tpu.dot_dimension_numbers<[1], [0], [0], [1], [0, 0, 1, 1], [], []>} : vector<2x32xf32>, vector<32x128xf32>, vector<2x128xf32> -> vector<2x128xf32>
    %937 = arith.addf %935, %936 : vector<2x128xf32>
    %938 = vector.extract_strided_slice %937 {offsets = [0, 0], sizes = [2, 32], strides = [1, 1]} : vector<2x128xf32> to vector<2x32xf32>
    %939 = arith.negf %938 : vector<2x32xf32>
    %940 = math.exp %939 : vector<2x32xf32>
    %cst_265 = arith.constant 1.000000e+00 : f32
    %941 = vector.broadcast %cst_265 : f32 to vector<2x32xf32>
    %942 = arith.addf %941, %940 : vector<2x32xf32>
    %943 = arith.divf %941, %942 : vector<2x32xf32>
    %944 = vector.extract_strided_slice %937 {offsets = [0, 32], sizes = [2, 32], strides = [1, 1]} : vector<2x128xf32> to vector<2x32xf32>
    %945 = arith.negf %944 : vector<2x32xf32>
    %946 = math.exp %945 : vector<2x32xf32>
    %cst_266 = arith.constant 1.000000e+00 : f32
    %947 = vector.broadcast %cst_266 : f32 to vector<2x32xf32>
    %948 = arith.addf %947, %946 : vector<2x32xf32>
    %949 = arith.divf %947, %948 : vector<2x32xf32>
    %950 = vector.extract_strided_slice %937 {offsets = [0, 64], sizes = [2, 32], strides = [1, 1]} : vector<2x128xf32> to vector<2x32xf32>
    %951 = math.tanh %950 : vector<2x32xf32>
    %952 = vector.extract_strided_slice %937 {offsets = [0, 96], sizes = [2, 32], strides = [1, 1]} : vector<2x128xf32> to vector<2x32xf32>
    %953 = arith.negf %952 : vector<2x32xf32>
    %954 = math.exp %953 : vector<2x32xf32>
    %cst_267 = arith.constant 1.000000e+00 : f32
    %955 = vector.broadcast %cst_267 : f32 to vector<2x32xf32>
    %956 = arith.addf %955, %954 : vector<2x32xf32>
    %957 = arith.divf %955, %956 : vector<2x32xf32>
    %958 = arith.mulf %949, %928 : vector<2x32xf32>
    %959 = arith.mulf %943, %951 : vector<2x32xf32>
    %960 = arith.addf %958, %959 : vector<2x32xf32>
    %961 = math.tanh %960 : vector<2x32xf32>
    %962 = arith.mulf %957, %961 : vector<2x32xf32>
    %c2_268 = arith.constant 2 : index
    %c0_269 = arith.constant 0 : index
    %963 = vector.load %arg1[%c2_268, %c0_269] : memref<16x1xf32, #tpu.memory_space<vmem>>, vector<2x1xf32>
    %964 = vector.broadcast %963 : vector<2x1xf32> to vector<2x32xf32>
    %965 = arith.mulf %964, %962 : vector<2x32xf32>
    %966 = arith.addf %934, %965 : vector<2x32xf32>
    %c0_270 = arith.constant 0 : index
    %c128_271 = arith.constant 128 : index
    %967 = vector.load %arg17[%c0_270, %c128_271] : memref<16x256xf32, #tpu.memory_space<vmem>>, vector<2x128xf32>
    %cst_272 = arith.constant dense<0.000000e+00> : vector<2x128xf32>
    %968 = tpu.matmul %962, %4, %cst_272 {dimension_numbers = #tpu.dot_dimension_numbers<[1], [0], [0], [1], [0, 0, 1, 1], [], []>} : vector<2x32xf32>, vector<32x128xf32>, vector<2x128xf32> -> vector<2x128xf32>
    %969 = arith.addf %967, %968 : vector<2x128xf32>
    %970 = vector.extract_strided_slice %969 {offsets = [0, 0], sizes = [2, 32], strides = [1, 1]} : vector<2x128xf32> to vector<2x32xf32>
    %971 = arith.negf %970 : vector<2x32xf32>
    %972 = math.exp %971 : vector<2x32xf32>
    %cst_273 = arith.constant 1.000000e+00 : f32
    %973 = vector.broadcast %cst_273 : f32 to vector<2x32xf32>
    %974 = arith.addf %973, %972 : vector<2x32xf32>
    %975 = arith.divf %973, %974 : vector<2x32xf32>
    %976 = vector.extract_strided_slice %969 {offsets = [0, 32], sizes = [2, 32], strides = [1, 1]} : vector<2x128xf32> to vector<2x32xf32>
    %977 = arith.negf %976 : vector<2x32xf32>
    %978 = math.exp %977 : vector<2x32xf32>
    %cst_274 = arith.constant 1.000000e+00 : f32
    %979 = vector.broadcast %cst_274 : f32 to vector<2x32xf32>
    %980 = arith.addf %979, %978 : vector<2x32xf32>
    %981 = arith.divf %979, %980 : vector<2x32xf32>
    %982 = vector.extract_strided_slice %969 {offsets = [0, 64], sizes = [2, 32], strides = [1, 1]} : vector<2x128xf32> to vector<2x32xf32>
    %983 = math.tanh %982 : vector<2x32xf32>
    %984 = vector.extract_strided_slice %969 {offsets = [0, 96], sizes = [2, 32], strides = [1, 1]} : vector<2x128xf32> to vector<2x32xf32>
    %985 = arith.negf %984 : vector<2x32xf32>
    %986 = math.exp %985 : vector<2x32xf32>
    %cst_275 = arith.constant 1.000000e+00 : f32
    %987 = vector.broadcast %cst_275 : f32 to vector<2x32xf32>
    %988 = arith.addf %987, %986 : vector<2x32xf32>
    %989 = arith.divf %987, %988 : vector<2x32xf32>
    %990 = arith.mulf %981, %960 : vector<2x32xf32>
    %991 = arith.mulf %975, %983 : vector<2x32xf32>
    %992 = arith.addf %990, %991 : vector<2x32xf32>
    %993 = math.tanh %992 : vector<2x32xf32>
    %994 = arith.mulf %989, %993 : vector<2x32xf32>
    %c0_276 = arith.constant 0 : index
    %c0_277 = arith.constant 0 : index
    %995 = vector.load %arg1[%c0_276, %c0_277] : memref<16x1xf32, #tpu.memory_space<vmem>>, vector<2x1xf32>
    %996 = vector.broadcast %995 : vector<2x1xf32> to vector<2x32xf32>
    %997 = arith.mulf %996, %994 : vector<2x32xf32>
    %998 = arith.addf %966, %997 : vector<2x32xf32>
    %999 = tpu.concatenate %742, %998 in 1 : vector<2x32xf32>, vector<2x32xf32> -> vector<2x64xf32>
    %c0_278 = arith.constant 0 : index
    %c0_279 = arith.constant 0 : index
    %1000 = vector.load %arg2[%c0_278, %c0_279] : memref<2x1xf32, #tpu.memory_space<vmem>>, vector<2x1xf32>
    %1001 = vector.broadcast %1000 : vector<2x1xf32> to vector<2x64xf32>
    %1002 = arith.divf %999, %1001 : vector<2x64xf32>
    %c0_280 = arith.constant 0 : index
    %c0_281 = arith.constant 0 : index
    %1003 = vector.load %arg12[%c0_280, %c0_281] : memref<64x1xf32, #tpu.memory_space<vmem>>, vector<64x1xf32>
    %cst_282 = arith.constant dense<0.000000e+00> : vector<2x1xf32>
    %1004 = tpu.matmul %1002, %1003, %cst_282 {dimension_numbers = #tpu.dot_dimension_numbers<[1], [0], [0], [1], [0, 0, 1, 1], [], []>} : vector<2x64xf32>, vector<64x1xf32>, vector<2x1xf32> -> vector<2x1xf32>
    %c0_283 = arith.constant 0 : index
    %c0_284 = arith.constant 0 : index
    %1005 = vector.load %arg13[%c0_283, %c0_284] : memref<1x1xf32, #tpu.memory_space<vmem>>, vector<1x1xf32>
    %1006 = vector.broadcast %1005 : vector<1x1xf32> to vector<2x1xf32>
    %1007 = arith.addf %1004, %1006 : vector<2x1xf32>
    %c0_285 = arith.constant 0 : index
    %c0_286 = arith.constant 0 : index
    %1008 = vector.load %arg14[%c0_285, %c0_286] : memref<2x1xf32, #tpu.memory_space<vmem>>, vector<2x1xf32>
    tpu.vector_store %arg14[%c0_285, %c0_286], %1007 {strides = array<i32>} : memref<2x1xf32, #tpu.memory_space<vmem>>, vector<2x1xf32>,
    return
  }
}

</mosaic_0001>

<bundles_post_ra>
// kernel: tpu_custom_call.1
= control target key start
LH: loop header
LB: loop body
LE: loop exit
PB: predicated region body
PF: predicated region fallthrough
CT: control target
= control target key end

     0   :  { %s4092_s0 = inlined_call_operand.vmem [shape: f32[16,32], index: 0, kind: input, shape index: {}]   ;;  %s4093_s1 = inlined_call_operand.vmem [shape: f32[16,1], index: 1, kind: input, shape index: {}]   ;;  %s4094_s2 = inlined_call_operand.vmem [shape: f32[2,1], index: 2, kind: input, shape index: {}]   ;;  %s4095_s3 = inlined_call_operand.vmem [shape: f32[32,256], index: 3, kind: input, shape index: {}]   ;;  %s4096_s4 = inlined_call_operand.hbm [shape: f32[32,128], index: 4, kind: input, shape index: {}]   ;;  %s4097_s5 = inlined_call_operand.hbm [shape: f32[32,128], index: 5, kind: input, shape index: {}]   ;;  %s4098_s6 = inlined_call_operand.vmem [shape: f32[1,256], index: 6, kind: input, shape index: {}]   ;;  %s4099_s7 = inlined_call_operand.hbm [shape: f32[32,256], index: 7, kind: input, shape index: {}]   ;;  %s4100_s8 = inlined_call_operand.hbm [shape: f32[32,256], index: 8, kind: input, shape index: {}]   ;;  %s4101_s9 = inlined_call_operand.hbm [shape: f32[32,128], index: 9, kind: input, shape index: {}]   ;;  %s4102_s10 = inlined_call_operand.hbm [shape: f32[32,128], index: 10, kind: input, shape index: {}]   ;;  %s4103_s11 = inlined_call_operand.vmem [shape: f32[1,256], index: 11, kind: input, shape index: {}]   ;;  %s4104_s12 = inlined_call_operand.vmem [shape: f32[64,1], index: 12, kind: input, shape index: {}]   ;;  %s4105_s13 = inlined_call_operand.<no memory space> [shape: f32[1,1], index: 13, kind: input, shape index: {}]   ;;  %s4106_s14 = inlined_call_operand.vmem [shape: f32[2,1], index: 14, kind: output, shape index: {}]  }
   0x1   :  { %v19_v0 = vstv %s4105_s13 }
   0x2   :  { %20 = vst [vmem:[#allocation5] sm:$0x1] %v19_v0 }
   0x3   :  { %21 = vsyncpa [#allocation7], 0 }
   0x4   :  { %22 = vsyncpa [#allocation9], 0 }
   0x5   :  { %23 = vsyncpa [#allocation12], 0 }
   0x6   :  { %24 = vsyncpa [#allocation15], 0  ;;  %s50_s17 = sshll.u32 %s4097_s5, 4  ;;  %s3353_s18 = smov [#allocation8]   ;;  %s51_s17 = int_to_ptr.hbm [resolvable:$true] %s50_s17 }
   0x7   :  { %s52_s19 = sshll.u32 %s3353_s18, 4  ;;  %s3354_s20 = smov 128   ;;  %s53_s19 = int_to_ptr.vmem [resolvable:$true] %s52_s19 }
   0x8   :  { %s3355_s21 = smov 8   ;;  %s78_s23 = sshll.u32 %s4100_s8, 4  ;;  %s79_s23 = int_to_ptr.hbm [resolvable:$true] %s78_s23 }
   0x9   :  { %58 = dma.hbm_to_vmem [thread:$0]  %s51_s17, 512, %s53_s19, [#allocation9], %s3354_s20, %s3354_s20, %s3355_s21  }
   0xa   :  { %s3356_s24 = smov [#allocation11]   ;;  %s37_s5 = sshll.u32 %s4096_s4, 4  ;;  %s38_s5 = int_to_ptr.hbm [resolvable:$true] %s37_s5 }
   0xb   :  { %s80_s25 = sshll.u32 %s3356_s24, 4  ;;  %s3357_s28 = smov 256   ;;  %s81_s25 = int_to_ptr.vmem [resolvable:$true] %s80_s25 }
   0xc   :  { %s3358_s29 = smov 16   ;;  %s65_s16 = sshll.u32 %s4099_s7, 4  ;;  %s66_s16 = int_to_ptr.hbm [resolvable:$true] %s65_s16 }
   0xd   :  { %86 = dma.hbm_to_vmem [thread:$0]  %s79_s23, 1024, %s81_s25, [#allocation12], %s3357_s28, %s3357_s28, %s3358_s29  }
   0xe   :  { %s3359_s17 = smov [#allocation6]   ;;  %s3360_s8 = smov [#allocation10]  }
   0xf   :  { %s39_s18 = sshll.u32 %s3359_s17, 4  ;;  %s67_s19 = sshll.u32 %s3360_s8, 4  ;;  %s40_s18 = int_to_ptr.vmem [resolvable:$true] %s39_s18  ;;  %s68_s19 = int_to_ptr.vmem [resolvable:$true] %s67_s19 }
  0x10   :  { %45 = dma.hbm_to_vmem [thread:$0]  %s38_s5, 512, %s40_s18, [#allocation7], %s3354_s20, %s3354_s20, %s3355_s21  }
  0x11   :  { %s91_s22 = sshll.u32 %s4101_s9, 4  ;;  %s104_s7 = sshll.u32 %s4102_s10, 4  ;;  %s92_s22 = int_to_ptr.hbm [resolvable:$true] %s91_s22  ;;  %s105_s7 = int_to_ptr.hbm [resolvable:$true] %s104_s7 }
  0x12   :  { %73 = dma.hbm_to_vmem [thread:$0]  %s66_s16, 1024, %s68_s19, [#allocation9], %s3357_s28, %s3357_s28, %s3358_s29  }
  0x13   :  { %s3361_s25 = smov [#allocation13]   ;;  %s3362_s27 = smov [#allocation14]  }
  0x14   :  { %s93_s26 = sshll.u32 %s3361_s25, 4  ;;  %s106_s5 = sshll.u32 %s3362_s27, 4  ;;  %s94_s26 = int_to_ptr.vmem [resolvable:$true] %s93_s26  ;;  %s107_s5 = int_to_ptr.vmem [resolvable:$true] %s106_s5 }
  0x15   :  { %99 = dma.hbm_to_vmem [thread:$0]  %s92_s22, 512, %s94_s26, [#allocation12], %s3354_s20, %s3354_s20, %s3355_s21  }
  0x16   :  { %112 = dma.hbm_to_vmem [thread:$0]  %s105_s7, 512, %s107_s5, [#allocation15], %s3354_s20, %s3354_s20, %s3355_s21  }
  0x17   :  { %3345 = dma.done.wait [#allocation7], 512  }
  0x18   :  { %3346 = vsyncadd [#allocation7], 4294966784 }
  0x19   :  { %3347 = dma.done.wait [#allocation9], 1536  }
  0x1a   :  { %3348 = vsyncadd [#allocation9], 4294965760 }
  0x1b   :  { %3349 = dma.done.wait [#allocation12], 1536  }
  0x1c   :  { %3350 = vsyncadd [#allocation12], 4294965760 }
  0x1d   :  { %3351 = dma.done.wait [#allocation15], 512  }
  0x1e   :  { %3352 = vsyncadd [#allocation15], 4294966784  ;;  %v167_v1 = vld [vmem:[%s4095_s3 + $0x30] sm:$0xff]  ;;  %v165_v2 = vld [vmem:[%s4095_s3 + $0x20] sm:$0xff]  ;;  %vm175_vm0 = vcmask 261120   ;;  %v3363_v10 = vmov 0.0  }
  0x1f   :  { %194 = vmatpush.msra.mxu0 %v167_v1  ;;  %v3482_v3 = vld [vmem:[#allocation6 + $0x18] sm:$0xff]  ;;  %v3484_v4 = vld [vmem:[#allocation6 + $0x10] sm:$0xff]  ;;  %2920 = vmatpush.msra.mxu1 %v167_v1  ;;  %v3491_v6 = vld [vmem:[#allocation6 + $0x8] sm:$0xff]  ;;  %s3364_s19 = smov 64   ;;  %vm298_vm5 = vcmask 254976   ;;  %s3367_s13 = smov 96  }
  0x20   :  { %v163_v5 = vld [vmem:[%s4095_s3 + $0x10] sm:$0xff]  ;;  %248 = vmatpush.msra.mxu2 %v3482_v3  ;;  %315 = vmatpush.msra.mxu3 %v3482_v3  ;;  %v161_v7 = vld [vmem:[%s4095_s3] sm:$0xff] }
  0x21   :  { %195 = vmatpush.msra.mxu0 %v165_v2  ;;  %2921 = vmatpush.msra.mxu1 %v165_v2  ;;  %v3501_v8 = vld [vmem:[%s4092_s0] sm:$0xff] }
  0x22   :  { %249 = vmatpush.msra.mxu2 %v3484_v4  ;;  %316 = vmatpush.msra.mxu3 %v3484_v4  ;;  %v3503_v9 = vld [vmem:[#allocation6] sm:$0xff] }
  0x23   :  { %196 = vmatpush.msra.mxu0 %v163_v5  ;;  %2922 = vmatpush.msra.mxu1 %v163_v5  ;;  %v3531_v11 = vld [vmem:[%s4098_s6] sm:$0x3]  ;;  %s3365_s6 = smov 32  }
  0x24   :  { %250 = vmatpush.msra.mxu2 %v3491_v6  ;;  %317 = vmatpush.msra.mxu3 %v3491_v6  ;;  %v171_v12 = vperm.slane %v3531_v11, 0 }
  0x25   :  { %197 = vmatpush.msra.mxu0 %v161_v7  ;;  %2923 = vmatpush.msra.mxu1 %v161_v7 }
  0x26   :  { %2847 = vmatmul.msk.f32.vlgmr.msra.gmra.mxu0 %vm175_vm0, %v3501_v8  ;;  %251 = vmatpush.msra.mxu2 %v3503_v9 }
  0x27   :  { %252 = vmatmul.f32.vlgmr.msra.gmra.mxu2 %v3363_v10  ;;  %318 = vmatpush.msra.mxu3 %v3503_v9 }
  0x28   :  { %391 = vmatpush.msrb.mxu2 %v3482_v3  ;;  %543 = vmatpush.msrb.mxu0 %v3482_v3 }
  0x29   :  { %467 = vmatpush.msrb.mxu3 %v3482_v3 }
  0x2a   :  { %392 = vmatpush.msrb.mxu2 %v3484_v4  ;;  %544 = vmatpush.msrb.mxu0 %v3484_v4 }
  0x2b   :  { %468 = vmatpush.msrb.mxu3 %v3484_v4 }
  0x2c   :  { %393 = vmatpush.msrb.mxu2 %v3491_v6  ;;  %545 = vmatpush.msrb.mxu0 %v3491_v6 }
  0x2d   :  { %469 = vmatpush.msrb.mxu3 %v3491_v6 }
  0x2e   :  { %394 = vmatpush.msrb.mxu2 %v3503_v9  ;;  %546 = vmatpush.msrb.mxu0 %v3503_v9 }
  0x2f   :  { %470 = vmatpush.msrb.mxu3 %v3503_v9 }
  0x30   :  { %687 = vmatpush.msra.mxu2 %v3482_v3 }
  0x32   :  { %688 = vmatpush.msra.mxu2 %v3484_v4 }
  0x34   :  { %689 = vmatpush.msra.mxu2 %v3491_v6 }
  0x36   :  { %690 = vmatpush.msra.mxu2 %v3503_v9 }
  0xa3   :  { %v199_v13 = vpop.f32.mrf.mxu0 }
  0xa4   :  { %v200_v14 = vadd.f32 %v199_v13, %v171_v12 }
  0xa6   :  { %228 = vst [vmem:[#allocation4 + $0x10] sm:$0xff] %v200_v14 }
  0xaa   :  { %v253_v15 = vpop.f32.mrf.mxu2 }
  0xad   :  { %v232_v16 = vld [vmem:[#allocation4 + $0x10] sm:$0x3]  ;;  %v300_v43 = vld [vmem:[#allocation4 + $0x10] sm:$0xc] }
  0xae   :  { %v256_v17 = vadd.f32 %v253_v15, %v232_v16  ;;  %v373_v16 = vld [vmem:[#allocation4 + $0x10] sm:$0x30] }
  0xb0   :  { %2943 = vtanh.f32 %v256_v17  ;;  %v2851_v19 = vmul.f32 -1.442695, %v256_v17 }
  0xb2   :  { %2945 = vpow2.f32 %v2851_v19 }
  0xb6   :  { %v2944_v18 = vpop.eup %2943 }
  0xb7   :  { %279 = vrot.lane.b32.xlu0 %v2944_v18, %s3364_s19 }
  0xb8   :  { %v2946_v20 = vpop.eup %2945 }
  0xb9   :  { %v260_v21 = vadd.f32 1.0, %v2946_v20 }
  0xbb   :  { %2947 = vrcp.f32 %v260_v21  ;;  %v272_v27 = vand.u32 2147483648, %v260_v21  ;;  %vm266_vm2 = vweird.f32 %v260_v21  ;;  %v270_v28 = vand.u32 2147483647, %v260_v21 }
  0xbd   :  { %v273_v30 = vor.u32 1.1754944e-38, %v272_v27  ;;  %vm271_vm4 = vcmp.eq.f32.partialorder %v270_v28, 8.507059e+37 }
  0xc1   :  { %v2948_v22 = vpop.eup %2947 }
  0xc2   :  { %v262_v23 = vmul.f32 %v2948_v22, %v260_v21  ;;  %vm267_vm1 = vweird.f32 %v2948_v22 }
  0xc3   :  { %vm268_vm3 = vmor %vm266_vm2, %vm267_vm1 }
  0xc4   :  { %v263_v24 = vsub.f32 1.0, %v262_v23 }
  0xc6   :  { %v264_v25 = vmul.f32 %v2948_v22, %v263_v24 }
  0xc8   :  { %v265_v26 = vadd.f32 %v2948_v22, %v264_v25 }
  0xca   :  { %v269_v29 = vsel %vm268_vm3, %v2948_v22, %v265_v26 }
  0xcb   :  { %v274_v32 = vsel %vm271_vm4, %v273_v30, %v269_v29 }
  0xcc   :  { %v277_v34 = vmul.f32 0.0, %v274_v32 }
 0x129   :  { %v280_v31 = vpop.permute.xlu0 %279 }
 0x12a   :  { %v282_v33 = vmul.f32 %v280_v31, %v274_v32 }
 0x12c   :  { %284 = vrot.lane.b32.xlu0 %v282_v33, %s3365_s6 }
 0x19e   :  { %v285_v35 = vpop.permute.xlu0 %284 }
 0x19f   :  { %v287_v36 = vadd.f32 %v285_v35, %v277_v34 }
 0x1a1   :  { %2949 = vtanh.f32 %v287_v36  ;;  %v348_v61 = vrot.slane %v287_v36, 6 }
 0x1a7   :  { %v2950_v37 = vpop.eup %2949 }
 0x1a8   :  { %290 = vrot.lane.b32.xlu1 %v2950_v37, %s3364_s19 }
 0x21a   :  { %v291_v38 = vpop.permute.xlu1 %290 }
 0x21b   :  { %v293_v39 = vmul.f32 %v291_v38, %v274_v32 }
 0x21d   :  { %295 = vrot.lane.b32.xlu1 %v293_v39, %s3365_s6 }
 0x28f   :  { %v296_v40 = vpop.permute.xlu1 %295 }
 0x290   :  { %299 = vst.msk [vmem:[#allocation2] sm:$0x3] %vm298_vm5, %v296_v40  ;;  %2852 = vmatmul.msk.f32.vlgmr.msra.gmra.mxu3 %vm175_vm0, %v296_v40 }
 0x291   :  { %762 = vmatpush.msra.mxu3 %v3482_v3 }
 0x293   :  { %763 = vmatpush.msra.mxu3 %v3484_v4 }
 0x295   :  { %764 = vmatpush.msra.mxu3 %v3491_v6 }
 0x297   :  { %765 = vmatpush.msra.mxu3 %v3503_v9 }
 0x313   :  { %v320_v41 = vpop.f32.mrf.mxu3 }
 0x314   :  { %v324_v42 = vrot.slane %v320_v41, 6 }
 0x316   :  { %v326_v44 = vadd.f32 %v324_v42, %v300_v43 }
 0x318   :  { %2951 = vtanh.f32 %v326_v44  ;;  %v2853_v46 = vmul.f32 -1.442695, %v326_v44 }
 0x31a   :  { %2953 = vpow2.f32 %v2853_v46 }
 0x31e   :  { %v2952_v45 = vpop.eup %2951 }
 0x31f   :  { %352 = vrot.lane.b32.xlu2 %v2952_v45, %s3364_s19  ;;  %v449_v45 = vld [vmem:[#allocation4 + $0x10] sm:$0xc0] }
 0x320   :  { %v2954_v47 = vpop.eup %2953 }
 0x321   :  { %v330_v48 = vadd.f32 1.0, %v2954_v47 }
 0x323   :  { %2955 = vrcp.f32 %v330_v48  ;;  %v342_v54 = vand.u32 2147483648, %v330_v48  ;;  %vm336_vm7 = vweird.f32 %v330_v48  ;;  %v340_v55 = vand.u32 2147483647, %v330_v48 }
 0x325   :  { %v343_v57 = vor.u32 1.1754944e-38, %v342_v54  ;;  %vm341_vm9 = vcmp.eq.f32.partialorder %v340_v55, 8.507059e+37 }
 0x329   :  { %v2956_v49 = vpop.eup %2955 }
 0x32a   :  { %v332_v50 = vmul.f32 %v2956_v49, %v330_v48  ;;  %vm337_vm6 = vweird.f32 %v2956_v49 }
 0x32b   :  { %vm338_vm8 = vmor %vm336_vm7, %vm337_vm6 }
 0x32c   :  { %v333_v51 = vsub.f32 1.0, %v332_v50 }
 0x32e   :  { %v334_v52 = vmul.f32 %v2956_v49, %v333_v51 }
 0x330   :  { %v335_v53 = vadd.f32 %v2956_v49, %v334_v52 }
 0x332   :  { %v339_v56 = vsel %vm338_vm8, %v2956_v49, %v335_v53 }
 0x333   :  { %v344_v59 = vsel %vm341_vm9, %v343_v57, %v339_v56 }
 0x334   :  { %v350_v62 = vmul.f32 %v348_v61, %v344_v59 }
 0x379   :  { %v353_v58 = vpop.permute.xlu2 %352 }
 0x37a   :  { %v355_v60 = vmul.f32 %v353_v58, %v344_v59 }
 0x37c   :  { %357 = vrot.lane.b32.xlu2 %v355_v60, %s3365_s6 }
 0x3d6   :  { %v358_v63 = vpop.permute.xlu2 %357 }
 0x3d7   :  { %v360_v0 = vadd.f32 %v358_v63, %v350_v62 }
 0x3d9   :  { %2957 = vtanh.f32 %v360_v0  ;;  %v424_v34 = vrot.slane %v360_v0, 6 }
 0x3df   :  { %v2958_v1 = vpop.eup %2957 }
 0x3e0   :  { %363 = vrot.lane.b32.xlu0 %v2958_v1, %s3364_s19 }
 0x452   :  { %v364_v2 = vpop.permute.xlu0 %363 }
 0x453   :  { %v3549_v5 = vmul.f32 %v364_v2, %v344_v59 }
 0x455   :  { %v374_v7 = vrot.slane %v3549_v5, 2 }
 0x457   :  { %375 = vrot.lane.b32.xlu1 %v374_v7, %s3365_s6 }
 0x4c9   :  { %v376_v13 = vpop.permute.xlu1 %375 }
 0x4ca   :  { %2854 = vmatmul.msk.f32.vlgmr.msrb.gmra.mxu2 %vm175_vm0, %v376_v13  ;;  %v160_v13 = vld [vmem:[%s4092_s0 + $0x8] sm:$0xff] }
 0x4cb   :  { %2848 = vmatmul.msk.f32.vlgmr.msra.gmra.mxu1 %vm175_vm0, %v160_v13 }
 0x54d   :  { %v396_v14 = vpop.f32.mrf.mxu2 }
 0x54e   :  { %v400_v15 = vrot.slane %v396_v14, 4  ;;  %v168_v14 = vld [vmem:[%s4095_s3 + $0x38] sm:$0xff] }
 0x54f   :  { %217 = vmatpush.msrb.mxu1 %v168_v14 }
 0x550   :  { %v402_v17 = vadd.f32 %v400_v15, %v373_v16  ;;  %v166_v15 = vld [vmem:[%s4095_s3 + $0x28] sm:$0xff]  ;;  %v164_v16 = vld [vmem:[%s4095_s3 + $0x18] sm:$0xff] }
 0x551   :  { %218 = vmatpush.msrb.mxu1 %v166_v15 }
 0x552   :  { %2959 = vtanh.f32 %v402_v17  ;;  %v2855_v19 = vmul.f32 -1.442695, %v402_v17  ;;  %v162_v17 = vld [vmem:[%s4095_s3 + $0x8] sm:$0xff] }
 0x553   :  { %219 = vmatpush.msrb.mxu1 %v164_v16 }
 0x554   :  { %2961 = vpow2.f32 %v2855_v19 }
 0x555   :  { %220 = vmatpush.msrb.mxu1 %v162_v17 }
 0x556   :  { %2849 = vmatmul.msk.f32.vlgmr.msrb.gmra.mxu1 %vm175_vm0, %v3501_v8  ;;  %v3597_v8 = vld [vmem:[#allocation8 + $0x10] sm:$0xff] }
 0x557   :  { %612 = vmatpush.msra.mxu1 %v3482_v3  ;;  %v3601_v3 = vld [vmem:[#allocation8 + $0x8] sm:$0xff] }
 0x558   :  { %v2960_v18 = vpop.eup %2959 }
 0x559   :  { %428 = vrot.lane.b32.xlu2 %v2960_v18, %s3364_s19  ;;  %613 = vmatpush.msra.mxu1 %v3484_v4  ;;  %v3607_v4 = vld [vmem:[#allocation8] sm:$0xff] }
 0x55a   :  { %v2962_v20 = vpop.eup %2961 }
 0x55b   :  { %v406_v21 = vadd.f32 1.0, %v2962_v20  ;;  %614 = vmatpush.msra.mxu1 %v3491_v6  ;;  %v202_v6 = vpop.f32.mrf.mxu1 }
 0x55d   :  { %2963 = vrcp.f32 %v406_v21  ;;  %v418_v27 = vand.u32 2147483648, %v406_v21  ;;  %vm412_vm11 = vweird.f32 %v406_v21  ;;  %v416_v28 = vand.u32 2147483647, %v406_v21  ;;  %615 = vmatpush.msra.mxu1 %v3503_v9 }
 0x55e   :  { %2850 = vmatmul.msk.f32.gmra.mxu1 %vm175_vm0, %v160_v13  ;;  %v203_v9 = vadd.f32 %v202_v6, %v171_v12 }
 0x55f   :  { %v419_v30 = vor.u32 1.1754944e-38, %v418_v27  ;;  %vm417_vm13 = vcmp.eq.f32.partialorder %v416_v28, 8.507059e+37 }
 0x560   :  { %230 = vst [vmem:[#allocation4 + $0x18] sm:$0xff] %v203_v9 }
 0x563   :  { %v2964_v22 = vpop.eup %2963 }
 0x564   :  { %v408_v23 = vmul.f32 %v2964_v22, %v406_v21  ;;  %vm413_vm10 = vweird.f32 %v2964_v22  ;;  %v3595_v21 = vld [vmem:[#allocation8 + $0x18] sm:$0xff] }
 0x565   :  { %vm414_vm12 = vmor %vm412_vm11, %vm413_vm10  ;;  %832 = vmatpush.msra.mxu0 %v3595_v21  ;;  %904 = vmatpush.msrb.mxu1 %v3595_v21 }
 0x566   :  { %v409_v24 = vsub.f32 1.0, %v408_v23  ;;  %979 = vmatpush.msrb.mxu2 %v3595_v21 }
 0x567   :  { %833 = vmatpush.msra.mxu0 %v3597_v8  ;;  %905 = vmatpush.msrb.mxu1 %v3597_v8 }
 0x568   :  { %v410_v25 = vmul.f32 %v2964_v22, %v409_v24  ;;  %980 = vmatpush.msrb.mxu2 %v3597_v8 }
 0x569   :  { %834 = vmatpush.msra.mxu0 %v3601_v3  ;;  %906 = vmatpush.msrb.mxu1 %v3601_v3 }
 0x56a   :  { %v411_v26 = vadd.f32 %v2964_v22, %v410_v25  ;;  %981 = vmatpush.msrb.mxu2 %v3601_v3 }
 0x56b   :  { %835 = vmatpush.msra.mxu0 %v3607_v4  ;;  %907 = vmatpush.msrb.mxu1 %v3607_v4 }
 0x56c   :  { %v415_v29 = vsel %vm414_vm12, %v2964_v22, %v411_v26  ;;  %982 = vmatpush.msrb.mxu2 %v3607_v4  ;;  %v172_v22 = vperm.slane %v3531_v11, 1  ;;  %v525_v11 = vld [vmem:[#allocation4 + $0x18] sm:$0x3] }
 0x56d   :  { %v420_v32 = vsel %vm417_vm13, %v419_v30, %v415_v29 }
 0x56e   :  { %v426_v35 = vmul.f32 %v424_v34, %v420_v32 }
 0x5b3   :  { %v429_v31 = vpop.permute.xlu2 %428 }
 0x5b4   :  { %v431_v33 = vmul.f32 %v429_v31, %v420_v32 }
 0x5b6   :  { %433 = vrot.lane.b32.xlu0 %v431_v33, %s3365_s6 }
 0x5d3   :  { %v222_v23 = vpop.f32.mrf.mxu1 }
 0x5d4   :  { %v223_v24 = vadd.f32 %v222_v23, %v172_v22 }
 0x5d6   :  { %229 = vst [vmem:[#allocation4] sm:$0xff] %v223_v24 }
 0x5db   :  { %v225_v25 = vpop.f32.mrf.mxu1 }
 0x5dc   :  { %v226_v26 = vadd.f32 %v225_v25, %v172_v22 }
 0x5de   :  { %231 = vst [vmem:[#allocation4 + $0x8] sm:$0xff] %v226_v26 }
 0x5e5   :  { %v819_v29 = vld [vmem:[#allocation4 + $0x8] sm:$0xc0] }
 0x628   :  { %v434_v36 = vpop.permute.xlu0 %433 }
 0x629   :  { %v436_v37 = vadd.f32 %v434_v36, %v426_v35 }
 0x62b   :  { %2965 = vtanh.f32 %v436_v37  ;;  %v500_v63 = vrot.slane %v436_v37, 6 }
 0x631   :  { %v2966_v38 = vpop.eup %2965 }
 0x632   :  { %439 = vrot.lane.b32.xlu1 %v2966_v38, %s3364_s19 }
 0x6a4   :  { %v440_v39 = vpop.permute.xlu1 %439 }
 0x6a5   :  { %v3557_v40 = vmul.f32 %v440_v39, %v420_v32 }
 0x6a7   :  { %v450_v41 = vrot.slane %v3557_v40, 4 }
 0x6a9   :  { %451 = vrot.lane.b32.xlu2 %v450_v41, %s3365_s6 }
 0x703   :  { %v452_v42 = vpop.permute.xlu2 %451 }
 0x704   :  { %2856 = vmatmul.msk.f32.vlgmr.msrb.gmra.mxu3 %vm175_vm0, %v452_v42 }
 0x705   :  { %1054 = vmatpush.msrb.mxu3 %v3595_v21 }
 0x707   :  { %1055 = vmatpush.msrb.mxu3 %v3597_v8 }
 0x709   :  { %1056 = vmatpush.msrb.mxu3 %v3601_v3 }
 0x70b   :  { %1057 = vmatpush.msrb.mxu3 %v3607_v4 }
 0x787   :  { %v472_v43 = vpop.f32.mrf.mxu3 }
 0x788   :  { %v476_v44 = vrot.slane %v472_v43, 2 }
 0x78a   :  { %v478_v46 = vadd.f32 %v476_v44, %v449_v45 }
 0x78c   :  { %2967 = vtanh.f32 %v478_v46  ;;  %v2857_v48 = vmul.f32 -1.442695, %v478_v46 }
 0x78e   :  { %2969 = vpow2.f32 %v2857_v48 }
 0x792   :  { %v2968_v47 = vpop.eup %2967 }
 0x793   :  { %504 = vrot.lane.b32.xlu0 %v2968_v47, %s3364_s19 }
 0x794   :  { %v2970_v49 = vpop.eup %2969 }
 0x795   :  { %v482_v50 = vadd.f32 1.0, %v2970_v49 }
 0x797   :  { %2971 = vrcp.f32 %v482_v50  ;;  %v494_v56 = vand.u32 2147483648, %v482_v50  ;;  %vm488_vm15 = vweird.f32 %v482_v50  ;;  %v492_v57 = vand.u32 2147483647, %v482_v50 }
 0x799   :  { %v495_v59 = vor.u32 1.1754944e-38, %v494_v56  ;;  %vm493_vm2 = vcmp.eq.f32.partialorder %v492_v57, 8.507059e+37 }
 0x79d   :  { %v2972_v51 = vpop.eup %2971 }
 0x79e   :  { %v484_v52 = vmul.f32 %v2972_v51, %v482_v50  ;;  %vm489_vm14 = vweird.f32 %v2972_v51 }
 0x79f   :  { %vm490_vm1 = vmor %vm488_vm15, %vm489_vm14 }
 0x7a0   :  { %v485_v53 = vsub.f32 1.0, %v484_v52 }
 0x7a2   :  { %v486_v54 = vmul.f32 %v2972_v51, %v485_v53 }
 0x7a4   :  { %v487_v55 = vadd.f32 %v2972_v51, %v486_v54 }
 0x7a6   :  { %v491_v58 = vsel %vm490_vm1, %v2972_v51, %v487_v55 }
 0x7a7   :  { %v496_v61 = vsel %vm493_vm2, %v495_v59, %v491_v58 }
 0x7a8   :  { %v502_v0 = vmul.f32 %v500_v63, %v496_v61 }
 0x805   :  { %v505_v60 = vpop.permute.xlu0 %504 }
 0x806   :  { %v507_v62 = vmul.f32 %v505_v60, %v496_v61 }
 0x808   :  { %509 = vrot.lane.b32.xlu1 %v507_v62, %s3365_s6 }
 0x87a   :  { %v510_v1 = vpop.permute.xlu1 %509 }
 0x87b   :  { %v3564_v2 = vadd.f32 %v510_v1, %v502_v0 }
 0x87d   :  { %2973 = vtanh.f32 %v3564_v2  ;;  %v573_v16 = vrot.slane %v3564_v2, 6 }
 0x883   :  { %v2974_v7 = vpop.eup %2973 }
 0x884   :  { %515 = vrot.lane.b32.xlu2 %v2974_v7, %s3364_s19 }
 0x8de   :  { %v516_v18 = vpop.permute.xlu2 %515 }
 0x8df   :  { %v3591_v19 = vmul.f32 %v516_v18, %v496_v61 }
 0x8e1   :  { %v526_v20 = vrot.slane %v3591_v19, 6 }
 0x8e3   :  { %527 = vrot.lane.b32.xlu0 %v526_v20, %s3365_s6 }
 0x955   :  { %v528_v27 = vpop.permute.xlu0 %527 }
 0x956   :  { %2858 = vmatmul.msk.f32.vlgmr.msrb.gmra.mxu0 %vm175_vm0, %v528_v27 }
 0x957   :  { %1123 = vmatpush.msrb.mxu0 %v3595_v21 }
 0x959   :  { %1124 = vmatpush.msrb.mxu0 %v3597_v8 }
 0x95b   :  { %1125 = vmatpush.msrb.mxu0 %v3601_v3 }
 0x95d   :  { %1126 = vmatpush.msrb.mxu0 %v3607_v4 }
 0x95e   :  { %836 = vmatmul.f32.vlgmr.msra.gmra.mxu0 %v3363_v10 }
 0x9d3   :  { %v548_v12 = vpop.f32.mrf.mxu0 }
 0x9d4   :  { %v551_v28 = vadd.f32 %v548_v12, %v525_v11  ;;  %v597_v12 = vld [vmem:[#allocation4 + $0x18] sm:$0xc] }
 0x9d6   :  { %2975 = vtanh.f32 %v551_v28  ;;  %v2859_v38 = vmul.f32 -1.442695, %v551_v28 }
 0x9db   :  { %v837_v30 = vpop.f32.mrf.mxu0 }
 0x9dc   :  { %v2976_v31 = vpop.eup %2975  ;;  %v841_v32 = vrot.slane %v837_v30, 2 }
 0x9dd   :  { %577 = vrot.lane.b32.xlu1 %v2976_v31, %s3364_s19  ;;  %v886_v31 = vld [vmem:[#allocation4 + $0x8] sm:$0x30] }
 0x9de   :  { %v843_v33 = vadd.f32 %v841_v32, %v819_v29 }
 0x9e0   :  { %2977 = vtanh.f32 %v843_v33  ;;  %v2866_v35 = vmul.f32 -1.442695, %v843_v33 }
 0x9e2   :  { %2979 = vpow2.f32 %v2866_v35 }
 0x9e6   :  { %v2978_v34 = vpop.eup %2977 }
 0x9e7   :  { %866 = vrot.lane.b32.xlu2 %v2978_v34, %s3364_s19 }
 0x9e8   :  { %v2980_v36 = vpop.eup %2979 }
 0x9e9   :  { %v847_v37 = vadd.f32 1.0, %v2980_v36 }
 0x9eb   :  { %2981 = vrcp.f32 %v847_v37  ;;  %vm853_vm3 = vweird.f32 %v847_v37  ;;  %v859_v47 = vand.u32 2147483648, %v847_v37  ;;  %v857_v49 = vand.u32 2147483647, %v847_v37 }
 0x9ec   :  { %2983 = vpow2.f32 %v2859_v38 }
 0x9ed   :  { %v860_v51 = vor.u32 1.1754944e-38, %v859_v47  ;;  %vm858_vm7 = vcmp.eq.f32.partialorder %v857_v49, 8.507059e+37 }
 0x9f1   :  { %v2982_v39 = vpop.eup %2981 }
 0x9f2   :  { %v2984_v41 = vpop.eup %2983  ;;  %v849_v42 = vmul.f32 %v2982_v39, %v847_v37  ;;  %vm854_vm4 = vweird.f32 %v2982_v39 }
 0x9f3   :  { %v555_v43 = vadd.f32 1.0, %v2984_v41  ;;  %vm855_vm6 = vmor %vm853_vm3, %vm854_vm4 }
 0x9f4   :  { %v850_v44 = vsub.f32 1.0, %v849_v42 }
 0x9f5   :  { %2985 = vrcp.f32 %v555_v43  ;;  %v567_v59 = vand.u32 2147483648, %v555_v43  ;;  %vm561_vm9 = vweird.f32 %v555_v43  ;;  %v565_v60 = vand.u32 2147483647, %v555_v43 }
 0x9f6   :  { %v851_v45 = vmul.f32 %v2982_v39, %v850_v44 }
 0x9f7   :  { %v568_v62 = vor.u32 1.1754944e-38, %v567_v59  ;;  %vm566_vm11 = vcmp.eq.f32.partialorder %v565_v60, 8.507059e+37 }
 0x9f8   :  { %v852_v48 = vadd.f32 %v2982_v39, %v851_v45 }
 0x9fa   :  { %v856_v52 = vsel %vm855_vm6, %v2982_v39, %v852_v48 }
 0x9fb   :  { %v2986_v46 = vpop.eup %2985  ;;  %v861_v55 = vsel %vm858_vm7, %v860_v51, %v856_v52 }
 0x9fc   :  { %v557_v50 = vmul.f32 %v2986_v46, %v555_v43  ;;  %vm562_vm8 = vweird.f32 %v2986_v46  ;;  %v864_v7 = vmul.f32 0.0, %v861_v55 }
 0x9fd   :  { %vm563_vm10 = vmor %vm561_vm9, %vm562_vm8 }
 0x9fe   :  { %v558_v53 = vsub.f32 1.0, %v557_v50 }
 0xa00   :  { %v559_v57 = vmul.f32 %v2986_v46, %v558_v53 }
 0xa02   :  { %v560_v58 = vadd.f32 %v2986_v46, %v559_v57 }
 0xa04   :  { %v564_v61 = vsel %vm563_vm10, %v2986_v46, %v560_v58 }
 0xa05   :  { %v569_v0 = vsel %vm566_vm11, %v568_v62, %v564_v61 }
 0xa06   :  { %v575_v17 = vmul.f32 %v573_v16, %v569_v0 }
 0xa41   :  { %v867_v54 = vpop.permute.xlu2 %866 }
 0xa42   :  { %v869_v56 = vmul.f32 %v867_v54, %v861_v55 }
 0xa44   :  { %871 = vrot.lane.b32.xlu1 %v869_v56, %s3365_s6 }
 0xa4f   :  { %v578_v63 = vpop.permute.xlu1 %577 }
 0xa50   :  { %v580_v1 = vmul.f32 %v578_v63, %v569_v0 }
 0xa52   :  { %582 = vrot.lane.b32.xlu0 %v580_v1, %s3365_s6 }
 0xab6   :  { %v872_v13 = vpop.permute.xlu1 %871 }
 0xab7   :  { %v3632_v14 = vadd.f32 %v872_v13, %v864_v7 }
 0xab9   :  { %2987 = vtanh.f32 %v3632_v14 }
 0xabf   :  { %v2988_v15 = vpop.eup %2987 }
 0xac0   :  { %877 = vrot.lane.b32.xlu0 %v2988_v15, %s3364_s19 }
 0xac4   :  { %v583_v18 = vpop.permute.xlu0 %582 }
 0xac5   :  { %v3637_v20 = vadd.f32 %v583_v18, %v575_v17  ;;  %v937_v18 = vrot.slane %v3632_v14, 2 }
 0xac7   :  { %2989 = vtanh.f32 %v3637_v20  ;;  %v645_v7 = vrot.slane %v3637_v20, 6 }
 0xacd   :  { %v2990_v6 = vpop.eup %2989 }
 0xace   :  { %588 = vrot.lane.b32.xlu2 %v2990_v6, %s3364_s19 }
 0xb28   :  { %v589_v9 = vpop.permute.xlu2 %588 }
 0xb29   :  { %v591_v22 = vmul.f32 %v589_v9, %v569_v0 }
 0xb2b   :  { %593 = vrot.lane.b32.xlu1 %v591_v22, %s3365_s6 }
 0xb32   :  { %v878_v23 = vpop.permute.xlu0 %877 }
 0xb33   :  { %v3642_v24 = vmul.f32 %v878_v23, %v861_v55 }
 0xb35   :  { %v887_v25 = vrot.slane %v3642_v24, 6 }
 0xb37   :  { %888 = vrot.lane.b32.xlu2 %v887_v25, %s3365_s6 }
 0xb91   :  { %v889_v26 = vpop.permute.xlu2 %888 }
 0xb9d   :  { %v594_v2 = vpop.permute.xlu1 %593 }
 0xb9e   :  { %596 = vst.msk [vmem:[#allocation2 + $0x8] sm:$0x3] %vm298_vm5, %v594_v2  ;;  %2860 = vmatmul.msk.f32.vlgmr.msra.gmra.mxu1 %vm175_vm0, %v594_v2 }
 0xb9f   :  { %1198 = vmatpush.msra.mxu1 %v3595_v21 }
 0xba1   :  { %1199 = vmatpush.msra.mxu1 %v3597_v8 }
 0xba3   :  { %1200 = vmatpush.msra.mxu1 %v3601_v3 }
 0xba5   :  { %1201 = vmatpush.msra.mxu1 %v3607_v4 }
 0xba6   :  { %2867 = vmatmul.msk.f32.vlgmr.msrb.gmra.mxu1 %vm175_vm0, %v889_v26 }
 0xc1b   :  { %v617_v27 = vpop.f32.mrf.mxu1 }
 0xc1c   :  { %v621_v11 = vrot.slane %v617_v27, 6 }
 0xc1e   :  { %v623_v28 = vadd.f32 %v621_v11, %v597_v12 }
 0xc20   :  { %2991 = vtanh.f32 %v623_v28  ;;  %v2861_v35 = vmul.f32 -1.442695, %v623_v28 }
 0xc23   :  { %v909_v29 = vpop.f32.mrf.mxu1 }
 0xc24   :  { %v913_v30 = vrot.slane %v909_v29, 4 }
 0xc26   :  { %v2992_v32 = vpop.eup %2991  ;;  %v915_v33 = vadd.f32 %v913_v30, %v886_v31  ;;  %v669_v30 = vld [vmem:[#allocation4 + $0x18] sm:$0x30] }
 0xc27   :  { %649 = vrot.lane.b32.xlu0 %v2992_v32, %s3364_s19 }
 0xc28   :  { %2993 = vtanh.f32 %v915_v33  ;;  %v2868_v36 = vmul.f32 -1.442695, %v915_v33 }
 0xc29   :  { %2995 = vpow2.f32 %v2861_v35 }
 0xc2a   :  { %2997 = vpow2.f32 %v2868_v36 }
 0xc2e   :  { %v2994_v34 = vpop.eup %2993 }
 0xc2f   :  { %941 = vrot.lane.b32.xlu1 %v2994_v34, %s3364_s19  ;;  %v2996_v37 = vpop.eup %2995  ;;  %v961_v34 = vld [vmem:[#allocation4 + $0x8] sm:$0xc] }
 0xc30   :  { %v627_v38 = vadd.f32 1.0, %v2996_v37  ;;  %v2998_v39 = vpop.eup %2997 }
 0xc31   :  { %v919_v41 = vadd.f32 1.0, %v2998_v39 }
 0xc32   :  { %2999 = vrcp.f32 %v627_v38  ;;  %v639_v50 = vand.u32 2147483648, %v627_v38  ;;  %vm633_vm13 = vweird.f32 %v627_v38  ;;  %v637_v51 = vand.u32 2147483647, %v627_v38 }
 0xc33   :  { %3001 = vrcp.f32 %v919_v41  ;;  %v931_v59 = vand.u32 2147483648, %v919_v41  ;;  %vm925_vm2 = vweird.f32 %v919_v41  ;;  %v929_v60 = vand.u32 2147483647, %v919_v41 }
 0xc34   :  { %v640_v54 = vor.u32 1.1754944e-38, %v639_v50  ;;  %vm638_vm15 = vcmp.eq.f32.partialorder %v637_v51, 8.507059e+37 }
 0xc35   :  { %v932_v62 = vor.u32 1.1754944e-38, %v931_v59  ;;  %vm930_vm4 = vcmp.eq.f32.partialorder %v929_v60, 8.507059e+37 }
 0xc38   :  { %v3000_v42 = vpop.eup %2999 }
 0xc39   :  { %v629_v43 = vmul.f32 %v3000_v42, %v627_v38  ;;  %v3002_v45 = vpop.eup %3001  ;;  %vm634_vm12 = vweird.f32 %v3000_v42 }
 0xc3a   :  { %v921_v47 = vmul.f32 %v3002_v45, %v919_v41  ;;  %vm635_vm14 = vmor %vm633_vm13, %vm634_vm12  ;;  %vm926_vm1 = vweird.f32 %v3002_v45 }
 0xc3b   :  { %v630_v44 = vsub.f32 1.0, %v629_v43  ;;  %vm927_vm3 = vmor %vm925_vm2, %vm926_vm1 }
 0xc3c   :  { %v922_v49 = vsub.f32 1.0, %v921_v47 }
 0xc3d   :  { %v631_v46 = vmul.f32 %v3000_v42, %v630_v44 }
 0xc3e   :  { %v923_v53 = vmul.f32 %v3002_v45, %v922_v49 }
 0xc3f   :  { %v632_v48 = vadd.f32 %v3000_v42, %v631_v46 }
 0xc40   :  { %v924_v58 = vadd.f32 %v3002_v45, %v923_v53 }
 0xc41   :  { %v636_v52 = vsel %vm635_vm14, %v3000_v42, %v632_v48 }
 0xc42   :  { %v641_v56 = vsel %vm638_vm15, %v640_v54, %v636_v52  ;;  %v928_v61 = vsel %vm927_vm3, %v3002_v45, %v924_v58 }
 0xc43   :  { %v933_v0 = vsel %vm930_vm4, %v932_v62, %v928_v61  ;;  %v647_v13 = vmul.f32 %v645_v7, %v641_v56 }
 0xc44   :  { %v939_v6 = vmul.f32 %v937_v18, %v933_v0 }
 0xc99   :  { %v650_v55 = vpop.permute.xlu0 %649 }
 0xc9a   :  { %v652_v57 = vmul.f32 %v650_v55, %v641_v56 }
 0xc9c   :  { %654 = vrot.lane.b32.xlu2 %v652_v57, %s3365_s6 }
 0xca1   :  { %v942_v63 = vpop.permute.xlu1 %941 }
 0xca2   :  { %v944_v1 = vmul.f32 %v942_v63, %v933_v0 }
 0xca4   :  { %946 = vrot.lane.b32.xlu0 %v944_v1, %s3365_s6 }
 0xcf6   :  { %v655_v15 = vpop.permute.xlu2 %654 }
 0xcf7   :  { %v3658_v16 = vadd.f32 %v655_v15, %v647_v13 }
 0xcf9   :  { %3003 = vtanh.f32 %v3658_v16 }
 0xcff   :  { %v3004_v17 = vpop.eup %3003 }
 0xd00   :  { %660 = vrot.lane.b32.xlu1 %v3004_v17, %s3364_s19  ;;  %v720_v17 = vrot.slane %v3658_v16, 6 }
 0xd16   :  { %v947_v9 = vpop.permute.xlu0 %946 }
 0xd17   :  { %v3663_v22 = vadd.f32 %v947_v9, %v939_v6 }
 0xd19   :  { %3005 = vtanh.f32 %v3663_v22 }
 0xd1f   :  { %v3006_v23 = vpop.eup %3005 }
 0xd20   :  { %952 = vrot.lane.b32.xlu2 %v3006_v23, %s3364_s19  ;;  %v1012_v23 = vrot.slane %v3663_v22, 2 }
 0xd72   :  { %v661_v20 = vpop.permute.xlu1 %660 }
 0xd73   :  { %v3667_v25 = vmul.f32 %v661_v20, %v641_v56 }
 0xd75   :  { %v670_v2 = vrot.slane %v3667_v25, 2 }
 0xd77   :  { %671 = vrot.lane.b32.xlu0 %v670_v2, %s3365_s6 }
 0xd7a   :  { %v953_v26 = vpop.permute.xlu2 %952 }
 0xd7b   :  { %v3671_v27 = vmul.f32 %v953_v26, %v933_v0 }
 0xd7d   :  { %v962_v14 = vrot.slane %v3671_v27, 4 }
 0xd7f   :  { %963 = vrot.lane.b32.xlu1 %v962_v14, %s3365_s6 }
 0xde9   :  { %v672_v11 = vpop.permute.xlu0 %671 }
 0xdea   :  { %2862 = vmatmul.msk.f32.vlgmr.msra.gmra.mxu2 %vm175_vm0, %v672_v11 }
 0xdeb   :  { %1273 = vmatpush.msra.mxu2 %v3595_v21 }
 0xded   :  { %1274 = vmatpush.msra.mxu2 %v3597_v8 }
 0xdef   :  { %1275 = vmatpush.msra.mxu2 %v3601_v3 }
 0xdf1   :  { %v964_v12 = vpop.permute.xlu1 %963  ;;  %1276 = vmatpush.msra.mxu2 %v3607_v4 }
 0xdf2   :  { %2869 = vmatmul.msk.f32.vlgmr.msrb.gmra.mxu2 %vm175_vm0, %v964_v12 }
 0xe6d   :  { %v692_v28 = vpop.f32.mrf.mxu2 }
 0xe6e   :  { %v696_v29 = vrot.slane %v692_v28, 4 }
 0xe70   :  { %v698_v31 = vadd.f32 %v696_v29, %v669_v30 }
 0xe72   :  { %3007 = vtanh.f32 %v698_v31  ;;  %v2863_v38 = vmul.f32 -1.442695, %v698_v31 }
 0xe75   :  { %v984_v32 = vpop.f32.mrf.mxu2 }
 0xe76   :  { %v988_v33 = vrot.slane %v984_v32, 6 }
 0xe78   :  { %v3008_v35 = vpop.eup %3007  ;;  %v990_v36 = vadd.f32 %v988_v33, %v961_v34  ;;  %v1036_v34 = vld [vmem:[#allocation4 + $0x8] sm:$0x3] }
 0xe79   :  { %724 = vrot.lane.b32.xlu2 %v3008_v35, %s3364_s19 }
 0xe7a   :  { %3009 = vtanh.f32 %v990_v36  ;;  %v2870_v45 = vmul.f32 -1.442695, %v990_v36 }
 0xe7b   :  { %3011 = vpow2.f32 %v2863_v38 }
 0xe80   :  { %v3010_v37 = vpop.eup %3009 }
 0xe81   :  { %1016 = vrot.lane.b32.xlu0 %v3010_v37, %s3364_s19  ;;  %v3012_v39 = vpop.eup %3011 }
 0xe82   :  { %v702_v41 = vadd.f32 1.0, %v3012_v39 }
 0xe84   :  { %3013 = vrcp.f32 %v702_v41  ;;  %v714_v48 = vand.u32 2147483648, %v702_v41  ;;  %vm708_vm7 = vweird.f32 %v702_v41  ;;  %v712_v49 = vand.u32 2147483647, %v702_v41 }
 0xe85   :  { %3015 = vpow2.f32 %v2870_v45 }
 0xe86   :  { %v715_v52 = vor.u32 1.1754944e-38, %v714_v48  ;;  %vm713_vm9 = vcmp.eq.f32.partialorder %v712_v49, 8.507059e+37 }
 0xe8a   :  { %v3014_v42 = vpop.eup %3013 }
 0xe8b   :  { %v704_v43 = vmul.f32 %v3014_v42, %v702_v41  ;;  %vm709_vm6 = vweird.f32 %v3014_v42  ;;  %v3016_v50 = vpop.eup %3015 }
 0xe8c   :  { %vm710_vm8 = vmor %vm708_vm7, %vm709_vm6  ;;  %v994_v53 = vadd.f32 1.0, %v3016_v50 }
 0xe8d   :  { %v705_v44 = vsub.f32 1.0, %v704_v43 }
 0xe8e   :  { %3017 = vrcp.f32 %v994_v53  ;;  %v1006_v62 = vand.u32 2147483648, %v994_v53  ;;  %vm1000_vm11 = vweird.f32 %v994_v53  ;;  %v1004_v63 = vand.u32 2147483647, %v994_v53 }
 0xe8f   :  { %v706_v46 = vmul.f32 %v3014_v42, %v705_v44 }
 0xe90   :  { %v1007_v1 = vor.u32 1.1754944e-38, %v1006_v62  ;;  %vm1005_vm13 = vcmp.eq.f32.partialorder %v1004_v63, 8.507059e+37 }
 0xe91   :  { %v707_v47 = vadd.f32 %v3014_v42, %v706_v46 }
 0xe93   :  { %v711_v51 = vsel %vm710_vm8, %v3014_v42, %v707_v47 }
 0xe94   :  { %v716_v54 = vsel %vm713_vm9, %v715_v52, %v711_v51  ;;  %v3018_v57 = vpop.eup %3017 }
 0xe95   :  { %v996_v58 = vmul.f32 %v3018_v57, %v994_v53  ;;  %vm1001_vm10 = vweird.f32 %v3018_v57  ;;  %v722_v18 = vmul.f32 %v720_v17, %v716_v54 }
 0xe96   :  { %vm1002_vm12 = vmor %vm1000_vm11, %vm1001_vm10 }
 0xe97   :  { %v997_v59 = vsub.f32 1.0, %v996_v58 }
 0xe99   :  { %v998_v60 = vmul.f32 %v3018_v57, %v997_v59 }
 0xe9b   :  { %v999_v61 = vadd.f32 %v3018_v57, %v998_v60  ;;  %v1108_v60 = vld [vmem:[#allocation4] sm:$0xc0] }
 0xe9d   :  { %v1003_v0 = vsel %vm1002_vm12, %v3018_v57, %v999_v61 }
 0xe9e   :  { %v1008_v13 = vsel %vm1005_vm13, %v1007_v1, %v1003_v0 }
 0xe9f   :  { %v1014_v20 = vmul.f32 %v1012_v23, %v1008_v13 }
 0xed3   :  { %v725_v55 = vpop.permute.xlu2 %724 }
 0xed4   :  { %v727_v56 = vmul.f32 %v725_v55, %v716_v54 }
 0xed6   :  { %729 = vrot.lane.b32.xlu1 %v727_v56, %s3365_s6 }
 0xef3   :  { %v1017_v7 = vpop.permute.xlu0 %1016 }
 0xef4   :  { %v1019_v15 = vmul.f32 %v1017_v7, %v1008_v13 }
 0xef6   :  { %1021 = vrot.lane.b32.xlu2 %v1019_v15, %s3365_s6 }
 0xf48   :  { %v730_v6 = vpop.permute.xlu1 %729 }
 0xf49   :  { %v3686_v9 = vadd.f32 %v730_v6, %v722_v18 }
 0xf4b   :  { %3019 = vtanh.f32 %v3686_v9 }
 0xf50   :  { %v1022_v2 = vpop.permute.xlu2 %1021 }
 0xf51   :  { %v3020_v26 = vpop.eup %3019  ;;  %v1024_v14 = vadd.f32 %v1022_v2, %v1014_v20 }
 0xf52   :  { %735 = vrot.lane.b32.xlu0 %v3020_v26, %s3364_s19 }
 0xf53   :  { %3021 = vtanh.f32 %v1024_v14  ;;  %v1084_v50 = vrot.slane %v1024_v14, 2 }
 0xf59   :  { %v3022_v11 = vpop.eup %3021 }
 0xf5a   :  { %1027 = vrot.lane.b32.xlu1 %v3022_v11, %s3364_s19 }
 0xfc4   :  { %v736_v12 = vpop.permute.xlu0 %735 }
 0xfc5   :  { %v3692_v16 = vmul.f32 %v736_v12, %v716_v54 }
 0xfc7   :  { %v745_v28 = vrot.slane %v3692_v16, 4 }
 0xfc9   :  { %746 = vrot.lane.b32.xlu2 %v745_v28, %s3365_s6 }
 0xfcc   :  { %v1028_v29 = vpop.permute.xlu1 %1027 }
 0xfcd   :  { %v3696_v30 = vmul.f32 %v1028_v29, %v1008_v13 }
 0xfcf   :  { %v1037_v22 = vrot.slane %v3696_v30, 2 }
 0xfd1   :  { %1038 = vrot.lane.b32.xlu0 %v1037_v22, %s3365_s6 }
0x1023   :  { %v747_v31 = vpop.permute.xlu2 %746 }
0x1024   :  { %2864 = vmatmul.msk.f32.vlgmr.msra.gmra.mxu3 %vm175_vm0, %v747_v31 }
0x1025   :  { %1348 = vmatpush.msra.mxu3 %v3595_v21 }
0x1027   :  { %1349 = vmatpush.msra.mxu3 %v3597_v8 }
0x1029   :  { %1350 = vmatpush.msra.mxu3 %v3601_v3 }
0x102b   :  { %1351 = vmatpush.msra.mxu3 %v3607_v4 }
0x1043   :  { %v1039_v32 = vpop.permute.xlu0 %1038 }
0x1044   :  { %2871 = vmatmul.msk.f32.vlgmr.msrb.gmra.mxu3 %vm175_vm0, %v1039_v32 }
0x10a7   :  { %v3706_v33 = vpop.f32.mrf.mxu3 }
0x10c7   :  { %v1059_v35 = vpop.f32.mrf.mxu3 }
0x10c8   :  { %v1062_v36 = vadd.f32 %v1059_v35, %v1036_v34 }
0x10ca   :  { %3023 = vtanh.f32 %v1062_v36  ;;  %v2872_v38 = vmul.f32 -1.442695, %v1062_v36 }
0x10cc   :  { %3025 = vpow2.f32 %v2872_v38 }
0x10d0   :  { %v3024_v37 = vpop.eup %3023 }
0x10d1   :  { %1088 = vrot.lane.b32.xlu1 %v3024_v37, %s3364_s19 }
0x10d2   :  { %v3026_v21 = vpop.eup %3025 }
0x10d3   :  { %v1066_v8 = vadd.f32 1.0, %v3026_v21  ;;  %v1180_v21 = vld [vmem:[#allocation4] sm:$0x30] }
0x10d5   :  { %3027 = vrcp.f32 %v1066_v8  ;;  %v1078_v43 = vand.u32 2147483648, %v1066_v8  ;;  %vm1072_vm15 = vweird.f32 %v1066_v8  ;;  %v1076_v44 = vand.u32 2147483647, %v1066_v8 }
0x10d7   :  { %v1079_v46 = vor.u32 1.1754944e-38, %v1078_v43  ;;  %vm1077_vm2 = vcmp.eq.f32.partialorder %v1076_v44, 8.507059e+37 }
0x10db   :  { %v3028_v3 = vpop.eup %3027 }
0x10dc   :  { %v1068_v39 = vmul.f32 %v3028_v3, %v1066_v8  ;;  %vm1073_vm14 = vweird.f32 %v3028_v3 }
0x10dd   :  { %vm1074_vm1 = vmor %vm1072_vm15, %vm1073_vm14 }
0x10de   :  { %v1069_v4 = vsub.f32 1.0, %v1068_v39 }
0x10e0   :  { %v1070_v41 = vmul.f32 %v3028_v3, %v1069_v4 }
0x10e2   :  { %v1071_v42 = vadd.f32 %v3028_v3, %v1070_v41 }
0x10e4   :  { %v1075_v45 = vsel %vm1074_vm1, %v3028_v3, %v1071_v42 }
0x10e5   :  { %v1080_v48 = vsel %vm1077_vm2, %v1079_v46, %v1075_v45 }
0x10e6   :  { %v1086_v51 = vmul.f32 %v1084_v50, %v1080_v48 }
0x1143   :  { %v1089_v47 = vpop.permute.xlu1 %1088 }
0x1144   :  { %v1091_v49 = vmul.f32 %v1089_v47, %v1080_v48 }
0x1146   :  { %1093 = vrot.lane.b32.xlu2 %v1091_v49, %s3365_s6 }
0x11a0   :  { %v1094_v52 = vpop.permute.xlu2 %1093 }
0x11a1   :  { %v1096_v53 = vadd.f32 %v1094_v52, %v1086_v51 }
0x11a3   :  { %3029 = vtanh.f32 %v1096_v53  ;;  %v1156_v12 = vrot.slane %v1096_v53, 2 }
0x11a9   :  { %v3030_v54 = vpop.eup %3029 }
0x11aa   :  { %1099 = vrot.lane.b32.xlu0 %v3030_v54, %s3364_s19 }
0x121c   :  { %v1100_v55 = vpop.permute.xlu0 %1099 }
0x121d   :  { %v1102_v56 = vmul.f32 %v1100_v55, %v1080_v48 }
0x121f   :  { %1104 = vrot.lane.b32.xlu1 %v1102_v56, %s3365_s6 }
0x1291   :  { %v1105_v57 = vpop.permute.xlu1 %1104 }
0x1292   :  { %1107 = vst.msk [vmem:[#allocation3 + $0x8] sm:$0x3] %vm298_vm5, %v1105_v57  ;;  %2873 = vmatmul.msk.f32.vlgmr.msrb.gmra.mxu0 %vm175_vm0, %v1105_v57 }
0x130f   :  { %v1128_v58 = vpop.f32.mrf.mxu0 }
0x1310   :  { %v1132_v59 = vrot.slane %v1128_v58, 2 }
0x1312   :  { %v1134_v61 = vadd.f32 %v1132_v59, %v1108_v60 }
0x1314   :  { %3031 = vtanh.f32 %v1134_v61  ;;  %v2874_v63 = vmul.f32 -1.442695, %v1134_v61 }
0x1316   :  { %3033 = vpow2.f32 %v2874_v63 }
0x131a   :  { %v3032_v62 = vpop.eup %3031 }
0x131b   :  { %1160 = vrot.lane.b32.xlu2 %v3032_v62, %s3364_s19 }
0x131c   :  { %v3034_v0 = vpop.eup %3033 }
0x131d   :  { %v1138_v1 = vadd.f32 1.0, %v3034_v0 }
0x131f   :  { %3035 = vrcp.f32 %v1138_v1  ;;  %v1150_v6 = vand.u32 2147483648, %v1138_v1  ;;  %vm1144_vm4 = vweird.f32 %v1138_v1  ;;  %v1148_v23 = vand.u32 2147483647, %v1138_v1 }
0x1321   :  { %v1151_v2 = vor.u32 1.1754944e-38, %v1150_v6  ;;  %vm1149_vm7 = vcmp.eq.f32.partialorder %v1148_v23, 8.507059e+37 }
0x1325   :  { %v3036_v7 = vpop.eup %3035 }
0x1326   :  { %v1140_v13 = vmul.f32 %v3036_v7, %v1138_v1  ;;  %vm1145_vm3 = vweird.f32 %v3036_v7  ;;  %v1255_v1 = vld [vmem:[#allocation4] sm:$0xc] }
0x1327   :  { %vm1146_vm6 = vmor %vm1144_vm4, %vm1145_vm3 }
0x1328   :  { %v1141_v15 = vsub.f32 1.0, %v1140_v13 }
0x132a   :  { %v1142_v17 = vmul.f32 %v3036_v7, %v1141_v15 }
0x132c   :  { %v1143_v18 = vadd.f32 %v3036_v7, %v1142_v17 }
0x132e   :  { %v1147_v20 = vsel %vm1146_vm6, %v3036_v7, %v1143_v18  ;;  %vm371_vm6 = vcmask 257026  }
0x132f   :  { %v1152_v14 = vsel %vm1149_vm7, %v1151_v2, %v1147_v20  ;;  %vm523_vm7 = vcmask 261126  }
0x1330   :  { %v1158_v28 = vmul.f32 %v1156_v12, %v1152_v14 }
0x1375   :  { %v1161_v26 = vpop.permute.xlu2 %1160 }
0x1376   :  { %v1163_v11 = vmul.f32 %v1161_v26, %v1152_v14 }
0x1378   :  { %1165 = vrot.lane.b32.xlu0 %v1163_v11, %s3365_s6 }
0x13ea   :  { %v1166_v29 = vpop.permute.xlu0 %1165 }
0x13eb   :  { %v1168_v22 = vadd.f32 %v1166_v29, %v1158_v28 }
0x13ed   :  { %3037 = vtanh.f32 %v1168_v22  ;;  %v1231_v54 = vrot.slane %v1168_v22, 2 }
0x13f3   :  { %v3038_v31 = vpop.eup %3037 }
0x13f4   :  { %1171 = vrot.lane.b32.xlu1 %v3038_v31, %s3364_s19 }
0x1466   :  { %v1172_v32 = vpop.permute.xlu1 %1171 }
0x1467   :  { %v3717_v34 = vmul.f32 %v1172_v32, %v1152_v14 }
0x1469   :  { %v1181_v35 = vrot.slane %v3717_v34, 6 }
0x146b   :  { %1182 = vrot.lane.b32.xlu2 %v1181_v35, %s3365_s6 }
0x14c5   :  { %v1183_v36 = vpop.permute.xlu2 %1182 }
0x14c6   :  { %2875 = vmatmul.msk.f32.vlgmr.msra.gmra.mxu1 %vm175_vm0, %v1183_v36 }
0x1543   :  { %v1203_v37 = vpop.f32.mrf.mxu1 }
0x1544   :  { %v1207_v38 = vrot.slane %v1203_v37, 4 }
0x1546   :  { %v1209_v8 = vadd.f32 %v1207_v38, %v1180_v21 }
0x1548   :  { %3039 = vtanh.f32 %v1209_v8  ;;  %v2876_v39 = vmul.f32 -1.442695, %v1209_v8 }
0x154a   :  { %3041 = vpow2.f32 %v2876_v39 }
0x154e   :  { %v3040_v3 = vpop.eup %3039 }
0x154f   :  { %1235 = vrot.lane.b32.xlu0 %v3040_v3, %s3364_s19 }
0x1550   :  { %v3042_v4 = vpop.eup %3041 }
0x1551   :  { %v1213_v41 = vadd.f32 1.0, %v3042_v4  ;;  %v1330_v4 = vld [vmem:[#allocation4] sm:$0x3] }
0x1553   :  { %3043 = vrcp.f32 %v1213_v41  ;;  %v1225_v47 = vand.u32 2147483648, %v1213_v41  ;;  %vm1219_vm9 = vweird.f32 %v1213_v41  ;;  %v1223_v48 = vand.u32 2147483647, %v1213_v41 }
0x1555   :  { %v1226_v50 = vor.u32 1.1754944e-38, %v1225_v47  ;;  %vm1224_vm11 = vcmp.eq.f32.partialorder %v1223_v48, 8.507059e+37 }
0x1559   :  { %v3044_v42 = vpop.eup %3043 }
0x155a   :  { %v1215_v43 = vmul.f32 %v3044_v42, %v1213_v41  ;;  %vm1220_vm8 = vweird.f32 %v3044_v42 }
0x155b   :  { %vm1221_vm10 = vmor %vm1219_vm9, %vm1220_vm8  ;;  %vm447_vm8 = vcmask 259076  }
0x155c   :  { %v1216_v44 = vsub.f32 1.0, %v1215_v43 }
0x155e   :  { %v1217_v45 = vmul.f32 %v3044_v42, %v1216_v44 }
0x1560   :  { %v1218_v46 = vadd.f32 %v3044_v42, %v1217_v45 }
0x1562   :  { %v1222_v49 = vsel %vm1221_vm10, %v3044_v42, %v1218_v46 }
0x1563   :  { %v1227_v52 = vsel %vm1224_vm11, %v1226_v50, %v1222_v49 }
0x1564   :  { %v1233_v55 = vmul.f32 %v1231_v54, %v1227_v52 }
0x15c1   :  { %v1236_v51 = vpop.permute.xlu0 %1235 }
0x15c2   :  { %v1238_v53 = vmul.f32 %v1236_v51, %v1227_v52 }
0x15c4   :  { %1240 = vrot.lane.b32.xlu1 %v1238_v53, %s3365_s6 }
0x1636   :  { %v1241_v56 = vpop.permute.xlu1 %1240 }
0x1637   :  { %v1243_v57 = vadd.f32 %v1241_v56, %v1233_v55 }
0x1639   :  { %3045 = vtanh.f32 %v1243_v57  ;;  %v1306_v32 = vrot.slane %v1243_v57, 2 }
0x163f   :  { %v3046_v58 = vpop.eup %3045 }
0x1640   :  { %1246 = vrot.lane.b32.xlu2 %v3046_v58, %s3364_s19 }
0x169a   :  { %v1247_v59 = vpop.permute.xlu2 %1246 }
0x169b   :  { %v3725_v60 = vmul.f32 %v1247_v59, %v1227_v52 }
0x169d   :  { %v1256_v61 = vrot.slane %v3725_v60, 4 }
0x169f   :  { %1257 = vrot.lane.b32.xlu0 %v1256_v61, %s3365_s6 }
0x1711   :  { %v1258_v62 = vpop.permute.xlu0 %1257 }
0x1712   :  { %2877 = vmatmul.msk.f32.vlgmr.msra.gmra.mxu2 %vm175_vm0, %v1258_v62 }
0x1795   :  { %v1278_v63 = vpop.f32.mrf.mxu2 }
0x1796   :  { %v1282_v0 = vrot.slane %v1278_v63, 6 }
0x1798   :  { %v1284_v7 = vadd.f32 %v1282_v0, %v1255_v1 }
0x179a   :  { %3047 = vtanh.f32 %v1284_v7  ;;  %v2878_v15 = vmul.f32 -1.442695, %v1284_v7  ;;  %v1411_v7 = vld [vmem:[#allocation10 + $0x38] sm:$0xff] }
0x179b   :  { %1515 = vmatpush.msrb.mxu3 %v1411_v7 }
0x179c   :  { %3049 = vpow2.f32 %v2878_v15  ;;  %v1409_v15 = vld [vmem:[#allocation10 + $0x28] sm:$0xff] }
0x179d   :  { %1516 = vmatpush.msrb.mxu3 %v1409_v15 }
0x17a0   :  { %v3048_v13 = vpop.eup %3047 }
0x17a1   :  { %1310 = vrot.lane.b32.xlu1 %v3048_v13, %s3364_s19  ;;  %v1408_v13 = vld [vmem:[#allocation10 + $0x20] sm:$0xff] }
0x17a2   :  { %v3050_v17 = vpop.eup %3049 }
0x17a3   :  { %v1288_v18 = vadd.f32 1.0, %v3050_v17  ;;  %v1406_v17 = vld [vmem:[#allocation10 + $0x10] sm:$0xff] }
0x17a5   :  { %3051 = vrcp.f32 %v1288_v18  ;;  %v1300_v14 = vand.u32 2147483648, %v1288_v18  ;;  %vm1294_vm13 = vweird.f32 %v1288_v18  ;;  %v1298_v11 = vand.u32 2147483647, %v1288_v18 }
0x17a7   :  { %v1301_v28 = vor.u32 1.1754944e-38, %v1300_v14  ;;  %vm1299_vm15 = vcmp.eq.f32.partialorder %v1298_v11, 8.507059e+37  ;;  %v1420_v11 = vld [vmem:[#allocation11 + $0x30] sm:$0xff] }
0x17a8   :  { %1440 = vmatpush.msra.mxu0 %v1420_v11 }
0x17ab   :  { %v3052_v6 = vpop.eup %3051 }
0x17ac   :  { %v1290_v23 = vmul.f32 %v3052_v6, %v1288_v18  ;;  %vm1295_vm12 = vweird.f32 %v3052_v6  ;;  %v1407_v18 = vld [vmem:[#allocation10 + $0x18] sm:$0xff] }
0x17ad   :  { %vm1296_vm14 = vmor %vm1294_vm13, %vm1295_vm12  ;;  %1517 = vmatpush.msrb.mxu3 %v1407_v18 }
0x17ae   :  { %v1291_v20 = vsub.f32 1.0, %v1290_v23 }
0x17b0   :  { %v1292_v2 = vmul.f32 %v3052_v6, %v1291_v20 }
0x17b2   :  { %v1293_v26 = vadd.f32 %v3052_v6, %v1292_v2 }
0x17b4   :  { %v1297_v12 = vsel %vm1296_vm14, %v3052_v6, %v1293_v26  ;;  %v1404_v6 = vld [vmem:[#allocation10] sm:$0xff] }
0x17b5   :  { %v1302_v22 = vsel %vm1299_vm15, %v1301_v28, %v1297_v12  ;;  %v1421_v12 = vld [vmem:[#allocation11 + $0x38] sm:$0xff]  ;;  %v1418_v28 = vld [vmem:[#allocation11 + $0x20] sm:$0xff] }
0x17b6   :  { %v1308_v35 = vmul.f32 %v1306_v32, %v1302_v22  ;;  %1463 = vmatpush.msrb.mxu1 %v1421_v12  ;;  %1441 = vmatpush.msra.mxu0 %v1418_v28  ;;  %v1415_v32 = vld [vmem:[#allocation11 + $0x8] sm:$0xff] }
0x1813   :  { %v1311_v29 = vpop.permute.xlu1 %1310 }
0x1814   :  { %v1313_v31 = vmul.f32 %v1311_v29, %v1302_v22  ;;  %v1419_v29 = vld [vmem:[#allocation11 + $0x28] sm:$0xff] }
0x1815   :  { %1464 = vmatpush.msrb.mxu1 %v1419_v29 }
0x1816   :  { %1315 = vrot.lane.b32.xlu2 %v1313_v31, %s3365_s6  ;;  %v1417_v31 = vld [vmem:[#allocation11 + $0x18] sm:$0xff] }
0x1817   :  { %1465 = vmatpush.msrb.mxu1 %v1417_v31 }
0x1819   :  { %1466 = vmatpush.msrb.mxu1 %v1415_v32 }
0x1870   :  { %v1316_v36 = vpop.permute.xlu2 %1315 }
0x1871   :  { %v1318_v37 = vadd.f32 %v1316_v36, %v1308_v35  ;;  %v154_v35 = vld [vmem:[#allocation13 + $0x18] sm:$0xff]  ;;  %v153_v36 = vld [vmem:[#allocation13 + $0x10] sm:$0xff] }
0x1872   :  { %1625 = vmatpush.msra.mxu1 %v154_v35 }
0x1873   :  { %3053 = vtanh.f32 %v1318_v37  ;;  %v1378_v59 = vrot.slane %v1318_v37, 2  ;;  %v152_v37 = vld [vmem:[#allocation13 + $0x8] sm:$0xff] }
0x1874   :  { %1626 = vmatpush.msra.mxu1 %v153_v36 }
0x1876   :  { %1627 = vmatpush.msra.mxu1 %v152_v37 }
0x1879   :  { %v3054_v38 = vpop.eup %3053 }
0x187a   :  { %1321 = vrot.lane.b32.xlu0 %v3054_v38, %s3364_s19  ;;  %v151_v38 = vld [vmem:[#allocation13] sm:$0xff] }
0x187b   :  { %1628 = vmatpush.msra.mxu1 %v151_v38 }
0x18ec   :  { %v1322_v21 = vpop.permute.xlu0 %1321 }
0x18ed   :  { %v1324_v8 = vmul.f32 %v1322_v21, %v1302_v22  ;;  %v1416_v22 = vld [vmem:[#allocation11 + $0x10] sm:$0xff] }
0x18ee   :  { %1442 = vmatpush.msra.mxu0 %v1416_v22 }
0x18ef   :  { %v1331_v3 = vrot.slane %v1324_v8, 2 }
0x18f1   :  { %1332 = vrot.lane.b32.xlu1 %v1331_v3, %s3365_s6 }
0x1963   :  { %v1333_v39 = vpop.permute.xlu1 %1332 }
0x1964   :  { %2879 = vmatmul.msk.f32.vlgmr.msra.gmra.mxu3 %vm175_vm0, %v1333_v39 }
0x19e7   :  { %v1353_v41 = vpop.f32.mrf.mxu3 }
0x19e8   :  { %v1356_v42 = vadd.f32 %v1353_v41, %v1330_v4  ;;  %v3776_v4 = vld [vmem:[%s4103_s11] sm:$0x3] }
0x19ea   :  { %3055 = vtanh.f32 %v1356_v42  ;;  %v2880_v44 = vmul.f32 -1.442695, %v1356_v42 }
0x19ec   :  { %3057 = vpow2.f32 %v2880_v44  ;;  %v1529_v44 = vperm.slane %v3776_v4, 1 }
0x19f0   :  { %v3056_v43 = vpop.eup %3055 }
0x19f1   :  { %1382 = vrot.lane.b32.xlu2 %v3056_v43, %s3364_s19  ;;  %v1528_v43 = vperm.slane %v3776_v4, 0 }
0x19f2   :  { %v3058_v45 = vpop.eup %3057 }
0x19f3   :  { %v1360_v46 = vadd.f32 1.0, %v3058_v45 }
0x19f5   :  { %3059 = vrcp.f32 %v1360_v46  ;;  %v1372_v52 = vand.u32 2147483648, %v1360_v46  ;;  %vm1366_vm2 = vweird.f32 %v1360_v46  ;;  %v1370_v53 = vand.u32 2147483647, %v1360_v46 }
0x19f7   :  { %vm1371_vm4 = vcmp.eq.f32.partialorder %v1370_v53, 8.507059e+37 }
0x19f9   :  { %368 = vrot.lane.b32.xlu2 %v3549_v5, %s3365_s6  ;;  %v1373_v5 = vor.u32 1.1754944e-38, %v1372_v52 }
0x19fb   :  { %v3060_v47 = vpop.eup %3059 }
0x19fc   :  { %v1362_v48 = vmul.f32 %v3060_v47, %v1360_v46  ;;  %vm1367_vm1 = vweird.f32 %v3060_v47 }
0x19fd   :  { %vm1368_vm3 = vmor %vm1366_vm2, %vm1367_vm1 }
0x19fe   :  { %v1363_v49 = vsub.f32 1.0, %v1362_v48 }
0x1a00   :  { %v1364_v50 = vmul.f32 %v3060_v47, %v1363_v49 }
0x1a01   :  { %1176 = vrot.lane.b32.xlu2 %v3717_v34, %s3365_s6 }
0x1a02   :  { %v1365_v51 = vadd.f32 %v3060_v47, %v1364_v50 }
0x1a04   :  { %v1369_v54 = vsel %vm1368_vm3, %v3060_v47, %v1365_v51 }
0x1a05   :  { %v1374_v34 = vsel %vm1371_vm4, %v1373_v5, %v1369_v54 }
0x1a06   :  { %v1380_v61 = vmul.f32 %v1378_v59, %v1374_v34 }
0x1a4b   :  { %v1383_v55 = vpop.permute.xlu2 %1382 }
0x1a4c   :  { %v1385_v56 = vmul.f32 %v1383_v55, %v1374_v34 }
0x1a4e   :  { %1387 = vrot.lane.b32.xlu0 %v1385_v56, %s3365_s6 }
0x1a53   :  { %v369_v57 = vpop.permute.xlu2 %368 }
0x1a54   :  { %372 = vst.msk [vmem:[#allocation2] sm:$0xc] %vm371_vm6, %v369_v57 }
0x1a56   :  { %444 = vrot.lane.b32.xlu0 %v3557_v40, %s3365_s6 }
0x1a5b   :  { %v1177_v58 = vpop.permute.xlu2 %1176 }
0x1a5c   :  { %1179 = vst.msk [vmem:[#allocation3] sm:$0xc0] %vm523_vm7, %v1177_v58 }
0x1a5e   :  { %1251 = vrot.lane.b32.xlu0 %v3725_v60, %s3365_s6 }
0x1a66   :  { %882 = vrot.lane.b32.xlu0 %v3642_v24, %s3365_s6  ;;  %v1410_v24 = vld [vmem:[#allocation10 + $0x30] sm:$0xff] }
0x1a67   :  { %1492 = vmatpush.msrb.mxu2 %v1410_v24  ;;  %v744_v24 = vld [vmem:[#allocation4 + $0x18] sm:$0xc0] }
0x1a69   :  { %1493 = vmatpush.msrb.mxu2 %v1408_v13 }
0x1a6b   :  { %1494 = vmatpush.msrb.mxu2 %v1406_v17 }
0x1a6d   :  { %1495 = vmatpush.msrb.mxu2 %v1404_v6 }
0x1a6f   :  { %1709 = vmatpush.msra.mxu2 %v154_v35 }
0x1a71   :  { %1710 = vmatpush.msra.mxu2 %v153_v36 }
0x1a73   :  { %1711 = vmatpush.msra.mxu2 %v152_v37 }
0x1a75   :  { %1712 = vmatpush.msra.mxu2 %v151_v38 }
0x1ac0   :  { %v1388_v62 = vpop.permute.xlu0 %1387 }
0x1ac1   :  { %v1390_v63 = vadd.f32 %v1388_v62, %v1380_v61 }
0x1ac3   :  { %3061 = vtanh.f32 %v1390_v63 }
0x1ac8   :  { %v445_v0 = vpop.permute.xlu0 %444 }
0x1ac9   :  { %v3062_v1 = vpop.eup %3061  ;;  %448 = vst.msk [vmem:[#allocation2] sm:$0x30] %vm447_vm8, %v445_v0 }
0x1aca   :  { %1393 = vrot.lane.b32.xlu1 %v3062_v1, %s3364_s19  ;;  %v771_v1 = vrot.slane %v3706_v33, 2 }
0x1acc   :  { %v773_v7 = vadd.f32 %v771_v1, %v744_v24 }
0x1ad0   :  { %v1252_v40 = vpop.permute.xlu0 %1251 }
0x1ad1   :  { %1254 = vst.msk [vmem:[#allocation3] sm:$0x30] %vm447_vm8, %v1252_v40 }
0x1ad2   :  { %520 = vrot.lane.b32.xlu1 %v3591_v19, %s3365_s6  ;;  %v1405_v19 = vld [vmem:[#allocation10 + $0x8] sm:$0xff] }
0x1ad3   :  { %1518 = vmatpush.msrb.mxu3 %v1405_v19 }
0x1ad5   :  { %1793 = vmatpush.msra.mxu3 %v154_v35 }
0x1ad7   :  { %1794 = vmatpush.msra.mxu3 %v153_v36 }
0x1ad8   :  { %v883_v60 = vpop.permute.xlu0 %882 }
0x1ad9   :  { %885 = vst.msk [vmem:[#allocation3 + $0x8] sm:$0xc0] %vm523_vm7, %v883_v60  ;;  %1795 = vmatpush.msra.mxu3 %v152_v37 }
0x1ada   :  { %1326 = vrot.lane.b32.xlu1 %v1324_v8, %s3365_s6 }
0x1adb   :  { %1796 = vmatpush.msra.mxu3 %v151_v38 }
0x1ae2   :  { %957 = vrot.lane.b32.xlu1 %v3671_v27, %s3365_s6 }
0x1b3c   :  { %v1394_v23 = vpop.permute.xlu1 %1393 }
0x1b3d   :  { %v1396_v20 = vmul.f32 %v1394_v23, %v1374_v34 }
0x1b3f   :  { %1398 = vrot.lane.b32.xlu2 %v1396_v20, %s3365_s6  ;;  %v2865_v20 = vmul.f32 -1.442695, %v773_v7 }
0x1b44   :  { %v521_v27 = vpop.permute.xlu1 %520 }
0x1b45   :  { %524 = vst.msk [vmem:[#allocation2] sm:$0xc0] %vm523_vm7, %v521_v27 }
0x1b47   :  { %1032 = vrot.lane.b32.xlu2 %v3696_v30, %s3365_s6  ;;  %v1414_v30 = vld [vmem:[#allocation11] sm:$0xff] }
0x1b48   :  { %1443 = vmatpush.msra.mxu0 %v1414_v30 }
0x1b4a   :  { %1553 = vmatpush.msrb.mxu0 %v154_v35 }
0x1b4c   :  { %v1327_v2 = vpop.permute.xlu1 %1326  ;;  %v1402_v26 = vld [vmem:[#allocation2] sm:$0xff]  ;;  %1554 = vmatpush.msrb.mxu0 %v153_v36 }
0x1b4d   :  { %1329 = vst.msk [vmem:[#allocation3] sm:$0xc] %vm371_vm6, %v1327_v2  ;;  %2885 = vmatmul.msk.f32.vlgmr.msrb.gmra.mxu2 %vm175_vm0, %v1402_v26  ;;  %2887 = vmatmul.msk.f32.vlgmr.msrb.gmra.mxu3 %vm175_vm0, %v1402_v26 }
0x1b4e   :  { %1555 = vmatpush.msrb.mxu0 %v152_v37  ;;  %2036 = vmatpush.msrb.mxu2 %v154_v35 }
0x1b4f   :  { %2120 = vmatpush.msrb.mxu3 %v154_v35 }
0x1b50   :  { %1556 = vmatpush.msrb.mxu0 %v151_v38  ;;  %2037 = vmatpush.msrb.mxu2 %v153_v36 }
0x1b51   :  { %2121 = vmatpush.msrb.mxu3 %v153_v36 }
0x1b52   :  { %2038 = vmatpush.msrb.mxu2 %v152_v37 }
0x1b53   :  { %2122 = vmatpush.msrb.mxu3 %v152_v37 }
0x1b54   :  { %v958_v14 = vpop.permute.xlu1 %957  ;;  %2039 = vmatpush.msrb.mxu2 %v151_v38 }
0x1b55   :  { %960 = vst.msk [vmem:[#allocation3 + $0x8] sm:$0x30] %vm447_vm8, %v958_v14  ;;  %2123 = vmatpush.msrb.mxu3 %v151_v38 }
0x1b99   :  { %v1399_v21 = vpop.permute.xlu2 %1398 }
0x1b9a   :  { %1401 = vst.msk [vmem:[#allocation3] sm:$0x3] %vm298_vm5, %v1399_v21 }
0x1ba1   :  { %v1033_v8 = vpop.permute.xlu2 %1032  ;;  %v1412_v3 = vld [vmem:[#allocation3] sm:$0xff] }
0x1ba2   :  { %1035 = vst.msk [vmem:[#allocation3 + $0x8] sm:$0xc] %vm371_vm6, %v1033_v8  ;;  %2881 = vmatmul.msk.f32.vlgmr.msra.gmra.mxu0 %vm175_vm0, %v1412_v3  ;;  %2883 = vmatmul.msk.f32.vlgmr.msrb.gmra.mxu1 %vm175_vm0, %v1412_v3 }
0x1ba3   :  { %1877 = vmatpush.msra.mxu0 %v154_v35  ;;  %1952 = vmatpush.msrb.mxu1 %v154_v35 }
0x1ba5   :  { %1878 = vmatpush.msra.mxu0 %v153_v36  ;;  %1953 = vmatpush.msrb.mxu1 %v153_v36 }
0x1ba7   :  { %1879 = vmatpush.msra.mxu0 %v152_v37  ;;  %1954 = vmatpush.msrb.mxu1 %v152_v37 }
0x1ba9   :  { %v1413_v39 = vld [vmem:[#allocation3 + $0x8] sm:$0xff]  ;;  %1880 = vmatpush.msra.mxu0 %v151_v38  ;;  %1955 = vmatpush.msrb.mxu1 %v151_v38 }
0x1baa   :  { %2882 = vmatmul.msk.f32.gmra.mxu0 %vm175_vm0, %v1413_v39  ;;  %2884 = vmatmul.msk.f32.gmra.mxu1 %vm175_vm0, %v1413_v39 }
0x1bb2   :  { %1557 = vmatmul.f32.vlgmr.msrb.gmra.mxu0 %v3363_v10 }
0x1bd0   :  { %v1497_v41 = vpop.f32.mrf.mxu2  ;;  %v1520_v42 = vpop.f32.mrf.mxu3 }
0x1c1f   :  { %v1445_v45 = vpop.f32.mrf.mxu0  ;;  %v1468_v46 = vpop.f32.mrf.mxu1 }
0x1c20   :  { %v1498_v47 = vadd.f32 %v1497_v41, %v1445_v45  ;;  %v1521_v48 = vadd.f32 %v1520_v42, %v1468_v46  ;;  %v795_v45 = vrot.slane %v3686_v9, 6 }
0x1c22   :  { %v1532_v49 = vadd.f32 %v1528_v43, %v1498_v47  ;;  %v1533_v50 = vadd.f32 %v1529_v44, %v1521_v48 }
0x1c24   :  { %1536 = vst [vmem:[#allocation4 + $0x10] sm:$0xff] %v1532_v49 }
0x1c25   :  { %1537 = vst [vmem:[#allocation4] sm:$0xff] %v1533_v50 }
0x1c27   :  { %v3784_v51 = vpop.f32.mrf.mxu0  ;;  %v3800_v8 = vpop.f32.mrf.mxu1 }
0x1c2b   :  { %v1540_v52 = vld [vmem:[#allocation4 + $0x10] sm:$0x3]  ;;  %v1607_v41 = vld [vmem:[#allocation4 + $0x10] sm:$0xc] }
0x1c2f   :  { %v1558_v53 = vpop.f32.mrf.mxu0 }
0x1c30   :  { %v1561_v54 = vadd.f32 %v1558_v53, %v1540_v52 }
0x1c32   :  { %3063 = vtanh.f32 %v1561_v54  ;;  %v2889_v55 = vmul.f32 -1.442695, %v1561_v54 }
0x1c34   :  { %3065 = vpow2.f32 %v2889_v55 }
0x1c38   :  { %v3064_v5 = vpop.eup %3063 }
0x1c39   :  { %1584 = vrot.lane.b32.xlu0 %v3064_v5, %s3364_s19 }
0x1c3a   :  { %v3066_v34 = vpop.eup %3065 }
0x1c3b   :  { %v1565_v56 = vadd.f32 1.0, %v3066_v34 }
0x1c3d   :  { %3067 = vrcp.f32 %v1565_v56  ;;  %v1577_v63 = vand.u32 2147483648, %v1565_v56  ;;  %vm1571_vm9 = vweird.f32 %v1565_v56  ;;  %v1575_v0 = vand.u32 2147483647, %v1565_v56 }
0x1c3e   :  { %3069 = vtanh.f32 %v773_v7 }
0x1c3f   :  { %v1578_v60 = vor.u32 1.1754944e-38, %v1577_v63  ;;  %vm1576_vm11 = vcmp.eq.f32.partialorder %v1575_v0, 8.507059e+37 }
0x1c43   :  { %v3068_v57 = vpop.eup %3067 }
0x1c44   :  { %v1567_v58 = vmul.f32 %v3068_v57, %v1565_v56  ;;  %vm1572_vm5 = vweird.f32 %v3068_v57  ;;  %v3070_v18 = vpop.eup %3069 }
0x1c45   :  { %vm1573_vm10 = vmor %vm1571_vm9, %vm1572_vm5 }
0x1c46   :  { %v1568_v59 = vsub.f32 1.0, %v1567_v58 }
0x1c48   :  { %v1569_v61 = vmul.f32 %v3068_v57, %v1568_v59 }
0x1c4a   :  { %v1570_v62 = vadd.f32 %v3068_v57, %v1569_v61 }
0x1c4c   :  { %v1574_v40 = vsel %vm1573_vm10, %v3068_v57, %v1570_v62 }
0x1c4d   :  { %v1579_v15 = vsel %vm1576_vm11, %v1578_v60, %v1574_v40 }
0x1c4e   :  { %v1582_v6 = vmul.f32 0.0, %v1579_v15 }
0x1cab   :  { %v1585_v13 = vpop.permute.xlu0 %1584 }
0x1cac   :  { %v1587_v17 = vmul.f32 %v1585_v13, %v1579_v15 }
0x1cae   :  { %1589 = vrot.lane.b32.xlu1 %v1587_v17, %s3365_s6 }
0x1cb6   :  { %799 = vrot.lane.b32.xlu1 %v3070_v18, %s3364_s19 }
0x1d20   :  { %v1590_v19 = vpop.permute.xlu1 %1589 }
0x1d21   :  { %v3790_v23 = vadd.f32 %v1590_v19, %v1582_v6 }
0x1d23   :  { %3071 = vtanh.f32 %v3790_v23  ;;  %v1658_v40 = vrot.slane %v3790_v23, 6 }
0x1d24   :  { %3073 = vpow2.f32 %v2865_v20 }
0x1d28   :  { %v800_v36 = vpop.permute.xlu1 %799 }
0x1d29   :  { %v3072_v33 = vpop.eup %3071 }
0x1d2a   :  { %1595 = vrot.lane.b32.xlu2 %v3072_v33, %s3364_s19  ;;  %v3074_v27 = vpop.eup %3073 }
0x1d2b   :  { %v777_v2 = vadd.f32 1.0, %v3074_v27 }
0x1d2d   :  { %3075 = vrcp.f32 %v777_v2  ;;  %v789_v31 = vand.u32 2147483648, %v777_v2  ;;  %vm783_vm13 = vweird.f32 %v777_v2  ;;  %v787_v30 = vand.u32 2147483647, %v777_v2 }
0x1d2f   :  { %v790_v35 = vor.u32 1.1754944e-38, %v789_v31  ;;  %vm788_vm15 = vcmp.eq.f32.partialorder %v787_v30, 8.507059e+37 }
0x1d33   :  { %v3076_v26 = vpop.eup %3075 }
0x1d34   :  { %v779_v14 = vmul.f32 %v3076_v26, %v777_v2  ;;  %vm784_vm12 = vweird.f32 %v3076_v26 }
0x1d35   :  { %vm785_vm14 = vmor %vm783_vm13, %vm784_vm12 }
0x1d36   :  { %v780_v11 = vsub.f32 1.0, %v779_v14 }
0x1d38   :  { %v781_v12 = vmul.f32 %v3076_v26, %v780_v11 }
0x1d3a   :  { %v782_v29 = vadd.f32 %v3076_v26, %v781_v12 }
0x1d3c   :  { %v786_v32 = vsel %vm785_vm14, %v3076_v26, %v782_v29  ;;  %v1694_v29 = vld [vmem:[#allocation4 + $0x10] sm:$0x30] }
0x1d3d   :  { %v791_v37 = vsel %vm788_vm15, %v790_v35, %v786_v32 }
0x1d3e   :  { %v802_v38 = vmul.f32 %v800_v36, %v791_v37  ;;  %v797_v47 = vmul.f32 %v795_v45, %v791_v37 }
0x1d84   :  { %v1596_v28 = vpop.permute.xlu2 %1595 }
0x1d85   :  { %v3794_v22 = vmul.f32 %v1596_v28, %v1579_v15 }
0x1d87   :  { %1609 = vrot.lane.b32.xlu0 %v3794_v22, %s3365_s6 }
0x1d8f   :  { %804 = vrot.lane.b32.xlu0 %v802_v38, %s3365_s6 }
0x1df9   :  { %v1610_v21 = vpop.permute.xlu0 %1609 }
0x1dfa   :  { %2890 = vmatmul.msk.f32.vlgmr.msra.gmra.mxu1 %vm175_vm0, %v1610_v21 }
0x1e01   :  { %v805_v46 = vpop.permute.xlu0 %804 }
0x1e02   :  { %v807_v48 = vadd.f32 %v805_v46, %v797_v47 }
0x1e77   :  { %v1630_v3 = vpop.f32.mrf.mxu1 }
0x1e78   :  { %v1634_v39 = vrot.slane %v1630_v3, 6 }
0x1e7a   :  { %v1636_v42 = vadd.f32 %v1634_v39, %v1607_v41 }
0x1e7c   :  { %3077 = vtanh.f32 %v1636_v42  ;;  %v2891_v52 = vmul.f32 -1.442695, %v1636_v42 }
0x1e7d   :  { %3079 = vtanh.f32 %v807_v48 }
0x1e7e   :  { %3081 = vpow2.f32 %v2891_v52 }
0x1e82   :  { %v3078_v49 = vpop.eup %3077 }
0x1e83   :  { %1662 = vrot.lane.b32.xlu2 %v3078_v49, %s3364_s19  ;;  %v3080_v50 = vpop.eup %3079 }
0x1e84   :  { %v3082_v53 = vpop.eup %3081 }
0x1e85   :  { %v1640_v54 = vadd.f32 1.0, %v3082_v53 }
0x1e87   :  { %3083 = vrcp.f32 %v1640_v54  ;;  %v1652_v57 = vand.u32 2147483648, %v1640_v54  ;;  %vm1646_vm2 = vweird.f32 %v1640_v54  ;;  %v1650_v58 = vand.u32 2147483647, %v1640_v54 }
0x1e89   :  { %v1653_v61 = vor.u32 1.1754944e-38, %v1652_v57  ;;  %vm1651_vm4 = vcmp.eq.f32.partialorder %v1650_v58, 8.507059e+37 }
0x1e8b   :  { %810 = vrot.lane.b32.xlu2 %v3080_v50, %s3364_s19 }
0x1e8d   :  { %v3084_v9 = vpop.eup %3083 }
0x1e8e   :  { %v1642_v5 = vmul.f32 %v3084_v9, %v1640_v54  ;;  %vm1647_vm1 = vweird.f32 %v3084_v9 }
0x1e8f   :  { %vm1648_vm3 = vmor %vm1646_vm2, %vm1647_vm1 }
0x1e90   :  { %v1643_v55 = vsub.f32 1.0, %v1642_v5 }
0x1e92   :  { %v1644_v34 = vmul.f32 %v3084_v9, %v1643_v55  ;;  %v1778_v55 = vld [vmem:[#allocation4 + $0x10] sm:$0xc0] }
0x1e93   :  { %740 = vrot.lane.b32.xlu2 %v3692_v16, %s3365_s6 }
0x1e94   :  { %v1645_v56 = vadd.f32 %v3084_v9, %v1644_v34 }
0x1e96   :  { %v1649_v59 = vsel %vm1648_vm3, %v3084_v9, %v1645_v56 }
0x1e97   :  { %v1654_v16 = vsel %vm1651_vm4, %v1653_v61, %v1649_v59 }
0x1e98   :  { %v1660_v60 = vmul.f32 %v1658_v40, %v1654_v16 }
0x1edd   :  { %v1663_v62 = vpop.permute.xlu2 %1662 }
0x1ede   :  { %v1665_v63 = vmul.f32 %v1663_v62, %v1654_v16 }
0x1ee0   :  { %1667 = vrot.lane.b32.xlu1 %v1665_v63, %s3365_s6 }
0x1ee5   :  { %v811_v0 = vpop.permute.xlu2 %810 }
0x1ee6   :  { %v813_v17 = vmul.f32 %v811_v0, %v791_v37 }
0x1ee8   :  { %665 = vrot.lane.b32.xlu1 %v3667_v25, %s3365_s6 }
0x1eed   :  { %v741_v1 = vpop.permute.xlu2 %740 }
0x1eee   :  { %743 = vst.msk [vmem:[#allocation2 + $0x8] sm:$0x30] %vm447_vm8, %v741_v1 }
0x1f52   :  { %v1668_v24 = vpop.permute.xlu1 %1667 }
0x1f53   :  { %v1670_v7 = vadd.f32 %v1668_v24, %v1660_v60 }
0x1f55   :  { %3085 = vtanh.f32 %v1670_v7  ;;  %v1742_v45 = vrot.slane %v1670_v7, 6 }
0x1f5a   :  { %v666_v13 = vpop.permute.xlu1 %665 }
0x1f5b   :  { %v3086_v15 = vpop.eup %3085  ;;  %668 = vst.msk [vmem:[#allocation2 + $0x8] sm:$0xc] %vm371_vm6, %v666_v13 }
0x1f5c   :  { %1673 = vrot.lane.b32.xlu0 %v3086_v15, %s3364_s19 }
0x1f64   :  { %815 = vrot.lane.b32.xlu0 %v813_v17, %s3365_s6 }
0x1fce   :  { %v1674_v18 = vpop.permute.xlu0 %1673 }
0x1fcf   :  { %v1676_v25 = vmul.f32 %v1674_v18, %v1654_v16 }
0x1fd1   :  { %v1684_v6 = vrot.slane %v1676_v25, 2 }
0x1fd3   :  { %1685 = vrot.lane.b32.xlu1 %v1684_v6, %s3365_s6 }
0x1fd6   :  { %v816_v19 = vpop.permute.xlu0 %815 }
0x1fd7   :  { %818 = vst.msk [vmem:[#allocation2 + $0x8] sm:$0xc0] %vm523_vm7, %v816_v19 }
0x1fde   :  { %v1403_v23 = vld [vmem:[#allocation2 + $0x8] sm:$0xff] }
0x1fdf   :  { %2886 = vmatmul.msk.f32.gmra.mxu2 %vm175_vm0, %v1403_v23  ;;  %2888 = vmatmul.msk.f32.gmra.mxu3 %vm175_vm0, %v1403_v23 }
0x2045   :  { %v3819_v33 = vpop.permute.xlu1 %1685 }
0x2046   :  { %2892 = vmatmul.msk.f32.vlgmr.msra.gmra.mxu2 %vm175_vm0, %v3819_v33 }
0x2062   :  { %v1500_v20 = vpop.f32.mrf.mxu2  ;;  %v1523_v27 = vpop.f32.mrf.mxu3 }
0x2063   :  { %v1501_v2 = vadd.f32 %v1500_v20, %v3784_v51  ;;  %v1524_v26 = vadd.f32 %v1523_v27, %v3800_v8 }
0x2065   :  { %v1534_v14 = vadd.f32 %v1528_v43, %v1501_v2  ;;  %v1535_v11 = vadd.f32 %v1529_v44, %v1524_v26  ;;  %v3844_v2 = vld [vmem:[#allocation14 + $0x18] sm:$0xff]  ;;  %v3846_v26 = vld [vmem:[#allocation14 + $0x10] sm:$0xff] }
0x2066   :  { %2202 = vmatpush.msrb.mxu0 %v3844_v2  ;;  %2273 = vmatpush.msra.mxu1 %v3844_v2 }
0x2067   :  { %1538 = vst [vmem:[#allocation4 + $0x18] sm:$0xff] %v1534_v14  ;;  %v3850_v14 = vld [vmem:[#allocation14 + $0x8] sm:$0xff]  ;;  %2347 = vmatpush.msra.mxu2 %v3844_v2 }
0x2068   :  { %1539 = vst [vmem:[#allocation4 + $0x8] sm:$0xff] %v1535_v11  ;;  %2203 = vmatpush.msrb.mxu0 %v3846_v26  ;;  %2274 = vmatpush.msra.mxu1 %v3846_v26  ;;  %v3856_v11 = vld [vmem:[#allocation14] sm:$0xff] }
0x2069   :  { %2348 = vmatpush.msra.mxu2 %v3846_v26 }
0x206a   :  { %2204 = vmatpush.msrb.mxu0 %v3850_v14  ;;  %2275 = vmatpush.msra.mxu1 %v3850_v14 }
0x206b   :  { %2349 = vmatpush.msra.mxu2 %v3850_v14 }
0x206c   :  { %2205 = vmatpush.msrb.mxu0 %v3856_v11  ;;  %2276 = vmatpush.msra.mxu1 %v3856_v11 }
0x206d   :  { %2350 = vmatpush.msra.mxu2 %v3856_v11 }
0x20c9   :  { %v1714_v12 = vpop.f32.mrf.mxu2 }
0x20ca   :  { %v1718_v28 = vrot.slane %v1714_v12, 4 }
0x20cc   :  { %v1720_v31 = vadd.f32 %v1718_v28, %v1694_v29  ;;  %v1862_v28 = vld [vmem:[#allocation4 + $0x18] sm:$0x3] }
0x20ce   :  { %3087 = vtanh.f32 %v1720_v31  ;;  %v2893_v32 = vmul.f32 -1.442695, %v1720_v31 }
0x20d0   :  { %3089 = vpow2.f32 %v2893_v32 }
0x20d4   :  { %v3088_v30 = vpop.eup %3087 }
0x20d5   :  { %1746 = vrot.lane.b32.xlu2 %v3088_v30, %s3364_s19 }
0x20d6   :  { %v3090_v51 = vpop.eup %3089 }
0x20d7   :  { %v1724_v35 = vadd.f32 1.0, %v3090_v51 }
0x20d9   :  { %3091 = vrcp.f32 %v1724_v35  ;;  %v1736_v38 = vand.u32 2147483648, %v1724_v35  ;;  %vm1730_vm7 = vweird.f32 %v1724_v35  ;;  %v1734_v21 = vand.u32 2147483647, %v1724_v35 }
0x20db   :  { %v1737_v3 = vor.u32 1.1754944e-38, %v1736_v38  ;;  %vm1735_vm5 = vcmp.eq.f32.partialorder %v1734_v21, 8.507059e+37 }
0x20df   :  { %v3092_v36 = vpop.eup %3091 }
0x20e0   :  { %v1726_v43 = vmul.f32 %v3092_v36, %v1724_v35  ;;  %vm1731_vm6 = vweird.f32 %v3092_v36  ;;  %v2189_v35 = vld [vmem:[#allocation4 + $0x8] sm:$0xc0] }
0x20e1   :  { %vm1732_vm8 = vmor %vm1730_vm7, %vm1731_vm6 }
0x20e2   :  { %v1727_v37 = vsub.f32 1.0, %v1726_v43 }
0x20e4   :  { %v1728_v4 = vmul.f32 %v3092_v36, %v1727_v37 }
0x20e6   :  { %v1729_v44 = vadd.f32 %v3092_v36, %v1728_v4 }
0x20e8   :  { %v1733_v8 = vsel %vm1732_vm8, %v3092_v36, %v1729_v44 }
0x20e9   :  { %v1738_v41 = vsel %vm1735_vm5, %v1737_v3, %v1733_v8 }
0x20ea   :  { %v1744_v46 = vmul.f32 %v1742_v45, %v1738_v41 }
0x212f   :  { %v1747_v39 = vpop.permute.xlu2 %1746 }
0x2130   :  { %v1749_v42 = vmul.f32 %v1747_v39, %v1738_v41 }
0x2132   :  { %1751 = vrot.lane.b32.xlu0 %v1749_v42, %s3365_s6 }
0x21a4   :  { %v1752_v47 = vpop.permute.xlu0 %1751 }
0x21a5   :  { %v1754_v48 = vadd.f32 %v1752_v47, %v1744_v46 }
0x21a7   :  { %3093 = vtanh.f32 %v1754_v48  ;;  %v1826_v17 = vrot.slane %v1754_v48, 6 }
0x21ad   :  { %v3094_v49 = vpop.eup %3093 }
0x21ae   :  { %1757 = vrot.lane.b32.xlu1 %v3094_v49, %s3364_s19 }
0x2220   :  { %v1758_v50 = vpop.permute.xlu1 %1757 }
0x2221   :  { %v1760_v52 = vmul.f32 %v1758_v50, %v1738_v41 }
0x2223   :  { %v1768_v53 = vrot.slane %v1760_v52, 4 }
0x2225   :  { %1769 = vrot.lane.b32.xlu2 %v1768_v53, %s3365_s6 }
0x227f   :  { %v3833_v54 = vpop.permute.xlu2 %1769 }
0x2280   :  { %2894 = vmatmul.msk.f32.vlgmr.msra.gmra.mxu3 %vm175_vm0, %v3833_v54 }
0x2281   :  { %2421 = vmatpush.msra.mxu3 %v3844_v2 }
0x2283   :  { %2422 = vmatpush.msra.mxu3 %v3846_v26 }
0x2285   :  { %2423 = vmatpush.msra.mxu3 %v3850_v14 }
0x2287   :  { %2424 = vmatpush.msra.mxu3 %v3856_v11 }
0x2303   :  { %v1798_v9 = vpop.f32.mrf.mxu3 }
0x2304   :  { %v1802_v5 = vrot.slane %v1798_v9, 2 }
0x2306   :  { %v1804_v34 = vadd.f32 %v1802_v5, %v1778_v55 }
0x2308   :  { %3095 = vtanh.f32 %v1804_v34  ;;  %v2895_v57 = vmul.f32 -1.442695, %v1804_v34 }
0x230a   :  { %3097 = vpow2.f32 %v2895_v57 }
0x230e   :  { %v3096_v56 = vpop.eup %3095 }
0x230f   :  { %1830 = vrot.lane.b32.xlu0 %v3096_v56, %s3364_s19 }
0x2310   :  { %v3098_v58 = vpop.eup %3097 }
0x2311   :  { %v1808_v59 = vadd.f32 1.0, %v3098_v58 }
0x2313   :  { %3099 = vrcp.f32 %v1808_v59  ;;  %v1820_v1 = vand.u32 2147483648, %v1808_v59  ;;  %vm1814_vm10 = vweird.f32 %v1808_v59  ;;  %v1818_v40 = vand.u32 2147483647, %v1808_v59 }
0x2315   :  { %v1821_v24 = vor.u32 1.1754944e-38, %v1820_v1  ;;  %vm1819_vm12 = vcmp.eq.f32.partialorder %v1818_v40, 8.507059e+37 }
0x2319   :  { %v3100_v61 = vpop.eup %3099 }
0x231a   :  { %v1810_v62 = vmul.f32 %v3100_v61, %v1808_v59  ;;  %vm1815_vm9 = vweird.f32 %v3100_v61 }
0x231b   :  { %vm1816_vm11 = vmor %vm1814_vm10, %vm1815_vm9 }
0x231c   :  { %v1811_v16 = vsub.f32 1.0, %v1810_v62 }
0x231e   :  { %v1812_v63 = vmul.f32 %v3100_v61, %v1811_v16 }
0x2320   :  { %v1813_v0 = vadd.f32 %v3100_v61, %v1812_v63 }
0x2322   :  { %v1817_v60 = vsel %vm1816_vm11, %v3100_v61, %v1813_v0 }
0x2323   :  { %v1822_v13 = vsel %vm1819_vm12, %v1821_v24, %v1817_v60 }
0x2324   :  { %v1828_v18 = vmul.f32 %v1826_v17, %v1822_v13 }
0x2381   :  { %v1831_v7 = vpop.permute.xlu0 %1830 }
0x2382   :  { %v1833_v15 = vmul.f32 %v1831_v7, %v1822_v13 }
0x2384   :  { %1835 = vrot.lane.b32.xlu1 %v1833_v15, %s3365_s6 }
0x23f6   :  { %v1836_v25 = vpop.permute.xlu1 %1835 }
0x23f7   :  { %v3839_v6 = vadd.f32 %v1836_v25, %v1828_v18 }
0x23f9   :  { %3101 = vtanh.f32 %v3839_v6  ;;  %v1907_v60 = vrot.slane %v3839_v6, 6 }
0x23ff   :  { %v3102_v19 = vpop.eup %3101 }
0x2400   :  { %1841 = vrot.lane.b32.xlu2 %v3102_v19, %s3364_s19 }
0x245a   :  { %v1842_v23 = vpop.permute.xlu2 %1841 }
0x245b   :  { %v1844_v20 = vmul.f32 %v1842_v23, %v1822_v13 }
0x245d   :  { %v1852_v27 = vrot.slane %v1844_v20, 6 }
0x245f   :  { %1853 = vrot.lane.b32.xlu0 %v1852_v27, %s3365_s6 }
0x24d1   :  { %v3868_v12 = vpop.permute.xlu0 %1853 }
0x24d2   :  { %2896 = vmatmul.msk.f32.vlgmr.msra.gmra.mxu0 %vm175_vm0, %v3868_v12 }
0x24d3   :  { %2494 = vmatpush.msra.mxu0 %v3844_v2 }
0x24d5   :  { %2495 = vmatpush.msra.mxu0 %v3846_v26 }
0x24d7   :  { %2496 = vmatpush.msra.mxu0 %v3850_v14 }
0x24d9   :  { %2497 = vmatpush.msra.mxu0 %v3856_v11 }
0x24da   :  { %2206 = vmatmul.f32.vlgmr.msrb.gmra.mxu0 %v3363_v10 }
0x254f   :  { %v1882_v29 = vpop.f32.mrf.mxu0 }
0x2550   :  { %v1885_v31 = vadd.f32 %v1882_v29, %v1862_v28  ;;  %v1934_v29 = vld [vmem:[#allocation4 + $0x18] sm:$0xc] }
0x2552   :  { %3103 = vtanh.f32 %v1885_v31  ;;  %v2897_v10 = vmul.f32 -1.442695, %v1885_v31 }
0x2557   :  { %v2207_v30 = vpop.f32.mrf.mxu0 }
0x2558   :  { %v3104_v32 = vpop.eup %3103  ;;  %v2211_v51 = vrot.slane %v2207_v30, 2 }
0x2559   :  { %1911 = vrot.lane.b32.xlu1 %v3104_v32, %s3364_s19 }
0x255a   :  { %v2213_v36 = vadd.f32 %v2211_v51, %v2189_v35  ;;  %v2258_v51 = vld [vmem:[#allocation4 + $0x8] sm:$0x30] }
0x255c   :  { %3105 = vtanh.f32 %v2213_v36  ;;  %v2904_v37 = vmul.f32 -1.442695, %v2213_v36 }
0x255e   :  { %3107 = vpow2.f32 %v2904_v37 }
0x2562   :  { %v3106_v43 = vpop.eup %3105 }
0x2563   :  { %2236 = vrot.lane.b32.xlu2 %v3106_v43, %s3364_s19 }
0x2564   :  { %v3108_v4 = vpop.eup %3107 }
0x2565   :  { %v2217_v44 = vadd.f32 1.0, %v3108_v4 }
0x2567   :  { %3109 = vrcp.f32 %v2217_v44  ;;  %v2229_v46 = vand.u32 2147483648, %v2217_v44  ;;  %vm2223_vm14 = vweird.f32 %v2217_v44  ;;  %v2227_v47 = vand.u32 2147483647, %v2217_v44 }
0x2568   :  { %3111 = vpow2.f32 %v2897_v10 }
0x2569   :  { %v2230_v50 = vor.u32 1.1754944e-38, %v2229_v46  ;;  %vm2228_vm1 = vcmp.eq.f32.partialorder %v2227_v47, 8.507059e+37 }
0x256d   :  { %v3110_v38 = vpop.eup %3109 }
0x256e   :  { %v3112_v21 = vpop.eup %3111  ;;  %v2219_v8 = vmul.f32 %v3110_v38, %v2217_v44  ;;  %vm2224_vm13 = vweird.f32 %v3110_v38 }
0x256f   :  { %v1889_v3 = vadd.f32 1.0, %v3112_v21  ;;  %vm2225_vm15 = vmor %vm2223_vm14, %vm2224_vm13 }
0x2570   :  { %v2220_v39 = vsub.f32 1.0, %v2219_v8 }
0x2571   :  { %3113 = vrcp.f32 %v1889_v3  ;;  %v1901_v56 = vand.u32 2147483648, %v1889_v3  ;;  %vm1895_vm3 = vweird.f32 %v1889_v3  ;;  %v1899_v57 = vand.u32 2147483647, %v1889_v3 }
0x2572   :  { %v2221_v41 = vmul.f32 %v3110_v38, %v2220_v39 }
0x2573   :  { %v1902_v59 = vor.u32 1.1754944e-38, %v1901_v56  ;;  %vm1900_vm6 = vcmp.eq.f32.partialorder %v1899_v57, 8.507059e+37 }
0x2574   :  { %v2222_v45 = vadd.f32 %v3110_v38, %v2221_v41 }
0x2576   :  { %v2226_v49 = vsel %vm2225_vm15, %v3110_v38, %v2222_v45 }
0x2577   :  { %v3114_v42 = vpop.eup %3113  ;;  %v2231_v9 = vsel %vm2228_vm1, %v2230_v50, %v2226_v49 }
0x2578   :  { %v1891_v48 = vmul.f32 %v3114_v42, %v1889_v3  ;;  %vm1896_vm2 = vweird.f32 %v3114_v42  ;;  %v2234_v63 = vmul.f32 0.0, %v2231_v9 }
0x2579   :  { %vm1897_vm4 = vmor %vm1895_vm3, %vm1896_vm2 }
0x257a   :  { %v1892_v52 = vsub.f32 1.0, %v1891_v48 }
0x257c   :  { %v1893_v55 = vmul.f32 %v3114_v42, %v1892_v52 }
0x257e   :  { %v1894_v34 = vadd.f32 %v3114_v42, %v1893_v55 }
0x2580   :  { %v1898_v58 = vsel %vm1897_vm4, %v3114_v42, %v1894_v34 }
0x2581   :  { %v1903_v62 = vsel %vm1900_vm6, %v1902_v59, %v1898_v58 }
0x2582   :  { %v1909_v24 = vmul.f32 %v1907_v60, %v1903_v62 }
0x25bd   :  { %v2237_v53 = vpop.permute.xlu2 %2236 }
0x25be   :  { %v2239_v5 = vmul.f32 %v2237_v53, %v2231_v9 }
0x25c0   :  { %2241 = vrot.lane.b32.xlu1 %v2239_v5, %s3365_s6 }
0x25cb   :  { %v1912_v61 = vpop.permute.xlu1 %1911 }
0x25cc   :  { %v1914_v16 = vmul.f32 %v1912_v61, %v1903_v62 }
0x25ce   :  { %1916 = vrot.lane.b32.xlu0 %v1914_v16, %s3365_s6 }
0x2632   :  { %v2242_v0 = vpop.permute.xlu1 %2241 }
0x2633   :  { %v3881_v1 = vadd.f32 %v2242_v0, %v2234_v63 }
0x2635   :  { %3115 = vtanh.f32 %v3881_v1 }
0x263b   :  { %v3116_v40 = vpop.eup %3115 }
0x263c   :  { %2247 = vrot.lane.b32.xlu0 %v3116_v40, %s3364_s19 }
0x2640   :  { %v1917_v7 = vpop.permute.xlu0 %1916 }
0x2641   :  { %v3886_v13 = vadd.f32 %v1917_v7, %v1909_v24  ;;  %v2306_v7 = vrot.slane %v3881_v1, 2 }
0x2643   :  { %3117 = vtanh.f32 %v3886_v13  ;;  %v1985_v63 = vrot.slane %v3886_v13, 6 }
0x2649   :  { %v3118_v15 = vpop.eup %3117 }
0x264a   :  { %1922 = vrot.lane.b32.xlu2 %v3118_v15, %s3364_s19 }
0x26a4   :  { %v1923_v17 = vpop.permute.xlu2 %1922 }
0x26a5   :  { %v3890_v18 = vmul.f32 %v1923_v17, %v1903_v62 }
0x26a7   :  { %1936 = vrot.lane.b32.xlu1 %v3890_v18, %s3365_s6 }
0x26ae   :  { %v2248_v25 = vpop.permute.xlu0 %2247 }
0x26af   :  { %v2250_v19 = vmul.f32 %v2248_v25, %v2231_v9 }
0x26b1   :  { %v2252_v23 = vrot.slane %v2250_v19, 6 }
0x26b3   :  { %2253 = vrot.lane.b32.xlu2 %v2252_v23, %s3365_s6 }
0x270d   :  { %v3899_v20 = vpop.permute.xlu2 %2253 }
0x2719   :  { %v1937_v6 = vpop.permute.xlu1 %1936 }
0x271a   :  { %2898 = vmatmul.msk.f32.vlgmr.msrb.gmra.mxu1 %vm175_vm0, %v1937_v6 }
0x271b   :  { %2568 = vmatpush.msrb.mxu1 %v3844_v2 }
0x271d   :  { %2569 = vmatpush.msrb.mxu1 %v3846_v26 }
0x271f   :  { %2570 = vmatpush.msrb.mxu1 %v3850_v14 }
0x2721   :  { %2571 = vmatpush.msrb.mxu1 %v3856_v11 }
0x2722   :  { %2905 = vmatmul.msk.f32.vlgmr.msra.gmra.mxu1 %vm175_vm0, %v3899_v20 }
0x2797   :  { %v1957_v27 = vpop.f32.mrf.mxu1 }
0x2798   :  { %v1961_v28 = vrot.slane %v1957_v27, 6 }
0x279a   :  { %v1963_v31 = vadd.f32 %v1961_v28, %v1934_v29 }
0x279c   :  { %3119 = vtanh.f32 %v1963_v31  ;;  %v2899_v37 = vmul.f32 -1.442695, %v1963_v31 }
0x279f   :  { %v2278_v30 = vpop.f32.mrf.mxu1 }
0x27a0   :  { %v2282_v32 = vrot.slane %v2278_v30, 4 }
0x27a2   :  { %v3120_v35 = vpop.eup %3119  ;;  %v2284_v36 = vadd.f32 %v2282_v32, %v2258_v51  ;;  %v2021_v51 = vld [vmem:[#allocation4 + $0x18] sm:$0x30] }
0x27a3   :  { %1989 = vrot.lane.b32.xlu0 %v3120_v35, %s3364_s19 }
0x27a4   :  { %3121 = vtanh.f32 %v2284_v36  ;;  %v2906_v4 = vmul.f32 -1.442695, %v2284_v36 }
0x27a5   :  { %3123 = vpow2.f32 %v2899_v37  ;;  %v2332_v37 = vld [vmem:[#allocation4 + $0x8] sm:$0xc] }
0x27a6   :  { %3125 = vpow2.f32 %v2906_v4 }
0x27aa   :  { %v3122_v43 = vpop.eup %3121 }
0x27ab   :  { %2310 = vrot.lane.b32.xlu1 %v3122_v43, %s3364_s19  ;;  %v3124_v44 = vpop.eup %3123 }
0x27ac   :  { %v1967_v10 = vadd.f32 1.0, %v3124_v44  ;;  %v3126_v38 = vpop.eup %3125 }
0x27ad   :  { %v2288_v21 = vadd.f32 1.0, %v3126_v38 }
0x27ae   :  { %3127 = vrcp.f32 %v1967_v10  ;;  %v1979_v48 = vand.u32 2147483648, %v1967_v10  ;;  %vm1973_vm8 = vweird.f32 %v1967_v10  ;;  %v1977_v49 = vand.u32 2147483647, %v1967_v10 }
0x27af   :  { %3129 = vrcp.f32 %v2288_v21  ;;  %v2300_v56 = vand.u32 2147483648, %v2288_v21  ;;  %vm2294_vm11 = vweird.f32 %v2288_v21  ;;  %v2298_v57 = vand.u32 2147483647, %v2288_v21 }
0x27b0   :  { %v1980_v53 = vor.u32 1.1754944e-38, %v1979_v48  ;;  %vm1978_vm9 = vcmp.eq.f32.partialorder %v1977_v49, 8.507059e+37 }
0x27b1   :  { %v2301_v59 = vor.u32 1.1754944e-38, %v2300_v56  ;;  %vm2299_vm13 = vcmp.eq.f32.partialorder %v2298_v57, 8.507059e+37 }
0x27b4   :  { %v3128_v8 = vpop.eup %3127 }
0x27b5   :  { %v1969_v3 = vmul.f32 %v3128_v8, %v1967_v10  ;;  %v3130_v41 = vpop.eup %3129  ;;  %vm1974_vm7 = vweird.f32 %v3128_v8 }
0x27b6   :  { %v2290_v45 = vmul.f32 %v3130_v41, %v2288_v21  ;;  %vm1975_vm5 = vmor %vm1973_vm8, %vm1974_vm7  ;;  %vm2295_vm10 = vweird.f32 %v3130_v41 }
0x27b7   :  { %v1970_v39 = vsub.f32 1.0, %v1969_v3  ;;  %vm2296_vm12 = vmor %vm2294_vm11, %vm2295_vm10 }
0x27b8   :  { %v2291_v47 = vsub.f32 1.0, %v2290_v45 }
0x27b9   :  { %v1971_v42 = vmul.f32 %v3128_v8, %v1970_v39 }
0x27ba   :  { %v2292_v52 = vmul.f32 %v3130_v41, %v2291_v47 }
0x27bb   :  { %v1972_v46 = vadd.f32 %v3128_v8, %v1971_v42 }
0x27bc   :  { %v2293_v34 = vadd.f32 %v3130_v41, %v2292_v52 }
0x27bd   :  { %v1976_v50 = vsel %vm1975_vm5, %v3128_v8, %v1972_v46 }
0x27be   :  { %v1981_v5 = vsel %vm1978_vm9, %v1980_v53, %v1976_v50  ;;  %v2297_v58 = vsel %vm2296_vm12, %v3130_v41, %v2293_v34 }
0x27bf   :  { %v2302_v62 = vsel %vm2299_vm13, %v2301_v59, %v2297_v58  ;;  %v1987_v0 = vmul.f32 %v1985_v63, %v1981_v5 }
0x27c0   :  { %v2308_v15 = vmul.f32 %v2306_v7, %v2302_v62 }
0x2815   :  { %v1990_v9 = vpop.permute.xlu0 %1989 }
0x2816   :  { %v1992_v55 = vmul.f32 %v1990_v9, %v1981_v5 }
0x2818   :  { %1994 = vrot.lane.b32.xlu2 %v1992_v55, %s3365_s6 }
0x281d   :  { %v2311_v61 = vpop.permute.xlu1 %2310 }
0x281e   :  { %v2313_v16 = vmul.f32 %v2311_v61, %v2302_v62 }
0x2820   :  { %2315 = vrot.lane.b32.xlu0 %v2313_v16, %s3365_s6 }
0x2872   :  { %v1995_v40 = vpop.permute.xlu2 %1994 }
0x2873   :  { %v3909_v60 = vadd.f32 %v1995_v40, %v1987_v0 }
0x2875   :  { %3131 = vtanh.f32 %v3909_v60  ;;  %v2069_v7 = vrot.slane %v3909_v60, 6 }
0x287b   :  { %v3132_v24 = vpop.eup %3131 }
0x287c   :  { %2000 = vrot.lane.b32.xlu1 %v3132_v24, %s3364_s19 }
0x2892   :  { %v2316_v17 = vpop.permute.xlu0 %2315 }
0x2893   :  { %v3914_v25 = vadd.f32 %v2316_v17, %v2308_v15 }
0x2895   :  { %3133 = vtanh.f32 %v3914_v25 }
0x289b   :  { %v3134_v19 = vpop.eup %3133 }
0x289c   :  { %2321 = vrot.lane.b32.xlu2 %v3134_v19, %s3364_s19 }
0x28ee   :  { %v2001_v13 = vpop.permute.xlu1 %2000 }
0x28ef   :  { %v2003_v23 = vmul.f32 %v2001_v13, %v1981_v5  ;;  %v2380_v13 = vrot.slane %v3914_v25, 2 }
0x28f1   :  { %v2011_v6 = vrot.slane %v2003_v23, 2 }
0x28f3   :  { %2012 = vrot.lane.b32.xlu0 %v2011_v6, %s3365_s6 }
0x28f6   :  { %v2322_v27 = vpop.permute.xlu2 %2321 }
0x28f7   :  { %v2324_v28 = vmul.f32 %v2322_v27, %v2302_v62 }
0x28f9   :  { %v2326_v29 = vrot.slane %v2324_v28, 4 }
0x28fb   :  { %2327 = vrot.lane.b32.xlu1 %v2326_v29, %s3365_s6 }
0x2965   :  { %v3920_v1 = vpop.permute.xlu0 %2012 }
0x2966   :  { %2900 = vmatmul.msk.f32.vlgmr.msrb.gmra.mxu2 %vm175_vm0, %v3920_v1 }
0x2967   :  { %2642 = vmatpush.msrb.mxu2 %v3844_v2 }
0x2969   :  { %2643 = vmatpush.msrb.mxu2 %v3846_v26 }
0x296b   :  { %2644 = vmatpush.msrb.mxu2 %v3850_v14 }
0x296d   :  { %v3927_v31 = vpop.permute.xlu1 %2327  ;;  %2645 = vmatpush.msrb.mxu2 %v3856_v11 }
0x296e   :  { %2907 = vmatmul.msk.f32.vlgmr.msra.gmra.mxu2 %vm175_vm0, %v3927_v31 }
0x29e9   :  { %v2041_v30 = vpop.f32.mrf.mxu2 }
0x29ea   :  { %v2045_v32 = vrot.slane %v2041_v30, 4 }
0x29ec   :  { %v2047_v35 = vadd.f32 %v2045_v32, %v2021_v51 }
0x29ee   :  { %3135 = vtanh.f32 %v2047_v35  ;;  %v2901_v38 = vmul.f32 -1.442695, %v2047_v35 }
0x29f1   :  { %v2352_v36 = vpop.f32.mrf.mxu2 }
0x29f2   :  { %v2356_v43 = vrot.slane %v2352_v36, 6 }
0x29f4   :  { %v3136_v4 = vpop.eup %3135  ;;  %v2358_v44 = vadd.f32 %v2356_v43, %v2332_v37 }
0x29f5   :  { %2073 = vrot.lane.b32.xlu2 %v3136_v4, %s3364_s19  ;;  %v2406_v4 = vld [vmem:[#allocation4 + $0x8] sm:$0x3] }
0x29f6   :  { %3137 = vtanh.f32 %v2358_v44  ;;  %v2908_v42 = vmul.f32 -1.442695, %v2358_v44 }
0x29f7   :  { %3139 = vpow2.f32 %v2901_v38 }
0x29fc   :  { %v3138_v10 = vpop.eup %3137 }
0x29fd   :  { %2384 = vrot.lane.b32.xlu0 %v3138_v10, %s3364_s19  ;;  %v3140_v21 = vpop.eup %3139 }
0x29fe   :  { %v2051_v8 = vadd.f32 1.0, %v3140_v21 }
0x2a00   :  { %3141 = vrcp.f32 %v2051_v8  ;;  %v2063_v47 = vand.u32 2147483648, %v2051_v8  ;;  %vm2057_vm15 = vweird.f32 %v2051_v8  ;;  %v2061_v48 = vand.u32 2147483647, %v2051_v8 }
0x2a01   :  { %3143 = vpow2.f32 %v2908_v42 }
0x2a02   :  { %v2064_v52 = vor.u32 1.1754944e-38, %v2063_v47  ;;  %vm2062_vm2 = vcmp.eq.f32.partialorder %v2061_v48, 8.507059e+37 }
0x2a06   :  { %v3142_v3 = vpop.eup %3141 }
0x2a07   :  { %v2053_v39 = vmul.f32 %v3142_v3, %v2051_v8  ;;  %vm2058_vm14 = vweird.f32 %v3142_v3  ;;  %v3144_v49 = vpop.eup %3143 }
0x2a08   :  { %vm2059_vm1 = vmor %vm2057_vm15, %vm2058_vm14  ;;  %v2362_v53 = vadd.f32 1.0, %v3144_v49 }
0x2a09   :  { %v2054_v41 = vsub.f32 1.0, %v2053_v39 }
0x2a0a   :  { %3145 = vrcp.f32 %v2362_v53  ;;  %v2374_v61 = vand.u32 2147483648, %v2362_v53  ;;  %vm2368_vm4 = vweird.f32 %v2362_v53  ;;  %v2372_v62 = vand.u32 2147483647, %v2362_v53 }
0x2a0b   :  { %v2055_v45 = vmul.f32 %v3142_v3, %v2054_v41 }
0x2a0c   :  { %v2375_v63 = vor.u32 1.1754944e-38, %v2374_v61  ;;  %vm2373_vm7 = vcmp.eq.f32.partialorder %v2372_v62, 8.507059e+37 }
0x2a0d   :  { %v2056_v46 = vadd.f32 %v3142_v3, %v2055_v45 }
0x2a0f   :  { %v2060_v50 = vsel %vm2059_vm1, %v3142_v3, %v2056_v46 }
0x2a10   :  { %v2065_v9 = vsel %vm2062_vm2, %v2064_v52, %v2060_v50  ;;  %v3146_v34 = vpop.eup %3145 }
0x2a11   :  { %v2364_v56 = vmul.f32 %v3146_v34, %v2362_v53  ;;  %vm2369_vm3 = vweird.f32 %v3146_v34  ;;  %v2071_v15 = vmul.f32 %v2069_v7, %v2065_v9 }
0x2a12   :  { %vm2370_vm6 = vmor %vm2368_vm4, %vm2369_vm3 }
0x2a13   :  { %v2365_v57 = vsub.f32 1.0, %v2364_v56 }
0x2a15   :  { %v2366_v58 = vmul.f32 %v3146_v34, %v2365_v57 }
0x2a17   :  { %v2367_v59 = vadd.f32 %v3146_v34, %v2366_v58 }
0x2a19   :  { %v2371_v16 = vsel %vm2370_vm6, %v3146_v34, %v2367_v59  ;;  %v2476_v59 = vld [vmem:[#allocation4] sm:$0xc0] }
0x2a1a   :  { %v2376_v40 = vsel %vm2373_vm7, %v2375_v63, %v2371_v16 }
0x2a1b   :  { %v2382_v23 = vmul.f32 %v2380_v13, %v2376_v40 }
0x2a4f   :  { %v2074_v5 = vpop.permute.xlu2 %2073 }
0x2a50   :  { %v2076_v55 = vmul.f32 %v2074_v5, %v2065_v9 }
0x2a52   :  { %2078 = vrot.lane.b32.xlu1 %v2076_v55, %s3365_s6 }
0x2a6f   :  { %v2385_v0 = vpop.permute.xlu0 %2384 }
0x2a70   :  { %v2387_v24 = vmul.f32 %v2385_v0, %v2376_v40 }
0x2a72   :  { %2389 = vrot.lane.b32.xlu2 %v2387_v24, %s3365_s6 }
0x2ac4   :  { %v2079_v17 = vpop.permute.xlu1 %2078 }
0x2ac5   :  { %v3937_v19 = vadd.f32 %v2079_v17, %v2071_v15 }
0x2ac7   :  { %3147 = vtanh.f32 %v3937_v19 }
0x2acc   :  { %v2390_v6 = vpop.permute.xlu2 %2389 }
0x2acd   :  { %v3148_v27 = vpop.eup %3147  ;;  %v2392_v28 = vadd.f32 %v2390_v6, %v2382_v23 }
0x2ace   :  { %2084 = vrot.lane.b32.xlu0 %v3148_v27, %s3364_s19 }
0x2acf   :  { %3149 = vtanh.f32 %v2392_v28  ;;  %v2451_v50 = vrot.slane %v2392_v28, 2 }
0x2ad5   :  { %v3150_v29 = vpop.eup %3149 }
0x2ad6   :  { %2395 = vrot.lane.b32.xlu1 %v3150_v29, %s3364_s19 }
0x2b40   :  { %v2085_v30 = vpop.permute.xlu0 %2084 }
0x2b41   :  { %v2087_v60 = vmul.f32 %v2085_v30, %v2065_v9 }
0x2b43   :  { %v2095_v32 = vrot.slane %v2087_v60, 4 }
0x2b45   :  { %2096 = vrot.lane.b32.xlu2 %v2095_v32, %s3365_s6 }
0x2b48   :  { %v2396_v51 = vpop.permute.xlu1 %2395 }
0x2b49   :  { %v2398_v35 = vmul.f32 %v2396_v51, %v2376_v40 }
0x2b4b   :  { %v2400_v36 = vrot.slane %v2398_v35, 2 }
0x2b4d   :  { %2401 = vrot.lane.b32.xlu0 %v2400_v36, %s3365_s6 }
0x2b9f   :  { %v3945_v25 = vpop.permute.xlu2 %2096 }
0x2ba0   :  { %2902 = vmatmul.msk.f32.vlgmr.msrb.gmra.mxu3 %vm175_vm0, %v3945_v25 }
0x2ba1   :  { %2716 = vmatpush.msrb.mxu3 %v3844_v2 }
0x2ba3   :  { %2717 = vmatpush.msrb.mxu3 %v3846_v26 }
0x2ba5   :  { %2718 = vmatpush.msrb.mxu3 %v3850_v14 }
0x2ba7   :  { %2719 = vmatpush.msrb.mxu3 %v3856_v11 }
0x2bbf   :  { %v3953_v43 = vpop.permute.xlu0 %2401 }
0x2bc0   :  { %2909 = vmatmul.msk.f32.vlgmr.msra.gmra.mxu3 %vm175_vm0, %v3953_v43 }
0x2c23   :  { %v3957_v37 = vpop.f32.mrf.mxu3 }
0x2c43   :  { %v2426_v44 = vpop.f32.mrf.mxu3 }
0x2c44   :  { %v2429_v10 = vadd.f32 %v2426_v44, %v2406_v4 }
0x2c46   :  { %3151 = vtanh.f32 %v2429_v10  ;;  %v2910_v2 = vmul.f32 -1.442695, %v2429_v10 }
0x2c48   :  { %3153 = vpow2.f32 %v2910_v2 }
0x2c4c   :  { %v3152_v38 = vpop.eup %3151 }
0x2c4d   :  { %2455 = vrot.lane.b32.xlu1 %v3152_v38, %s3364_s19 }
0x2c4e   :  { %v3154_v26 = vpop.eup %3153 }
0x2c4f   :  { %v2433_v14 = vadd.f32 1.0, %v3154_v26 }
0x2c51   :  { %3155 = vrcp.f32 %v2433_v14  ;;  %v2445_v41 = vand.u32 2147483648, %v2433_v14  ;;  %vm2439_vm5 = vweird.f32 %v2433_v14  ;;  %v2443_v42 = vand.u32 2147483647, %v2433_v14 }
0x2c53   :  { %v2446_v46 = vor.u32 1.1754944e-38, %v2445_v41  ;;  %vm2444_vm10 = vcmp.eq.f32.partialorder %v2443_v42, 8.507059e+37 }
0x2c57   :  { %v3156_v11 = vpop.eup %3155 }
0x2c58   :  { %v2435_v21 = vmul.f32 %v3156_v11, %v2433_v14  ;;  %vm2440_vm8 = vweird.f32 %v3156_v11  ;;  %v2553_v14 = vld [vmem:[#allocation4] sm:$0x30] }
0x2c59   :  { %vm2441_vm9 = vmor %vm2439_vm5, %vm2440_vm8 }
0x2c5a   :  { %v2436_v8 = vsub.f32 1.0, %v2435_v21 }
0x2c5c   :  { %v2437_v3 = vmul.f32 %v3156_v11, %v2436_v8 }
0x2c5e   :  { %v2438_v39 = vadd.f32 %v3156_v11, %v2437_v3 }
0x2c60   :  { %v2442_v45 = vsel %vm2441_vm9, %v3156_v11, %v2438_v39 }
0x2c61   :  { %v2447_v48 = vsel %vm2444_vm10, %v2446_v46, %v2442_v45 }
0x2c62   :  { %v2453_v52 = vmul.f32 %v2451_v50, %v2447_v48 }
0x2cbf   :  { %v2456_v47 = vpop.permute.xlu1 %2455 }
0x2cc0   :  { %v2458_v49 = vmul.f32 %v2456_v47, %v2447_v48 }
0x2cc2   :  { %2460 = vrot.lane.b32.xlu2 %v2458_v49, %s3365_s6 }
0x2d1c   :  { %v2461_v53 = vpop.permute.xlu2 %2460 }
0x2d1d   :  { %v2463_v9 = vadd.f32 %v2461_v53, %v2453_v52 }
0x2d1f   :  { %3157 = vtanh.f32 %v2463_v9  ;;  %v2527_v60 = vrot.slane %v2463_v9, 2 }
0x2d25   :  { %v3158_v5 = vpop.eup %3157 }
0x2d26   :  { %2466 = vrot.lane.b32.xlu0 %v3158_v5, %s3364_s19 }
0x2d98   :  { %v2467_v55 = vpop.permute.xlu0 %2466 }
0x2d99   :  { %v3962_v34 = vmul.f32 %v2467_v55, %v2447_v48 }
0x2d9b   :  { %2478 = vrot.lane.b32.xlu1 %v3962_v34, %s3365_s6 }
0x2e0d   :  { %v2479_v56 = vpop.permute.xlu1 %2478 }
0x2e0e   :  { %2911 = vmatmul.msk.f32.vlgmr.msra.gmra.mxu0 %vm175_vm0, %v2479_v56 }
0x2e8b   :  { %v2499_v57 = vpop.f32.mrf.mxu0 }
0x2e8c   :  { %v2503_v58 = vrot.slane %v2499_v57, 2 }
0x2e8e   :  { %v2505_v61 = vadd.f32 %v2503_v58, %v2476_v59 }
0x2e90   :  { %3159 = vtanh.f32 %v2505_v61  ;;  %v2912_v16 = vmul.f32 -1.442695, %v2505_v61 }
0x2e92   :  { %3161 = vpow2.f32 %v2912_v16 }
0x2e96   :  { %v3160_v62 = vpop.eup %3159 }
0x2e97   :  { %2531 = vrot.lane.b32.xlu2 %v3160_v62, %s3364_s19 }
0x2e98   :  { %v3162_v63 = vpop.eup %3161 }
0x2e99   :  { %v2509_v0 = vadd.f32 1.0, %v3162_v63 }
0x2e9b   :  { %3163 = vrcp.f32 %v2509_v0  ;;  %v2521_v13 = vand.u32 2147483648, %v2509_v0  ;;  %vm2515_vm12 = vweird.f32 %v2509_v0  ;;  %v2519_v23 = vand.u32 2147483647, %v2509_v0 }
0x2e9d   :  { %v2522_v27 = vor.u32 1.1754944e-38, %v2521_v13  ;;  %vm2520_vm14 = vcmp.eq.f32.partialorder %v2519_v23, 8.507059e+37 }
0x2ea1   :  { %v3164_v40 = vpop.eup %3163 }
0x2ea2   :  { %v2511_v24 = vmul.f32 %v3164_v40, %v2509_v0  ;;  %vm2516_vm11 = vweird.f32 %v3164_v40 }
0x2ea3   :  { %vm2517_vm13 = vmor %vm2515_vm12, %vm2516_vm11 }
0x2ea4   :  { %v2512_v7 = vsub.f32 1.0, %v2511_v24  ;;  %v2627_v24 = vld [vmem:[#allocation4] sm:$0xc] }
0x2ea6   :  { %v2513_v15 = vmul.f32 %v3164_v40, %v2512_v7 }
0x2ea8   :  { %v2514_v17 = vadd.f32 %v3164_v40, %v2513_v15 }
0x2eaa   :  { %v2518_v6 = vsel %vm2517_vm13, %v3164_v40, %v2514_v17 }
0x2eab   :  { %v2523_v29 = vsel %vm2520_vm14, %v2522_v27, %v2518_v6 }
0x2eac   :  { %v2529_v32 = vmul.f32 %v2527_v60, %v2523_v29 }
0x2ef1   :  { %v2532_v28 = vpop.permute.xlu2 %2531 }
0x2ef2   :  { %v2534_v30 = vmul.f32 %v2532_v28, %v2523_v29 }
0x2ef4   :  { %2536 = vrot.lane.b32.xlu0 %v2534_v30, %s3365_s6 }
0x2f66   :  { %v2537_v51 = vpop.permute.xlu0 %2536 }
0x2f67   :  { %v2539_v35 = vadd.f32 %v2537_v51, %v2529_v32  ;;  %v2129_v51 = vrot.slane %v3957_v37, 2 }
0x2f69   :  { %3165 = vtanh.f32 %v2539_v35  ;;  %v2601_v55 = vrot.slane %v2539_v35, 2 }
0x2f6f   :  { %v3166_v36 = vpop.eup %3165 }
0x2f70   :  { %2542 = vrot.lane.b32.xlu1 %v3166_v36, %s3364_s19 }
0x2fe2   :  { %v2543_v4 = vpop.permute.xlu1 %2542 }
0x2fe3   :  { %v2545_v44 = vmul.f32 %v2543_v4, %v2523_v29  ;;  %v2105_v4 = vld [vmem:[#allocation4 + $0x18] sm:$0xc0] }
0x2fe5   :  { %v2547_v10 = vrot.slane %v2545_v44, 6  ;;  %v2131_v44 = vadd.f32 %v2129_v51, %v2105_v4 }
0x2fe7   :  { %2548 = vrot.lane.b32.xlu2 %v2547_v10, %s3365_s6 }
0x3041   :  { %v3971_v38 = vpop.permute.xlu2 %2548 }
0x3042   :  { %2913 = vmatmul.msk.f32.vlgmr.msrb.gmra.mxu1 %vm175_vm0, %v3971_v38 }
0x30bf   :  { %v2573_v2 = vpop.f32.mrf.mxu1 }
0x30c0   :  { %v2577_v26 = vrot.slane %v2573_v2, 4 }
0x30c2   :  { %v2579_v11 = vadd.f32 %v2577_v26, %v2553_v14 }
0x30c4   :  { %3167 = vtanh.f32 %v2579_v11  ;;  %v2914_v8 = vmul.f32 -1.442695, %v2579_v11  ;;  %v2903_v11 = vmul.f32 -1.442695, %v2131_v44 }
0x30c6   :  { %3169 = vpow2.f32 %v2914_v8 }
0x30ca   :  { %v3168_v21 = vpop.eup %3167 }
0x30cb   :  { %2605 = vrot.lane.b32.xlu0 %v3168_v21, %s3364_s19 }
0x30cc   :  { %v3170_v3 = vpop.eup %3169 }
0x30cd   :  { %v2583_v39 = vadd.f32 1.0, %v3170_v3 }
0x30cf   :  { %3171 = vrcp.f32 %v2583_v39  ;;  %v2595_v48 = vand.u32 2147483648, %v2583_v39  ;;  %vm2589_vm1 = vweird.f32 %v2583_v39  ;;  %v2593_v49 = vand.u32 2147483647, %v2583_v39 }
0x30d1   :  { %v2596_v52 = vor.u32 1.1754944e-38, %v2595_v48  ;;  %vm2594_vm3 = vcmp.eq.f32.partialorder %v2593_v49, 8.507059e+37 }
0x30d5   :  { %v3172_v41 = vpop.eup %3171 }
0x30d6   :  { %v2585_v42 = vmul.f32 %v3172_v41, %v2583_v39  ;;  %vm2590_vm15 = vweird.f32 %v3172_v41 }
0x30d7   :  { %vm2591_vm2 = vmor %vm2589_vm1, %vm2590_vm15 }
0x30d8   :  { %v2586_v45 = vsub.f32 1.0, %v2585_v42 }
0x30da   :  { %v2587_v46 = vmul.f32 %v3172_v41, %v2586_v45 }
0x30dc   :  { %v2588_v47 = vadd.f32 %v3172_v41, %v2587_v46 }
0x30de   :  { %v2592_v50 = vsel %vm2591_vm2, %v3172_v41, %v2588_v47 }
0x30df   :  { %v2597_v9 = vsel %vm2594_vm3, %v2596_v52, %v2592_v50 }
0x30e0   :  { %v2603_v56 = vmul.f32 %v2601_v55, %v2597_v9 }
0x313d   :  { %v2606_v53 = vpop.permute.xlu0 %2605 }
0x313e   :  { %v2608_v5 = vmul.f32 %v2606_v53, %v2597_v9 }
0x3140   :  { %2610 = vrot.lane.b32.xlu1 %v2608_v5, %s3365_s6 }
0x31b2   :  { %v2611_v57 = vpop.permute.xlu1 %2610 }
0x31b3   :  { %v2613_v58 = vadd.f32 %v2611_v57, %v2603_v56  ;;  %v3366_v57 = vmov 0  }
0x31b4   :  { %2941 = vset.pattern.permute.xlu0 %v3366_v57  ;;  %2939 = vset.pattern.permute.xlu1 %v3366_v57 }
0x31b5   :  { %3173 = vtanh.f32 %v2613_v58  ;;  %v2675_v39 = vrot.slane %v2613_v58, 2  ;;  %2940 = vset.pattern.permute.xlu2 %v3366_v57 }
0x31bb   :  { %v3174_v59 = vpop.eup %3173 }
0x31bc   :  { %2616 = vrot.lane.b32.xlu2 %v3174_v59, %s3364_s19 }
0x3216   :  { %v2617_v61 = vpop.permute.xlu2 %2616 }
0x3217   :  { %v2619_v62 = vmul.f32 %v2617_v61, %v2597_v9 }
0x3219   :  { %v2621_v16 = vrot.slane %v2619_v62, 4  ;;  %v2153_v62 = vrot.slane %v3937_v19, 6 }
0x321b   :  { %2622 = vrot.lane.b32.xlu0 %v2621_v16, %s3365_s6 }
0x328d   :  { %v3979_v63 = vpop.permute.xlu0 %2622 }
0x328e   :  { %2915 = vmatmul.msk.f32.vlgmr.msrb.gmra.mxu2 %vm175_vm0, %v3979_v63 }
0x3311   :  { %v2647_v0 = vpop.f32.mrf.mxu2 }
0x3312   :  { %v2651_v40 = vrot.slane %v2647_v0, 6 }
0x3314   :  { %v2653_v7 = vadd.f32 %v2651_v40, %v2627_v24 }
0x3316   :  { %3175 = vtanh.f32 %v2653_v7  ;;  %v2916_v17 = vmul.f32 -1.442695, %v2653_v7  ;;  %v1845_v7 = vld [vmem:[%s4093_s1 + $0x6] sm:$0x3] }
0x3318   :  { %3177 = vpow2.f32 %v2916_v17  ;;  %v2701_v17 = vld [vmem:[#allocation4] sm:$0x3] }
0x331c   :  { %v3176_v15 = vpop.eup %3175 }
0x331d   :  { %2679 = vrot.lane.b32.xlu1 %v3176_v15, %s3364_s19  ;;  %v1599_v15 = vld [vmem:[%s4093_s1] sm:$0x3] }
0x331e   :  { %v3178_v13 = vpop.eup %3177 }
0x331f   :  { %v2657_v23 = vadd.f32 1.0, %v3178_v13 }
0x3321   :  { %3179 = vrcp.f32 %v2657_v23  ;;  %v2669_v60 = vand.u32 2147483648, %v2657_v23  ;;  %vm2663_vm6 = vweird.f32 %v2657_v23  ;;  %v2667_v32 = vand.u32 2147483647, %v2657_v23 }
0x3322   :  { %3181 = vtanh.f32 %v2131_v44 }
0x3323   :  { %v2670_v36 = vor.u32 1.1754944e-38, %v2669_v60  ;;  %vm2668_vm8 = vcmp.eq.f32.partialorder %v2667_v32, 8.507059e+37  ;;  %3183 = vpow2.f32 %v2903_v11 }
0x3327   :  { %v3180_v6 = vpop.eup %3179 }
0x3328   :  { %v2659_v27 = vmul.f32 %v3180_v6, %v2657_v23  ;;  %vm2664_vm4 = vweird.f32 %v3180_v6  ;;  %v3182_v14 = vpop.eup %3181 }
0x3329   :  { %vm2665_vm7 = vmor %vm2663_vm6, %vm2664_vm4  ;;  %v3184_v21 = vpop.eup %3183  ;;  %vm2813_vm6 = vcmask 523264  }
0x332a   :  { %v2660_v28 = vsub.f32 1.0, %v2659_v27  ;;  %v2135_v8 = vadd.f32 1.0, %v3184_v21  ;;  %v1677_v27 = vld [vmem:[%s4093_s1 + $0x2] sm:$0x3] }
0x332c   :  { %v2661_v29 = vmul.f32 %v3180_v6, %v2660_v28  ;;  %3185 = vrcp.f32 %v2135_v8  ;;  %v2147_v50 = vand.u32 2147483648, %v2135_v8  ;;  %vm2141_vm9 = vweird.f32 %v2135_v8  ;;  %v1926_v28 = vld [vmem:[%s4093_s1 + $0x8] sm:$0x3] }
0x332d   :  { %v2145_v52 = vand.u32 2147483647, %v2135_v8 }
0x332e   :  { %v2662_v30 = vadd.f32 %v3180_v6, %v2661_v29  ;;  %v2148_v5 = vor.u32 1.1754944e-38, %v2147_v50  ;;  %v2088_v29 = vld [vmem:[%s4093_s1 + $0xc] sm:$0x3] }
0x332f   :  { %vm2146_vm11 = vcmp.eq.f32.partialorder %v2145_v52, 8.507059e+37 }
0x3330   :  { %v2666_v35 = vsel %vm2665_vm7, %v3180_v6, %v2662_v30  ;;  %v2172_v30 = vld [vmem:[%s4093_s1 + $0xe] sm:$0x3]  ;;  %vm2837_vm7 = vcmask 1024  }
0x3331   :  { %v2671_v2 = vsel %vm2668_vm8, %v2670_v36, %v2666_v35 }
0x3332   :  { %v3186_v37 = vpop.eup %3185  ;;  %v2677_v41 = vmul.f32 %v2675_v39, %v2671_v2  ;;  %v1761_v39 = vld [vmem:[%s4093_s1 + $0x4] sm:$0x3] }
0x3333   :  { %v2137_v3 = vmul.f32 %v3186_v37, %v2135_v8  ;;  %vm2142_vm5 = vweird.f32 %v3186_v37 }
0x3334   :  { %vm2143_vm10 = vmor %vm2141_vm9, %vm2142_vm5 }
0x3335   :  { %v2138_v45 = vsub.f32 1.0, %v2137_v3 }
0x3337   :  { %v2139_v47 = vmul.f32 %v3186_v37, %v2138_v45  ;;  %v2004_v45 = vld [vmem:[%s4093_s1 + $0xa] sm:$0x3] }
0x3339   :  { %v2140_v48 = vadd.f32 %v3186_v37, %v2139_v47 }
0x333b   :  { %v2144_v53 = vsel %vm2143_vm10, %v3186_v37, %v2140_v48 }
0x333c   :  { %v3991_v55 = vsel %vm2146_vm11, %v2148_v5, %v2144_v53 }
0x333d   :  { %v2155_v16 = vmul.f32 %v2153_v62, %v3991_v55 }
0x338f   :  { %v2680_v10 = vpop.permute.xlu1 %2679 }
0x3390   :  { %v2682_v26 = vmul.f32 %v2680_v10, %v2671_v2 }
0x3392   :  { %2684 = vrot.lane.b32.xlu2 %v2682_v26, %s3365_s6 }
0x339a   :  { %2157 = vrot.lane.b32.xlu2 %v3182_v14, %s3364_s19 }
0x33ec   :  { %v2685_v42 = vpop.permute.xlu2 %2684 }
0x33ed   :  { %v3987_v46 = vadd.f32 %v2685_v42, %v2677_v41 }
0x33ef   :  { %3187 = vtanh.f32 %v3987_v46  ;;  %v2746_v48 = vrot.slane %v3987_v46, 2 }
0x33f4   :  { %v2158_v9 = vpop.permute.xlu2 %2157 }
0x33f5   :  { %v3188_v49 = vpop.eup %3187  ;;  %v2160_v56 = vmul.f32 %v2158_v9, %v3991_v55 }
0x33f6   :  { %2690 = vrot.lane.b32.xlu0 %v3188_v49, %s3364_s19 }
0x33fe   :  { %2162 = vrot.lane.b32.xlu0 %v2160_v56, %s3365_s6 }
0x3468   :  { %v2691_v58 = vpop.permute.xlu0 %2690 }
0x3469   :  { %v2693_v59 = vmul.f32 %v2691_v58, %v2671_v2 }
0x346b   :  { %v2695_v61 = vrot.slane %v2693_v59, 2 }
0x346d   :  { %2696 = vrot.lane.b32.xlu1 %v2695_v61, %s3365_s6 }
0x3470   :  { %v2163_v0 = vpop.permute.xlu0 %2162 }
0x3471   :  { %v2165_v40 = vadd.f32 %v2163_v0, %v2155_v16 }
0x3473   :  { %3189 = vtanh.f32 %v2165_v40 }
0x3479   :  { %v3190_v24 = vpop.eup %3189 }
0x347a   :  { %2168 = vrot.lane.b32.xlu0 %v3190_v24, %s3364_s19 }
0x3482   :  { %1848 = vperm.xlu0 %2941, %v1845_v7  }
0x348a   :  { %1602 = vperm.xlu0 %2941, %v1599_v15  }
0x34df   :  { %v4005_v19 = vpop.permute.xlu1 %2696 }
0x34e0   :  { %2917 = vmatmul.msk.f32.vlgmr.msrb.gmra.mxu3 %vm175_vm0, %v4005_v19 }
0x34ec   :  { %v2169_v52 = vpop.permute.xlu0 %2168 }
0x34f4   :  { %v1849_v56 = vpop.permute.xlu0 %1848 }
0x34f5   :  { %v1856_v61 = vmul.f32 %v3868_v12, %v1849_v56  ;;  %v2780_v12 = vld [vmem:[%s4094_s2] sm:$0x3] }
0x34fc   :  { %v1603_v62 = vpop.permute.xlu0 %1602 }
0x3563   :  { %v2721_v13 = vpop.f32.mrf.mxu3 }
0x3564   :  { %v2724_v23 = vadd.f32 %v2721_v13, %v2701_v17  ;;  %v2551_v17 = vmul.f32 %v3971_v38, %v1849_v56  ;;  %v2808_v38 = vld [vmem:[%s4104_s12 + $0x38] sm:$0xff] }
0x3565   :  { %2825 = vmatpush.msrb.mxu0 %v2808_v38 }
0x3566   :  { %3191 = vtanh.f32 %v2724_v23  ;;  %v2918_v60 = vmul.f32 -1.442695, %v2724_v23 }
0x3568   :  { %3193 = vpow2.f32 %v2918_v60 }
0x356c   :  { %v3192_v6 = vpop.eup %3191 }
0x356d   :  { %2750 = vrot.lane.b32.xlu1 %v3192_v6, %s3364_s19 }
0x356e   :  { %v3194_v32 = vpop.eup %3193 }
0x356f   :  { %v2728_v51 = vadd.f32 1.0, %v3194_v32  ;;  %v1605_v32 = vmul.f32 %v1603_v62, %v3794_v22  ;;  %v2805_v22 = vld [vmem:[%s4104_s12 + $0x20] sm:$0xff] }
0x3571   :  { %3195 = vrcp.f32 %v2728_v51  ;;  %v2740_v2 = vand.u32 2147483648, %v2728_v51  ;;  %vm2734_vm13 = vweird.f32 %v2728_v51  ;;  %v2738_v26 = vand.u32 2147483647, %v2728_v51 }
0x3573   :  { %v2741_v11 = vor.u32 1.1754944e-38, %v2740_v2  ;;  %vm2739_vm15 = vcmp.eq.f32.partialorder %v2738_v26, 8.507059e+37 }
0x3575   :  { %1680 = vperm.xlu1 %2939, %v1677_v27  }
0x3577   :  { %v3196_v35 = vpop.eup %3195 }
0x3578   :  { %v2730_v36 = vmul.f32 %v3196_v35, %v2728_v51  ;;  %vm2735_vm12 = vweird.f32 %v3196_v35 }
0x3579   :  { %vm2736_vm14 = vmor %vm2734_vm13, %vm2735_vm12 }
0x357a   :  { %v2731_v4 = vsub.f32 1.0, %v2730_v36 }
0x357c   :  { %v2732_v44 = vmul.f32 %v3196_v35, %v2731_v4 }
0x357d   :  { %1929 = vperm.xlu1 %2939, %v1926_v28  }
0x357e   :  { %v2733_v10 = vadd.f32 %v3196_v35, %v2732_v44 }
0x3580   :  { %v2737_v14 = vsel %vm2736_vm14, %v3196_v35, %v2733_v10 }
0x3581   :  { %v2742_v8 = vsel %vm2739_vm15, %v2741_v11, %v2737_v14 }
0x3582   :  { %v2748_v49 = vmul.f32 %v2746_v48, %v2742_v8 }
0x3585   :  { %2091 = vperm.xlu1 %2939, %v2088_v29  }
0x358d   :  { %2175 = vperm.xlu1 %2939, %v2172_v30  }
0x35df   :  { %v2751_v21 = vpop.permute.xlu1 %2750 }
0x35e0   :  { %v2753_v37 = vmul.f32 %v2751_v21, %v2742_v8 }
0x35e2   :  { %2755 = vrot.lane.b32.xlu2 %v2753_v37, %s3365_s6 }
0x35e7   :  { %v1681_v3 = vpop.permute.xlu1 %1680 }
0x35e8   :  { %v1688_v41 = vmul.f32 %v3819_v33, %v1681_v3  ;;  %v2699_v23 = vmul.f32 %v4005_v19, %v1681_v3  ;;  %v2806_v19 = vld [vmem:[%s4104_s12 + $0x28] sm:$0xff] }
0x35ea   :  { %1764 = vperm.xlu2 %2940, %v1761_v39   ;;  %1690 = vrot.lane.b32.xlu0 %v1688_v41, %s3367_s13  ;;  %v2803_v39 = vld [vmem:[%s4104_s12 + $0x10] sm:$0xff] }
0x35ef   :  { %v4028_v42 = vpop.permute.xlu1 %1929 }
0x35f0   :  { %v2470_v47 = vmul.f32 %v3962_v34, %v4028_v42  ;;  %v2171_v34 = vmul.f32 %v2169_v52, %v3991_v55  ;;  %v1932_v10 = vmul.f32 %v4028_v42, %v3890_v18  ;;  %v2804_v18 = vld [vmem:[%s4104_s12 + $0x18] sm:$0xff]  ;;  %v2802_v42 = vld [vmem:[%s4104_s12 + $0x8] sm:$0xff] }
0x35f2   :  { %2007 = vperm.xlu2 %2940, %v2004_v45   ;;  %2472 = vrot.lane.b32.xlu0 %v2470_v47, %s3365_s6  ;;  %v2179_v57 = vrot.slane %v2171_v34, 6  ;;  %v2801_v45 = vld [vmem:[%s4104_s12] sm:$0xff] }
0x35f7   :  { %v2092_v59 = vpop.permute.xlu1 %2091 }
0x35f8   :  { %v2099_v16 = vmul.f32 %v3945_v25, %v2092_v59 }
0x363c   :  { %v2756_v33 = vpop.permute.xlu2 %2755 }
0x363d   :  { %v2758_v50 = vadd.f32 %v2756_v33, %v2748_v49 }
0x363f   :  { %3197 = vtanh.f32 %v2758_v50 }
0x3644   :  { %v1765_v53 = vpop.permute.xlu2 %1764 }
0x3645   :  { %v3198_v9 = vpop.eup %3197  ;;  %v1772_v5 = vmul.f32 %v3833_v54, %v1765_v53  ;;  %v2176_v54 = vpop.permute.xlu1 %2175  ;;  %v2625_v25 = vmul.f32 %v3979_v63, %v1765_v53  ;;  %v2807_v63 = vld [vmem:[%s4104_s12 + $0x30] sm:$0xff] }
0x3646   :  { %2761 = vrot.lane.b32.xlu2 %v3198_v9, %s3364_s19  ;;  %v2256_v55 = vmul.f32 %v3899_v20, %v2176_v54  ;;  %2826 = vmatpush.msrb.mxu0 %v2807_v63 }
0x3647   :  { %1774 = vrot.lane.b32.xlu1 %v1772_v5, %s3367_s13 }
0x3648   :  { %2827 = vmatpush.msrb.mxu0 %v2806_v19 }
0x364a   :  { %2828 = vmatpush.msrb.mxu0 %v2805_v22 }
0x364c   :  { %v2008_v58 = vpop.permute.xlu2 %2007  ;;  %2829 = vmatpush.msrb.mxu0 %v2804_v18 }
0x364d   :  { %v2015_v46 = vmul.f32 %v3920_v1, %v2008_v58  ;;  %v2330_v1 = vmul.f32 %v3927_v31, %v2092_v59  ;;  %v2404_v40 = vmul.f32 %v3953_v43, %v2008_v58  ;;  %v2942_v59 = vld [vmem:[#allocation5] ss:$0 sm:$0xff] }
0x364e   :  { %2180 = vrot.lane.b32.xlu2 %v2179_v57, %s3365_s6  ;;  %2830 = vmatpush.msrb.mxu0 %v2803_v39 }
0x364f   :  { %2017 = vrot.lane.b32.xlu1 %v2015_v46, %s3367_s13  ;;  %v2331_v24 = vadd.f32 %v2330_v1, %v2256_v55 }
0x3650   :  { %2831 = vmatpush.msrb.mxu0 %v2802_v42 }
0x3651   :  { %v2405_v7 = vadd.f32 %v2404_v40, %v2331_v24 }
0x3652   :  { %2832 = vmatpush.msrb.mxu0 %v2801_v45 }
0x3656   :  { %1858 = vrot.lane.b32.xlu2 %v1856_v61, %s3367_s13 }
0x365c   :  { %v1691_v0 = vpop.permute.xlu0 %1690 }
0x365d   :  { %v1693_v51 = vadd.f32 %v1691_v0, %v1605_v32 }
0x365e   :  { %2101 = vrot.lane.b32.xlu2 %v2099_v16, %s3367_s13 }
0x3664   :  { %v2473_v15 = vpop.permute.xlu0 %2472 }
0x3665   :  { %v2475_v13 = vadd.f32 %v2473_v15, %v2405_v7 }
0x3666   :  { %2783 = vperm.xlu2 %2940, %v2780_v12  }
0x3667   :  { %v2552_v20 = vadd.f32 %v2551_v17, %v2475_v13 }
0x3669   :  { %v2626_v6 = vadd.f32 %v2625_v25, %v2552_v20 }
0x366b   :  { %v2700_v31 = vadd.f32 %v2699_v23, %v2626_v6 }
0x36a0   :  { %v2762_v27 = vpop.permute.xlu2 %2761 }
0x36a1   :  { %v2764_v43 = vmul.f32 %v2762_v27, %v2742_v8 }
0x36a3   :  { %v2765_v28 = vmul.f32 %v2764_v43, %v1603_v62 }
0x36a5   :  { %2767 = vrot.lane.b32.xlu1 %v2765_v28, %s3365_s6 }
0x36a8   :  { %v2181_v29 = vpop.permute.xlu2 %2180 }
0x36a9   :  { %v2183_v30 = vmul.f32 %v2181_v29, %v2176_v54 }
0x36ab   :  { %2185 = vrot.lane.b32.xlu0 %v2183_v30, %s3367_s13 }
0x36b0   :  { %v1859_v4 = vpop.permute.xlu2 %1858 }
0x36b8   :  { %v2102_v21 = vpop.permute.xlu2 %2101 }
0x36b9   :  { %v1775_v60 = vpop.permute.xlu1 %1774 }
0x36ba   :  { %v1777_v35 = vadd.f32 %v1775_v60, %v1693_v51 }
0x36bc   :  { %v1861_v44 = vadd.f32 %v1859_v4, %v1777_v35 }
0x36be   :  { %v1933_v2 = vadd.f32 %v1932_v10, %v1861_v44 }
0x36c0   :  { %v2784_v41 = vpop.permute.xlu2 %2783 }
0x36c1   :  { %v2018_v36 = vpop.permute.xlu1 %2017  ;;  %3199 = vrcp.f32 %v2784_v41  ;;  %v2797_v52 = vand.u32 2147483648, %v2784_v41  ;;  %vm2791_vm2 = vweird.f32 %v2784_v41  ;;  %v2795_v53 = vand.u32 2147483647, %v2784_v41 }
0x36c2   :  { %v2020_v14 = vadd.f32 %v2018_v36, %v1933_v2 }
0x36c3   :  { %v2798_v5 = vor.u32 1.1754944e-38, %v2797_v52  ;;  %vm2796_vm4 = vcmp.eq.f32.partialorder %v2795_v53, 8.507059e+37 }
0x36c4   :  { %v2104_v8 = vadd.f32 %v2102_v21, %v2020_v14 }
0x36c7   :  { %v3200_v47 = vpop.eup %3199 }
0x36c8   :  { %v2787_v48 = vmul.f32 %v3200_v47, %v2784_v41  ;;  %vm2792_vm1 = vweird.f32 %v3200_v47 }
0x36c9   :  { %vm2793_vm3 = vmor %vm2791_vm2, %vm2792_vm1 }
0x36ca   :  { %v2788_v49 = vsub.f32 1.0, %v2787_v48 }
0x36cc   :  { %v2789_v33 = vmul.f32 %v3200_v47, %v2788_v49 }
0x36ce   :  { %v2790_v50 = vadd.f32 %v3200_v47, %v2789_v33 }
0x36d0   :  { %v2794_v9 = vsel %vm2793_vm3, %v3200_v47, %v2790_v50 }
0x36d1   :  { %v2799_v57 = vsel %vm2796_vm4, %v2798_v5, %v2794_v9 }
0x3717   :  { %v2768_v26 = vpop.permute.xlu1 %2767 }
0x3718   :  { %v2770_v11 = vadd.f32 %v2768_v26, %v2700_v31 }
0x371a   :  { %2776 = vrot.lane.b32.xlu1 %v2770_v11, %s3365_s6 }
0x371d   :  { %v2186_v37 = vpop.permute.xlu0 %2185 }
0x371e   :  { %v2188_v3 = vadd.f32 %v2186_v37, %v2104_v8 }
0x3720   :  { %2772 = vrot.lane.b32.xlu0 %v2188_v3, %s3365_s6 }
0x378c   :  { %v2777_v34 = vpop.permute.xlu1 %2776 }
0x3792   :  { %v2773_v56 = vpop.permute.xlu0 %2772 }
0x3793   :  { %v2779_v58 = vsel %vm175_vm0, %v2773_v56, %v2777_v34 }
0x3794   :  { %v2800_v46 = vmul.f32 %v2799_v57, %v2779_v58 }
0x3796   :  { %2919 = vmatmul.msk.f32.vlgmr.msrb.gmra.mxu0 %vm2813_vm6, %v2800_v46 }
0x3813   :  { %v2834_v61 = vpop.f32.mrf.mxu0 }
0x3814   :  { %v2835_v62 = vadd.f32 %v2942_v59, %v2834_v61 }
0x3816   :  { %2838 = vst.msk [vmem:[%s4106_s14] sm:$0x3] %vm2837_vm7, %v2835_v62 }
0x3817   :  { %2843 = vsyncpa [#allocation7], 1 }
0x3818   :  { %2844 = vsyncpa [#allocation9], 1 }
0x3819   :  { %2845 = vsyncpa [#allocation12], 1 }
0x381a   :  { %2846 = vsyncpa [#allocation15], 1 }

</bundles_post_ra>
